<compile_context>
chip_gen: v7x
topology: tpu7x:2x2x1
jax: 0.10.0
libtpu: 0.0.40
codegen_flags: <defaults>
</compile_context>

<pallas_src>
import functools
import math

import numpy as np
import jax
import jax.numpy as jnp
from jax.experimental import pallas as pl
from jax.experimental.pallas import tpu as pltpu

EPS = 1e-6
NEG_INF = -1e18
LANE = 128
SUBLANE = 8


# ----------------------------------------------------------------------------
# small host-side helpers
# ----------------------------------------------------------------------------
def _rup(n, m):
    return ((n + m - 1) // m) * m


def _pad_axis(a, axis, target, value=0):
    pad = target - a.shape[axis]
    if pad == 0:
        return a
    widths = [(0, 0)] * a.ndim
    widths[axis] = (0, pad)
    return jnp.pad(a, widths, constant_values=value)


def _vmem_limit_bytes():
    # Most of physical VMEM (128 MiB on v5e/v6e, 64 MiB per TC on v7x), with
    # headroom for Mosaic-internal scratch.
    try:
        cap = pltpu.get_tpu_info().vmem_capacity_bytes
    except Exception:
        cap = 64 * 1024 * 1024
    return int(cap * 3 // 4)


# ----------------------------------------------------------------------------
# in-kernel helpers (pure jnp, traced inside the Pallas kernel)
# ----------------------------------------------------------------------------
def _layer_norm(x, g, b, n_real, eps=EPS):
    # Matches the custom LayerNorm (torch.std: unbiased n-1, eps added to std).
    # Written so zero-padded trailing columns (>= n_real) do not perturb the
    # statistics and stay exactly zero (g/b are zero-padded there).
    mean = jnp.sum(x, axis=-1, keepdims=True) * (1.0 / n_real)
    sq = jnp.sum(x * x, axis=-1, keepdims=True)
    var = jnp.maximum(sq - n_real * mean * mean, 0.0) * (1.0 / (n_real - 1))
    inv = 1.0 / (jnp.sqrt(var) + eps)
    return g * (x - mean) * inv + b


def _attend(q, k, v, wo, masked, num_heads, dk, dv, ctx_ref):
    # q [Lq, Dkp] f32, k [Lk, Dkp] f32, v [Lk, Dv] f32, wo [Dv, Hp] bf16.
    # Each head's context goes into the VMEM ctx scratch at its static lane
    # offset (bounds live ranges, no concat), then ONE full-width output proj.
    scale = dk ** -0.5
    for h in range(num_heads):
        qh = (q[:, h * dk:(h + 1) * dk] * scale).astype(jnp.bfloat16)
        kh = k[:, h * dk:(h + 1) * dk].astype(jnp.bfloat16)
        vh = v[:, h * dv:(h + 1) * dv].astype(jnp.bfloat16)
        logits = jax.lax.dot_general(qh, kh, (((1,), (1,)), ((), ())),
                                     preferred_element_type=jnp.float32)
        logits = jnp.where(masked, NEG_INF, logits)
        m = jnp.max(logits, axis=-1, keepdims=True)
        e = jnp.exp(logits - m)
        w = e * pl.reciprocal(jnp.sum(e, axis=-1, keepdims=True), approx=True)
        ctx_ref[:, h * dv:(h + 1) * dv] = jnp.dot(
            w.astype(jnp.bfloat16), vh, preferred_element_type=jnp.float32)
    return jnp.dot(ctx_ref[...].astype(jnp.bfloat16), wo,
                   preferred_element_type=jnp.float32)


def _causal_conv3(z, w, bias, buf):
    # Causal Conv1d (kernel=3, left pad 2) as ONE deep-K matmul.
    #   z   [L, C]      f32 (padded cols are zero)
    #   w   [3*C, Cout] bf16, tap-major rows [W0|W1|W2], W_j applied to z[t-(2-j)]
    #   bias[1, Cout]   f32
    #   buf [L, 3*C]    bf16 VMEM scratch (shifted-concat input, 128-aligned blocks)
    L, C = z.shape
    row = jax.lax.broadcasted_iota(jnp.int32, (L, C), 0)
    buf[:, 2 * C:] = z.astype(jnp.bfloat16)                                # shift 0
    buf[:, C:2 * C] = jnp.where(row < 1, 0.0,
                                pltpu.roll(z, 1, axis=0)).astype(jnp.bfloat16)  # shift 1
    buf[:, :C] = jnp.where(row < 2, 0.0,
                           pltpu.roll(z, 2, axis=0)).astype(jnp.bfloat16)       # shift 2
    return jnp.dot(buf[...], w, preferred_element_type=jnp.float32) + bias


# ----------------------------------------------------------------------------
# fused Pallas kernel: embedding + all decoder layers + final LayerNorm
# grid = (num_layers, batch); x resident in VMEM scratch across layers.
# ----------------------------------------------------------------------------
def fused_decoder_kernel(
        inp_ref, enc_ref, trg_mask_ref, src_mask_ref, timing_ref, wemb_ref,
        wqkv1_ref, wo1_ref, wq2_ref, wkv2_ref, wo2_ref,
        c1w_ref, c1b_ref, c2w_ref, c2b_ref,
        g1_ref, b1_ref, g2_ref, b2_ref, g3_ref, b3_ref,
        gf_ref, bf_ref,
        y_ref, attn_ref,
        x_scratch, ctx_scratch, cv1_scratch, cv2_scratch,
        *, num_heads, h_real, dk_real, dv_real):
    layer = pl.program_id(0)
    b = pl.program_id(1)
    n_layers = pl.num_programs(0)
    Lt = x_scratch.shape[1]
    Dkp = wq2_ref.shape[2]
    dk = dk_real // num_heads
    dv = dv_real // num_heads

    # --- layer 0: x = embedding_proj(inputs) + timing_signal[:Lt] ---
    @pl.when(layer == 0)
    def _():
        x0 = jnp.dot(inp_ref[0], wemb_ref[...], preferred_element_type=jnp.float32)
        x_scratch[b] = x0 + timing_ref[...]

    x = x_scratch[b]              # [Lt, Hp] f32, carried across layer grid steps
    enc = enc_ref[0]              # [Lsp, Hp] bf16

    # masks built in-kernel (no [B, Lt, Lt] HBM traffic): causal OR pad
    row = jax.lax.broadcasted_iota(jnp.int32, (Lt, Lt), 0)
    col = jax.lax.broadcasted_iota(jnp.int32, (Lt, Lt), 1)
    dec_masked = jnp.logical_or(col > row, trg_mask_ref[0] > 0.5)   # [Lt, Lt]
    src_masked = src_mask_ref[0] > 0.5                              # [1, Lsp]

    # --- masked multi-head self-attention (pre-LN + residual), fused QKV ---
    xn = _layer_norm(x, g1_ref[0], b1_ref[0], h_real).astype(jnp.bfloat16)
    qkv = jnp.dot(xn, wqkv1_ref[0], preferred_element_type=jnp.float32)
    q1 = qkv[:, :Dkp]
    k1 = qkv[:, Dkp:2 * Dkp]
    v1 = qkv[:, 2 * Dkp:]
    x = x + _attend(q1, k1, v1, wo1_ref[0], dec_masked,
                    num_heads, dk, dv, ctx_scratch)

    # --- encoder-decoder attention (pre-LN + residual), fused KV ---
    xn = _layer_norm(x, g2_ref[0], b2_ref[0], h_real).astype(jnp.bfloat16)
    q2 = jnp.dot(xn, wq2_ref[0], preferred_element_type=jnp.float32)
    kv2 = jnp.dot(enc, wkv2_ref[0], preferred_element_type=jnp.float32)
    k2 = kv2[:, :Dkp]
    v2 = kv2[:, Dkp:]
    x = x + _attend(q2, k2, v2, wo2_ref[0], src_masked,
                    num_heads, dk, dv, ctx_scratch)

    # --- position-wise FFN 'cc': causal conv(k=3) -> ReLU -> causal conv(k=3) ---
    xn = _layer_norm(x, g3_ref[0], b3_ref[0], h_real)
    h1 = jnp.maximum(_causal_conv3(xn, c1w_ref[0], c1b_ref[0], cv1_scratch), 0.0)
    x = x + _causal_conv3(h1, c2w_ref[0], c2b_ref[0], cv2_scratch)

    x_scratch[b] = x

    # --- last layer only: final LayerNorm + head-averaged cross-attn logits ---
    @pl.when(layer == n_layers - 1)
    def _():
        y_ref[0] = _layer_norm(x, gf_ref[...], bf_ref[...], h_real)
        scale = dk ** -0.5
        # sum over heads of per-head scaled logits == full-width contraction
        logit_sum = jax.lax.dot_general(
            (q2 * scale).astype(jnp.bfloat16), k2.astype(jnp.bfloat16),
            (((1,), (1,)), ((), ())), preferred_element_type=jnp.float32)
        attn_ref[0] = jnp.where(src_masked, NEG_INF, logit_sum * (1.0 / num_heads))


# ----------------------------------------------------------------------------
# wrapper: pad/fuse/stack weights (bf16 MXU operands), one pallas_call
# ----------------------------------------------------------------------------
@functools.partial(jax.jit, static_argnames=("num_heads",))
def decoder_forward(inputs, encoder_output, mask_src, mask_trg, params, *, num_heads):
    B, Lt, E = inputs.shape
    Ls = encoder_output.shape[1]
    H = params["w_emb"].shape[1]
    Dk = params["layers"][0]["wq1"].shape[1]
    Dv = params["layers"][0]["wv1"].shape[1]
    F = params["layers"][0]["c1w"].shape[2]
    NL = len(params["layers"])
    bf16 = jnp.bfloat16

    # lane/sublane padding (lane-dense stores + MXU fill); padded cols/rows are
    # zero everywhere and masked where they could leak into softmax / LayerNorm.
    Hp, Dkp, Fp = _rup(H, LANE), _rup(Dk, LANE), _rup(F, LANE)
    Lsp, Ltp = _rup(Ls, LANE), _rup(Lt, SUBLANE)

    def stack(name):
        return jnp.stack([lp[name] for lp in params["layers"]])

    def pad2(a, r, c):
        return _pad_axis(_pad_axis(a, -1, c), -2, r)

    # fused / padded bf16 matmul weights, stacked over layers
    wq1 = pad2(stack("wq1"), Hp, Dkp)
    wk1 = pad2(stack("wk1"), Hp, Dkp)
    wv1 = pad2(stack("wv1"), Hp, Dv)
    wqkv1 = jnp.concatenate([wq1, wk1, wv1], axis=-1).astype(bf16)  # [NL,Hp,2Dkp+Dv]
    wo1 = pad2(stack("wo1"), Dv, Hp).astype(bf16)                   # [NL,Dv,Hp]
    wq2 = pad2(stack("wq2"), Hp, Dkp).astype(bf16)
    wk2 = pad2(stack("wk2"), Hp, Dkp)
    wv2 = pad2(stack("wv2"), Hp, Dv)
    wkv2 = jnp.concatenate([wk2, wv2], axis=-1).astype(bf16)        # [NL,Hp,Dkp+Dv]
    wo2 = pad2(stack("wo2"), Dv, Hp).astype(bf16)

    # conv weights: [NL,3,Cin,Cout] -> pad -> [NL, 3*Cin_p, Cout_p] (deep-K form)
    c1w = pad2(stack("c1w"), Hp, Fp).reshape(NL, 3 * Hp, Fp).astype(bf16)
    c2w = pad2(stack("c2w"), Fp, Hp).reshape(NL, 3 * Fp, Hp).astype(bf16)
    c1b = _pad_axis(stack("c1b"), -1, Fp)
    c2b = _pad_axis(stack("c2b"), -1, Hp)

    g1, b1 = _pad_axis(stack("g1"), -1, Hp), _pad_axis(stack("b1"), -1, Hp)
    g2, b2 = _pad_axis(stack("g2"), -1, Hp), _pad_axis(stack("b2"), -1, Hp)
    g3, b3 = _pad_axis(stack("g3"), -1, Hp), _pad_axis(stack("b3"), -1, Hp)
    gf = _pad_axis(params["g_final"], -1, Hp)
    bf = _pad_axis(params["b_final"], -1, Hp)

    w_emb = _pad_axis(params["w_emb"], -1, Hp).astype(bf16)          # [E, Hp]
    timing = pad2(params["timing"][:Lt], Ltp, Hp)                    # [Ltp, Hp] f32

    inp = _pad_axis(inputs, -2, Ltp).astype(bf16)                    # [B, Ltp, E]
    enc = pad2(encoder_output, Lsp, Hp).astype(bf16)                 # [B, Lsp, Hp]
    # pad masks with 1.0 (= masked) so padded key positions are never attended
    trg_mask = _pad_axis(mask_trg.astype(jnp.float32), -1, Ltp, value=1.0)
    src_mask = _pad_axis(mask_src.astype(jnp.float32), -1, Lsp, value=1.0)

    # BlockSpec helpers: grid = (layer, batch); per-layer weights keep a constant
    # index across the inner batch axis (fetched once per layer).
    def per_layer(block_shape):
        nd = len(block_shape)
        return pl.BlockSpec(block_shape, lambda l, b, _n=nd: (l,) + (0,) * (_n - 1))

    def per_batch(block_shape):
        nd = len(block_shape)
        return pl.BlockSpec(block_shape, lambda l, b, _n=nd: (b,) + (0,) * (_n - 1))

    def shared(block_shape):
        nd = len(block_shape)
        return pl.BlockSpec(block_shape, lambda l, b, _n=nd: (0,) * _n)

    def batch_at_layer(block_shape, which_layer):
        # Index follows b only while l == which_layer; pinned to block 0 otherwise
        # so the pipeline skips DMAs / write-backs for all other layers.
        nd = len(block_shape)
        return pl.BlockSpec(
            block_shape,
            lambda l, b, _n=nd, _w=which_layer:
                (jnp.where(l == _w, b, 0),) + (0,) * (_n - 1))

    kernel = functools.partial(fused_decoder_kernel, num_heads=num_heads,
                               h_real=H, dk_real=Dk, dv_real=Dv)

    y, attn = pl.pallas_call(
        kernel,
        grid=(NL, B),
        in_specs=[
            batch_at_layer((1, Ltp, E), 0),       # inputs (consumed at layer 0)
            per_batch((1, Lsp, Hp)),              # encoder_output (bf16)
            per_batch((1, 1, Ltp)),               # target pad mask
            per_batch((1, 1, Lsp)),               # source pad mask
            shared((Ltp, Hp)),                    # timing signal
            shared((E, Hp)),                      # embedding projection
            per_layer((1, Hp, 2 * Dkp + Dv)),     # fused self-attn QKV
            per_layer((1, Dv, Hp)),               # self-attn out proj
            per_layer((1, Hp, Dkp)),              # cross-attn Q
            per_layer((1, Hp, Dkp + Dv)),         # fused cross-attn KV
            per_layer((1, Dv, Hp)),               # cross-attn out proj
            per_layer((1, 3 * Hp, Fp)), per_layer((1, 1, Fp)),     # conv1 W, b
            per_layer((1, 3 * Fp, Hp)), per_layer((1, 1, Hp)),     # conv2 W, b
            per_layer((1, 1, Hp)), per_layer((1, 1, Hp)),          # LN1 g, b
            per_layer((1, 1, Hp)), per_layer((1, 1, Hp)),          # LN2 g, b
            per_layer((1, 1, Hp)), per_layer((1, 1, Hp)),          # LN3 g, b
            shared((1, Hp)), shared((1, Hp)),                      # final LN g, b
        ],
        out_specs=[batch_at_layer((1, Ltp, Hp), NL - 1),
                   batch_at_layer((1, Ltp, Lsp), NL - 1)],
        out_shape=(jax.ShapeDtypeStruct((B, Ltp, Hp), jnp.float32),
                   jax.ShapeDtypeStruct((B, Ltp, Lsp), jnp.float32)),
        scratch_shapes=[
            pltpu.VMEM((B, Ltp, Hp), jnp.float32),    # layer-resident activation x
            pltpu.VMEM((Ltp, Dv), jnp.float32),       # per-head context buffer
            pltpu.VMEM((Ltp, 3 * Hp), bf16),          # shifted-concat conv1 input
            pltpu.VMEM((Ltp, 3 * Fp), bf16),          # shifted-concat conv2 input
        ],
        compiler_params=pltpu.CompilerParams(
            # layer axis carries the VMEM-resident activation; the batch axis must
            # stay sequential because the pinned-index output maps rely on grid order.
            dimension_semantics=("arbitrary", "arbitrary"),
            vmem_limit_bytes=_vmem_limit_bytes()),
    )(inp, enc, trg_mask, src_mask, timing, w_emb,
      wqkv1, wo1, wq2, wkv2, wo2,
      c1w, c1b, c2w, c2b, g1, b1, g2, b2, g3, b3, gf, bf)

    return y[:, :Lt, :H], attn[:, :Lt, :Ls]


# ----------------------------------------------------------------------------
# deterministic parameter / constant construction (same shapes as __init__)
# ----------------------------------------------------------------------------
def gen_timing_signal(length, channels, min_timescale=1.0, max_timescale=1.0e4):
    position = np.arange(length, dtype=np.float64)
    num_timescales = channels // 2
    log_timescale_increment = (math.log(float(max_timescale) / float(min_timescale))
                               / max(float(num_timescales) - 1, 1.0))
    inv_timescales = min_timescale * np.exp(
        np.arange(num_timescales, dtype=np.float64) * -log_timescale_increment)
    scaled_time = position[:, None] * inv_timescales[None, :]
    signal = np.concatenate([np.sin(scaled_time), np.cos(scaled_time)], axis=1)
    signal = np.pad(signal, [[0, 0], [0, channels % 2]], mode="constant")
    return jnp.asarray(signal, dtype=jnp.float32)    # [length, channels]


def init_params(key, *, embedding_size, hidden_size, num_layers, num_heads,
                total_key_depth, total_value_depth, filter_size, max_length):
    del num_heads
    keys = jax.random.split(key, 1 + num_layers)

    def lin(k, shape, scale=0.05):
        return jax.random.normal(k, shape, jnp.float32) * scale

    H, Dk, Dv, F = hidden_size, total_key_depth, total_value_depth, filter_size
    params = {
        "w_emb": lin(keys[0], (embedding_size, H)),       # Linear(E, H, bias=False)
        "timing": gen_timing_signal(max_length, H),
        "g_final": jnp.ones((1, H), jnp.float32),
        "b_final": jnp.zeros((1, H), jnp.float32),
        "layers": [],
    }
    for l in range(num_layers):
        lk = jax.random.split(keys[1 + l], 10)
        params["layers"].append({
            "wq1": lin(lk[0], (H, Dk)), "wk1": lin(lk[1], (H, Dk)),
            "wv1": lin(lk[2], (H, Dv)), "wo1": lin(lk[3], (Dv, H)),
            "wq2": lin(lk[4], (H, Dk)), "wk2": lin(lk[5], (H, Dk)),
            "wv2": lin(lk[6], (H, Dv)), "wo2": lin(lk[7], (Dv, H)),
            "c1w": lin(lk[8], (3, H, F)), "c1b": jnp.zeros((1, F), jnp.float32),
            "c2w": lin(lk[9], (3, F, H)), "c2b": jnp.zeros((1, H), jnp.float32),
            "g1": jnp.ones((1, H), jnp.float32), "b1": jnp.zeros((1, H), jnp.float32),
            "g2": jnp.ones((1, H), jnp.float32), "b2": jnp.zeros((1, H), jnp.float32),
            "g3": jnp.ones((1, H), jnp.float32), "b3": jnp.zeros((1, H), jnp.float32),
        })
    return params


if __name__ == "__main__":
    B, Lt, Ls = 2, 8, 16
    E, H, F = 32, 32, 64
    num_layers, num_heads = 2, 4
    Dk = Dv = 32
    max_length = 200

    key = jax.random.PRNGKey(0)
    kp, ki, ke = jax.random.split(key, 3)
    params = init_params(kp, embedding_size=E, hidden_size=H, num_layers=num_layers,
                         num_heads=num_heads, total_key_depth=Dk,
                         total_value_depth=Dv, filter_size=F, max_length=max_length)

    inputs = jax.random.normal(ki, (B, Lt, E), jnp.float32)
    encoder_output = jax.random.normal(ke, (B, Ls, H), jnp.float32)

    # padding masks (True = padded position), matching the PyTorch convention
    src_lens = jnp.array([Ls, Ls - 4])
    trg_lens = jnp.array([Lt, Lt - 2])
    mask_src = (jnp.arange(Ls)[None, None, :] >= src_lens[:, None, None])   # [B,1,Ls]
    mask_trg = (jnp.arange(Lt)[None, None, :] >= trg_lens[:, None, None])   # [B,1,Lt]

    y, attn = decoder_forward(inputs, encoder_output, mask_src, mask_trg,
                              params, num_heads=num_heads)
    y = jax.block_until_ready(y)
    attn = jax.block_until_ready(attn)
    assert y.shape == (B, Lt, H) and attn.shape == (B, Lt, Ls)
    assert bool(jnp.all(jnp.isfinite(y)))
    print("KERNEL_OK")
</pallas_src>

<mosaic_0001>
module attributes {stable_mosaic.version = 11 : i64} {
  func.func @fused_decoder_kernel(%arg0: i32, %arg1: i32, %arg2: memref<1x8x32xbf16, #tpu.memory_space<vmem>>, %arg3: memref<1x128x128xbf16, #tpu.memory_space<vmem>>, %arg4: memref<1x1x8xf32, #tpu.memory_space<vmem>>, %arg5: memref<1x1x128xf32, #tpu.memory_space<vmem>>, %arg6: memref<8x128xf32, #tpu.memory_space<vmem>>, %arg7: memref<32x128xbf16, #tpu.memory_space<vmem>>, %arg8: memref<1x128x288xbf16, #tpu.memory_space<vmem>>, %arg9: memref<1x32x128xbf16, #tpu.memory_space<vmem>>, %arg10: memref<1x128x128xbf16, #tpu.memory_space<vmem>>, %arg11: memref<1x128x160xbf16, #tpu.memory_space<vmem>>, %arg12: memref<1x32x128xbf16, #tpu.memory_space<vmem>>, %arg13: memref<1x384x128xbf16, #tpu.memory_space<vmem>>, %arg14: memref<1x1x128xf32, #tpu.memory_space<vmem>>, %arg15: memref<1x384x128xbf16, #tpu.memory_space<vmem>>, %arg16: memref<1x1x128xf32, #tpu.memory_space<vmem>>, %arg17: memref<1x1x128xf32, #tpu.memory_space<vmem>>, %arg18: memref<1x1x128xf32, #tpu.memory_space<vmem>>, %arg19: memref<1x1x128xf32, #tpu.memory_space<vmem>>, %arg20: memref<1x1x128xf32, #tpu.memory_space<vmem>>, %arg21: memref<1x1x128xf32, #tpu.memory_space<vmem>>, %arg22: memref<1x1x128xf32, #tpu.memory_space<vmem>>, %arg23: memref<1x128xf32, #tpu.memory_space<vmem>>, %arg24: memref<1x128xf32, #tpu.memory_space<vmem>>, %arg25: memref<1x8x128xf32, #tpu.memory_space<vmem>>, %arg26: memref<1x8x128xf32, #tpu.memory_space<vmem>>, %arg27: memref<2x8x128xf32, #tpu.memory_space<vmem>>, %arg28: memref<8x32xf32, #tpu.memory_space<vmem>>, %arg29: memref<8x384xbf16, #tpu.memory_space<vmem>>, %arg30: memref<8x384xbf16, #tpu.memory_space<vmem>>) attributes {dimension_semantics = [#tpu.dimension_semantics<arbitrary>, #tpu.dimension_semantics<arbitrary>], iteration_bounds = array<i64: 2, 2>, scalar_prefetch = 0 : i64, scratch_operands = 4 : i64, tpu.core_type = #tpu.core_type<tc>, window_params = [{transform_indices = @transform_0, window_bounds = array<i64: 1, 8, 32>}, {transform_indices = @transform_1, window_bounds = array<i64: 1, 128, 128>}, {transform_indices = @transform_2, window_bounds = array<i64: 1, 1, 8>}, {transform_indices = @transform_3, window_bounds = array<i64: 1, 1, 128>}, {pipeline_mode = #tpu.pipeline_mode<synchronous>, transform_indices = @transform_4, window_bounds = array<i64: 8, 128>}, {pipeline_mode = #tpu.pipeline_mode<synchronous>, transform_indices = @transform_5, window_bounds = array<i64: 32, 128>}, {transform_indices = @transform_6, window_bounds = array<i64: 1, 128, 288>}, {transform_indices = @transform_7, window_bounds = array<i64: 1, 32, 128>}, {transform_indices = @transform_8, window_bounds = array<i64: 1, 128, 128>}, {transform_indices = @transform_9, window_bounds = array<i64: 1, 128, 160>}, {transform_indices = @transform_10, window_bounds = array<i64: 1, 32, 128>}, {transform_indices = @transform_11, window_bounds = array<i64: 1, 384, 128>}, {transform_indices = @transform_12, window_bounds = array<i64: 1, 1, 128>}, {transform_indices = @transform_13, window_bounds = array<i64: 1, 384, 128>}, {transform_indices = @transform_14, window_bounds = array<i64: 1, 1, 128>}, {transform_indices = @transform_15, window_bounds = array<i64: 1, 1, 128>}, {transform_indices = @transform_16, window_bounds = array<i64: 1, 1, 128>}, {transform_indices = @transform_17, window_bounds = array<i64: 1, 1, 128>}, {transform_indices = @transform_18, window_bounds = array<i64: 1, 1, 128>}, {transform_indices = @transform_19, window_bounds = array<i64: 1, 1, 128>}, {transform_indices = @transform_20, window_bounds = array<i64: 1, 1, 128>}, {pipeline_mode = #tpu.pipeline_mode<synchronous>, transform_indices = @transform_21, window_bounds = array<i64: 1, 128>}, {pipeline_mode = #tpu.pipeline_mode<synchronous>, transform_indices = @transform_22, window_bounds = array<i64: 1, 128>}, {transform_indices = @transform_23, window_bounds = array<i64: 1, 8, 128>}, {transform_indices = @transform_24, window_bounds = array<i64: 1, 8, 128>}]} {
    %c0_i32 = arith.constant 0 : i32
    %0 = arith.cmpi eq, %arg0, %c0_i32 : i32
    %1 = arith.extui %0 : i1 to i32
    %c0_i32_0 = arith.constant 0 : i32
    %2 = arith.cmpi ne, %1, %c0_i32_0 : i32
    scf.if %2 {
      %c0_182 = arith.constant 0 : index
      %c0_183 = arith.constant 0 : index
      %c0_184 = arith.constant 0 : index
      %405 = vector.load %arg2[%c0_182, %c0_183, %c0_184] : memref<1x8x32xbf16, #tpu.memory_space<vmem>>, vector<1x8x32xbf16>
      %406 = vector.shape_cast %405 : vector<1x8x32xbf16> to vector<8x32xbf16>
      %c0_185 = arith.constant 0 : index
      %c0_186 = arith.constant 0 : index
      %407 = vector.load %arg7[%c0_185, %c0_186] : memref<32x128xbf16, #tpu.memory_space<vmem>>, vector<32x128xbf16>
      %cst_187 = arith.constant dense<0.000000e+00> : vector<8x128xf32>
      %408 = tpu.matmul %406, %407, %cst_187 {dimension_numbers = #tpu.dot_dimension_numbers<[1], [0], [0], [1], [0, 0, 1, 1], [], []>} : vector<8x32xbf16>, vector<32x128xbf16>, vector<8x128xf32> -> vector<8x128xf32>
      %c0_188 = arith.constant 0 : index
      %c0_189 = arith.constant 0 : index
      %409 = vector.load %arg6[%c0_188, %c0_189] : memref<8x128xf32, #tpu.memory_space<vmem>>, vector<8x128xf32>
      %410 = arith.addf %408, %409 : vector<8x128xf32>
      %411 = arith.index_cast %arg1 : i32 to index
      %c0_190 = arith.constant 0 : index
      %c0_191 = arith.constant 0 : index
      %412 = vector.load %arg27[%411, %c0_190, %c0_191] : memref<2x8x128xf32, #tpu.memory_space<vmem>>, vector<1x8x128xf32>
      %413 = vector.shape_cast %412 : vector<1x8x128xf32> to vector<8x128xf32>
      %414 = vector.shape_cast %410 : vector<8x128xf32> to vector<1x8x128xf32>
      tpu.vector_store %arg27[%411, %c0_190, %c0_191], %414 {strides = array<i32>} : memref<2x8x128xf32, #tpu.memory_space<vmem>>, vector<1x8x128xf32>,
    } else {
    }
    %3 = arith.index_cast %arg1 : i32 to index
    %c0 = arith.constant 0 : index
    %c0_1 = arith.constant 0 : index
    %4 = vector.load %arg27[%3, %c0, %c0_1] : memref<2x8x128xf32, #tpu.memory_space<vmem>>, vector<1x8x128xf32>
    %5 = vector.shape_cast %4 : vector<1x8x128xf32> to vector<8x128xf32>
    %c0_2 = arith.constant 0 : index
    %c0_3 = arith.constant 0 : index
    %c0_4 = arith.constant 0 : index
    %6 = vector.load %arg3[%c0_2, %c0_3, %c0_4] : memref<1x128x128xbf16, #tpu.memory_space<vmem>>, vector<1x128x128xbf16>
    %7 = vector.shape_cast %6 : vector<1x128x128xbf16> to vector<128x128xbf16>
    %8 = tpu.iota {dimensions = array<i32: 0>} : vector<8x8xi32>
    %9 = tpu.iota {dimensions = array<i32: 1>} : vector<8x8xi32>
    %10 = arith.cmpi sgt, %9, %8 : vector<8x8xi32>
    %c0_5 = arith.constant 0 : index
    %c0_6 = arith.constant 0 : index
    %c0_7 = arith.constant 0 : index
    %11 = vector.load %arg4[%c0_5, %c0_6, %c0_7] : memref<1x1x8xf32, #tpu.memory_space<vmem>>, vector<1x1x8xf32>
    %12 = vector.shape_cast %11 : vector<1x1x8xf32> to vector<1x8xf32>
    %cst = arith.constant 5.000000e-01 : f32
    %13 = vector.broadcast %cst : f32 to vector<1x8xf32>
    %14 = arith.cmpf ogt, %12, %13 : vector<1x8xf32>
    %15 = vector.broadcast %14 : vector<1x8xi1> to vector<8x8xi1>
    %16 = arith.ori %10, %15 : vector<8x8xi1>
    %c0_8 = arith.constant 0 : index
    %c0_9 = arith.constant 0 : index
    %c0_10 = arith.constant 0 : index
    %17 = vector.load %arg5[%c0_8, %c0_9, %c0_10] : memref<1x1x128xf32, #tpu.memory_space<vmem>>, vector<1x1x128xf32>
    %18 = vector.shape_cast %17 : vector<1x1x128xf32> to vector<1x128xf32>
    %cst_11 = arith.constant 5.000000e-01 : f32
    %19 = vector.broadcast %cst_11 : f32 to vector<1x128xf32>
    %20 = arith.cmpf ogt, %18, %19 : vector<1x128xf32>
    %c0_12 = arith.constant 0 : index
    %c0_13 = arith.constant 0 : index
    %c0_14 = arith.constant 0 : index
    %21 = vector.load %arg17[%c0_12, %c0_13, %c0_14] : memref<1x1x128xf32, #tpu.memory_space<vmem>>, vector<1x1x128xf32>
    %22 = vector.shape_cast %21 : vector<1x1x128xf32> to vector<1x128xf32>
    %c0_15 = arith.constant 0 : index
    %c0_16 = arith.constant 0 : index
    %c0_17 = arith.constant 0 : index
    %23 = vector.load %arg18[%c0_15, %c0_16, %c0_17] : memref<1x1x128xf32, #tpu.memory_space<vmem>>, vector<1x1x128xf32>
    %24 = vector.shape_cast %23 : vector<1x1x128xf32> to vector<1x128xf32>
    %cst_18 = arith.constant dense<0.000000e+00> : vector<8xf32>
    %25 = vector.multi_reduction <add>, %5, %cst_18 [1] : vector<8x128xf32> to vector<8xf32>
    %26 = vector.shape_cast %25 : vector<8xf32> to vector<8x1xf32>
    %cst_19 = arith.constant 3.125000e-02 : f32
    %27 = vector.broadcast %cst_19 : f32 to vector<8x1xf32>
    %28 = arith.mulf %26, %27 : vector<8x1xf32>
    %29 = arith.mulf %5, %5 : vector<8x128xf32>
    %cst_20 = arith.constant dense<0.000000e+00> : vector<8xf32>
    %30 = vector.multi_reduction <add>, %29, %cst_20 [1] : vector<8x128xf32> to vector<8xf32>
    %31 = vector.shape_cast %30 : vector<8xf32> to vector<8x1xf32>
    %cst_21 = arith.constant 3.200000e+01 : f32
    %32 = vector.broadcast %cst_21 : f32 to vector<8x1xf32>
    %33 = arith.mulf %32, %28 : vector<8x1xf32>
    %34 = arith.mulf %33, %28 : vector<8x1xf32>
    %35 = arith.subf %31, %34 : vector<8x1xf32>
    %cst_22 = arith.constant 0.000000e+00 : f32
    %36 = vector.broadcast %cst_22 : f32 to vector<8x1xf32>
    %37 = arith.maximumf %35, %36 : vector<8x1xf32>
    %cst_23 = arith.constant 0.0322580636 : f32
    %38 = vector.broadcast %cst_23 : f32 to vector<8x1xf32>
    %39 = arith.mulf %37, %38 : vector<8x1xf32>
    %40 = math.sqrt %39 : vector<8x1xf32>
    %cst_24 = arith.constant 9.99999997E-7 : f32
    %41 = vector.broadcast %cst_24 : f32 to vector<8x1xf32>
    %42 = arith.addf %40, %41 : vector<8x1xf32>
    %cst_25 = arith.constant 1.000000e+00 : f32
    %43 = vector.broadcast %cst_25 : f32 to vector<8x1xf32>
    %44 = arith.divf %43, %42 : vector<8x1xf32>
    %45 = vector.broadcast %28 : vector<8x1xf32> to vector<8x128xf32>
    %46 = arith.subf %5, %45 : vector<8x128xf32>
    %47 = vector.broadcast %22 : vector<1x128xf32> to vector<8x128xf32>
    %48 = arith.mulf %47, %46 : vector<8x128xf32>
    %49 = vector.broadcast %44 : vector<8x1xf32> to vector<8x128xf32>
    %50 = arith.mulf %48, %49 : vector<8x128xf32>
    %51 = vector.broadcast %24 : vector<1x128xf32> to vector<8x128xf32>
    %52 = arith.addf %50, %51 : vector<8x128xf32>
    %53 = arith.truncf %52 : vector<8x128xf32> to vector<8x128xbf16>
    %c0_26 = arith.constant 0 : index
    %c0_27 = arith.constant 0 : index
    %c0_28 = arith.constant 0 : index
    %54 = vector.load %arg8[%c0_26, %c0_27, %c0_28] : memref<1x128x288xbf16, #tpu.memory_space<vmem>>, vector<1x128x288xbf16>
    %55 = vector.shape_cast %54 : vector<1x128x288xbf16> to vector<128x288xbf16>
    %cst_29 = arith.constant dense<0.000000e+00> : vector<8x288xf32>
    %56 = tpu.matmul %53, %55, %cst_29 {dimension_numbers = #tpu.dot_dimension_numbers<[1], [0], [0], [1], [0, 0, 1, 1], [], []>} : vector<8x128xbf16>, vector<128x288xbf16>, vector<8x288xf32> -> vector<8x288xf32>
    %57 = vector.extract_strided_slice %56 {offsets = [0, 0], sizes = [8, 128], strides = [1, 1]} : vector<8x288xf32> to vector<8x128xf32>
    %58 = vector.extract_strided_slice %56 {offsets = [0, 128], sizes = [8, 128], strides = [1, 1]} : vector<8x288xf32> to vector<8x128xf32>
    %59 = vector.extract_strided_slice %56 {offsets = [0, 256], sizes = [8, 32], strides = [1, 1]} : vector<8x288xf32> to vector<8x32xf32>
    %c0_30 = arith.constant 0 : index
    %c0_31 = arith.constant 0 : index
    %c0_32 = arith.constant 0 : index
    %60 = vector.load %arg9[%c0_30, %c0_31, %c0_32] : memref<1x32x128xbf16, #tpu.memory_space<vmem>>, vector<1x32x128xbf16>
    %61 = vector.shape_cast %60 : vector<1x32x128xbf16> to vector<32x128xbf16>
    %62 = vector.extract_strided_slice %57 {offsets = [0, 0], sizes = [8, 8], strides = [1, 1]} : vector<8x128xf32> to vector<8x8xf32>
    %cst_33 = arith.constant 0.353553385 : f32
    %63 = vector.broadcast %cst_33 : f32 to vector<8x8xf32>
    %64 = arith.mulf %62, %63 : vector<8x8xf32>
    %65 = arith.truncf %64 : vector<8x8xf32> to vector<8x8xbf16>
    %66 = vector.extract_strided_slice %58 {offsets = [0, 0], sizes = [8, 8], strides = [1, 1]} : vector<8x128xf32> to vector<8x8xf32>
    %67 = arith.truncf %66 : vector<8x8xf32> to vector<8x8xbf16>
    %68 = vector.extract_strided_slice %59 {offsets = [0, 0], sizes = [8, 8], strides = [1, 1]} : vector<8x32xf32> to vector<8x8xf32>
    %69 = arith.truncf %68 : vector<8x8xf32> to vector<8x8xbf16>
    %cst_34 = arith.constant dense<0.000000e+00> : vector<8x8xf32>
    %70 = tpu.matmul %65, %67, %cst_34 {dimension_numbers = #tpu.dot_dimension_numbers<[1], [1], [0], [0], [0, 0, 1, 0], [], []>} : vector<8x8xbf16>, vector<8x8xbf16>, vector<8x8xf32> -> vector<8x8xf32>
    %cst_35 = arith.constant -9.99999984E+17 : f32
    %71 = vector.broadcast %cst_35 : f32 to vector<8x8xf32>
    %72 = arith.select %16, %71, %70 : vector<8x8xi1>, vector<8x8xf32>
    %cst_36 = arith.constant dense<0xFF800000> : vector<8xf32>
    %73 = vector.multi_reduction <maximumf>, %72, %cst_36 [1] : vector<8x8xf32> to vector<8xf32>
    %74 = vector.shape_cast %73 : vector<8xf32> to vector<8x1xf32>
    %75 = vector.broadcast %74 : vector<8x1xf32> to vector<8x8xf32>
    %76 = arith.subf %72, %75 : vector<8x8xf32>
    %77 = math.exp %76 : vector<8x8xf32>
    %cst_37 = arith.constant dense<0.000000e+00> : vector<8xf32>
    %78 = vector.multi_reduction <add>, %77, %cst_37 [1] : vector<8x8xf32> to vector<8xf32>
    %79 = vector.shape_cast %78 : vector<8xf32> to vector<8x1xf32>
    %80 = tpu.reciprocal %79 {approx = true} : vector<8x1xf32> -> vector<8x1xf32>
    %81 = vector.broadcast %80 : vector<8x1xf32> to vector<8x8xf32>
    %82 = arith.mulf %77, %81 : vector<8x8xf32>
    %83 = arith.truncf %82 : vector<8x8xf32> to vector<8x8xbf16>
    %cst_38 = arith.constant dense<0.000000e+00> : vector<8x8xf32>
    %84 = tpu.matmul %83, %69, %cst_38 {dimension_numbers = #tpu.dot_dimension_numbers<[1], [0], [0], [1], [0, 0, 1, 1], [], []>} : vector<8x8xbf16>, vector<8x8xbf16>, vector<8x8xf32> -> vector<8x8xf32>
    %c0_39 = arith.constant 0 : index
    %c0_40 = arith.constant 0 : index
    %85 = vector.load %arg28[%c0_39, %c0_40] : memref<8x32xf32, #tpu.memory_space<vmem>>, vector<8x8xf32>
    tpu.vector_store %arg28[%c0_39, %c0_40], %84 {strides = array<i32>} : memref<8x32xf32, #tpu.memory_space<vmem>>, vector<8x8xf32>,
    %86 = vector.extract_strided_slice %57 {offsets = [0, 8], sizes = [8, 8], strides = [1, 1]} : vector<8x128xf32> to vector<8x8xf32>
    %cst_41 = arith.constant 0.353553385 : f32
    %87 = vector.broadcast %cst_41 : f32 to vector<8x8xf32>
    %88 = arith.mulf %86, %87 : vector<8x8xf32>
    %89 = arith.truncf %88 : vector<8x8xf32> to vector<8x8xbf16>
    %90 = vector.extract_strided_slice %58 {offsets = [0, 8], sizes = [8, 8], strides = [1, 1]} : vector<8x128xf32> to vector<8x8xf32>
    %91 = arith.truncf %90 : vector<8x8xf32> to vector<8x8xbf16>
    %92 = vector.extract_strided_slice %59 {offsets = [0, 8], sizes = [8, 8], strides = [1, 1]} : vector<8x32xf32> to vector<8x8xf32>
    %93 = arith.truncf %92 : vector<8x8xf32> to vector<8x8xbf16>
    %cst_42 = arith.constant dense<0.000000e+00> : vector<8x8xf32>
    %94 = tpu.matmul %89, %91, %cst_42 {dimension_numbers = #tpu.dot_dimension_numbers<[1], [1], [0], [0], [0, 0, 1, 0], [], []>} : vector<8x8xbf16>, vector<8x8xbf16>, vector<8x8xf32> -> vector<8x8xf32>
    %cst_43 = arith.constant -9.99999984E+17 : f32
    %95 = vector.broadcast %cst_43 : f32 to vector<8x8xf32>
    %96 = arith.select %16, %95, %94 : vector<8x8xi1>, vector<8x8xf32>
    %cst_44 = arith.constant dense<0xFF800000> : vector<8xf32>
    %97 = vector.multi_reduction <maximumf>, %96, %cst_44 [1] : vector<8x8xf32> to vector<8xf32>
    %98 = vector.shape_cast %97 : vector<8xf32> to vector<8x1xf32>
    %99 = vector.broadcast %98 : vector<8x1xf32> to vector<8x8xf32>
    %100 = arith.subf %96, %99 : vector<8x8xf32>
    %101 = math.exp %100 : vector<8x8xf32>
    %cst_45 = arith.constant dense<0.000000e+00> : vector<8xf32>
    %102 = vector.multi_reduction <add>, %101, %cst_45 [1] : vector<8x8xf32> to vector<8xf32>
    %103 = vector.shape_cast %102 : vector<8xf32> to vector<8x1xf32>
    %104 = tpu.reciprocal %103 {approx = true} : vector<8x1xf32> -> vector<8x1xf32>
    %105 = vector.broadcast %104 : vector<8x1xf32> to vector<8x8xf32>
    %106 = arith.mulf %101, %105 : vector<8x8xf32>
    %107 = arith.truncf %106 : vector<8x8xf32> to vector<8x8xbf16>
    %cst_46 = arith.constant dense<0.000000e+00> : vector<8x8xf32>
    %108 = tpu.matmul %107, %93, %cst_46 {dimension_numbers = #tpu.dot_dimension_numbers<[1], [0], [0], [1], [0, 0, 1, 1], [], []>} : vector<8x8xbf16>, vector<8x8xbf16>, vector<8x8xf32> -> vector<8x8xf32>
    %c0_47 = arith.constant 0 : index
    %c8 = arith.constant 8 : index
    %109 = vector.load %arg28[%c0_47, %c8] : memref<8x32xf32, #tpu.memory_space<vmem>>, vector<8x8xf32>
    tpu.vector_store %arg28[%c0_47, %c8], %108 {strides = array<i32>} : memref<8x32xf32, #tpu.memory_space<vmem>>, vector<8x8xf32>,
    %110 = vector.extract_strided_slice %57 {offsets = [0, 16], sizes = [8, 8], strides = [1, 1]} : vector<8x128xf32> to vector<8x8xf32>
    %cst_48 = arith.constant 0.353553385 : f32
    %111 = vector.broadcast %cst_48 : f32 to vector<8x8xf32>
    %112 = arith.mulf %110, %111 : vector<8x8xf32>
    %113 = arith.truncf %112 : vector<8x8xf32> to vector<8x8xbf16>
    %114 = vector.extract_strided_slice %58 {offsets = [0, 16], sizes = [8, 8], strides = [1, 1]} : vector<8x128xf32> to vector<8x8xf32>
    %115 = arith.truncf %114 : vector<8x8xf32> to vector<8x8xbf16>
    %116 = vector.extract_strided_slice %59 {offsets = [0, 16], sizes = [8, 8], strides = [1, 1]} : vector<8x32xf32> to vector<8x8xf32>
    %117 = arith.truncf %116 : vector<8x8xf32> to vector<8x8xbf16>
    %cst_49 = arith.constant dense<0.000000e+00> : vector<8x8xf32>
    %118 = tpu.matmul %113, %115, %cst_49 {dimension_numbers = #tpu.dot_dimension_numbers<[1], [1], [0], [0], [0, 0, 1, 0], [], []>} : vector<8x8xbf16>, vector<8x8xbf16>, vector<8x8xf32> -> vector<8x8xf32>
    %cst_50 = arith.constant -9.99999984E+17 : f32
    %119 = vector.broadcast %cst_50 : f32 to vector<8x8xf32>
    %120 = arith.select %16, %119, %118 : vector<8x8xi1>, vector<8x8xf32>
    %cst_51 = arith.constant dense<0xFF800000> : vector<8xf32>
    %121 = vector.multi_reduction <maximumf>, %120, %cst_51 [1] : vector<8x8xf32> to vector<8xf32>
    %122 = vector.shape_cast %121 : vector<8xf32> to vector<8x1xf32>
    %123 = vector.broadcast %122 : vector<8x1xf32> to vector<8x8xf32>
    %124 = arith.subf %120, %123 : vector<8x8xf32>
    %125 = math.exp %124 : vector<8x8xf32>
    %cst_52 = arith.constant dense<0.000000e+00> : vector<8xf32>
    %126 = vector.multi_reduction <add>, %125, %cst_52 [1] : vector<8x8xf32> to vector<8xf32>
    %127 = vector.shape_cast %126 : vector<8xf32> to vector<8x1xf32>
    %128 = tpu.reciprocal %127 {approx = true} : vector<8x1xf32> -> vector<8x1xf32>
    %129 = vector.broadcast %128 : vector<8x1xf32> to vector<8x8xf32>
    %130 = arith.mulf %125, %129 : vector<8x8xf32>
    %131 = arith.truncf %130 : vector<8x8xf32> to vector<8x8xbf16>
    %cst_53 = arith.constant dense<0.000000e+00> : vector<8x8xf32>
    %132 = tpu.matmul %131, %117, %cst_53 {dimension_numbers = #tpu.dot_dimension_numbers<[1], [0], [0], [1], [0, 0, 1, 1], [], []>} : vector<8x8xbf16>, vector<8x8xbf16>, vector<8x8xf32> -> vector<8x8xf32>
    %c0_54 = arith.constant 0 : index
    %c16 = arith.constant 16 : index
    %133 = vector.load %arg28[%c0_54, %c16] : memref<8x32xf32, #tpu.memory_space<vmem>>, vector<8x8xf32>
    tpu.vector_store %arg28[%c0_54, %c16], %132 {strides = array<i32>} : memref<8x32xf32, #tpu.memory_space<vmem>>, vector<8x8xf32>,
    %134 = vector.extract_strided_slice %57 {offsets = [0, 24], sizes = [8, 8], strides = [1, 1]} : vector<8x128xf32> to vector<8x8xf32>
    %cst_55 = arith.constant 0.353553385 : f32
    %135 = vector.broadcast %cst_55 : f32 to vector<8x8xf32>
    %136 = arith.mulf %134, %135 : vector<8x8xf32>
    %137 = arith.truncf %136 : vector<8x8xf32> to vector<8x8xbf16>
    %138 = vector.extract_strided_slice %58 {offsets = [0, 24], sizes = [8, 8], strides = [1, 1]} : vector<8x128xf32> to vector<8x8xf32>
    %139 = arith.truncf %138 : vector<8x8xf32> to vector<8x8xbf16>
    %140 = vector.extract_strided_slice %59 {offsets = [0, 24], sizes = [8, 8], strides = [1, 1]} : vector<8x32xf32> to vector<8x8xf32>
    %141 = arith.truncf %140 : vector<8x8xf32> to vector<8x8xbf16>
    %cst_56 = arith.constant dense<0.000000e+00> : vector<8x8xf32>
    %142 = tpu.matmul %137, %139, %cst_56 {dimension_numbers = #tpu.dot_dimension_numbers<[1], [1], [0], [0], [0, 0, 1, 0], [], []>} : vector<8x8xbf16>, vector<8x8xbf16>, vector<8x8xf32> -> vector<8x8xf32>
    %cst_57 = arith.constant -9.99999984E+17 : f32
    %143 = vector.broadcast %cst_57 : f32 to vector<8x8xf32>
    %144 = arith.select %16, %143, %142 : vector<8x8xi1>, vector<8x8xf32>
    %cst_58 = arith.constant dense<0xFF800000> : vector<8xf32>
    %145 = vector.multi_reduction <maximumf>, %144, %cst_58 [1] : vector<8x8xf32> to vector<8xf32>
    %146 = vector.shape_cast %145 : vector<8xf32> to vector<8x1xf32>
    %147 = vector.broadcast %146 : vector<8x1xf32> to vector<8x8xf32>
    %148 = arith.subf %144, %147 : vector<8x8xf32>
    %149 = math.exp %148 : vector<8x8xf32>
    %cst_59 = arith.constant dense<0.000000e+00> : vector<8xf32>
    %150 = vector.multi_reduction <add>, %149, %cst_59 [1] : vector<8x8xf32> to vector<8xf32>
    %151 = vector.shape_cast %150 : vector<8xf32> to vector<8x1xf32>
    %152 = tpu.reciprocal %151 {approx = true} : vector<8x1xf32> -> vector<8x1xf32>
    %153 = vector.broadcast %152 : vector<8x1xf32> to vector<8x8xf32>
    %154 = arith.mulf %149, %153 : vector<8x8xf32>
    %155 = arith.truncf %154 : vector<8x8xf32> to vector<8x8xbf16>
    %cst_60 = arith.constant dense<0.000000e+00> : vector<8x8xf32>
    %156 = tpu.matmul %155, %141, %cst_60 {dimension_numbers = #tpu.dot_dimension_numbers<[1], [0], [0], [1], [0, 0, 1, 1], [], []>} : vector<8x8xbf16>, vector<8x8xbf16>, vector<8x8xf32> -> vector<8x8xf32>
    %c0_61 = arith.constant 0 : index
    %c24 = arith.constant 24 : index
    %157 = vector.load %arg28[%c0_61, %c24] : memref<8x32xf32, #tpu.memory_space<vmem>>, vector<8x8xf32>
    tpu.vector_store %arg28[%c0_61, %c24], %156 {strides = array<i32>} : memref<8x32xf32, #tpu.memory_space<vmem>>, vector<8x8xf32>,
    %c0_62 = arith.constant 0 : index
    %c0_63 = arith.constant 0 : index
    %158 = vector.load %arg28[%c0_62, %c0_63] : memref<8x32xf32, #tpu.memory_space<vmem>>, vector<8x32xf32>
    %159 = arith.truncf %158 : vector<8x32xf32> to vector<8x32xbf16>
    %cst_64 = arith.constant dense<0.000000e+00> : vector<8x128xf32>
    %160 = tpu.matmul %159, %61, %cst_64 {dimension_numbers = #tpu.dot_dimension_numbers<[1], [0], [0], [1], [0, 0, 1, 1], [], []>} : vector<8x32xbf16>, vector<32x128xbf16>, vector<8x128xf32> -> vector<8x128xf32>
    %161 = arith.addf %5, %160 : vector<8x128xf32>
    %c0_65 = arith.constant 0 : index
    %c0_66 = arith.constant 0 : index
    %c0_67 = arith.constant 0 : index
    %162 = vector.load %arg19[%c0_65, %c0_66, %c0_67] : memref<1x1x128xf32, #tpu.memory_space<vmem>>, vector<1x1x128xf32>
    %163 = vector.shape_cast %162 : vector<1x1x128xf32> to vector<1x128xf32>
    %c0_68 = arith.constant 0 : index
    %c0_69 = arith.constant 0 : index
    %c0_70 = arith.constant 0 : index
    %164 = vector.load %arg20[%c0_68, %c0_69, %c0_70] : memref<1x1x128xf32, #tpu.memory_space<vmem>>, vector<1x1x128xf32>
    %165 = vector.shape_cast %164 : vector<1x1x128xf32> to vector<1x128xf32>
    %cst_71 = arith.constant dense<0.000000e+00> : vector<8xf32>
    %166 = vector.multi_reduction <add>, %161, %cst_71 [1] : vector<8x128xf32> to vector<8xf32>
    %167 = vector.shape_cast %166 : vector<8xf32> to vector<8x1xf32>
    %cst_72 = arith.constant 3.125000e-02 : f32
    %168 = vector.broadcast %cst_72 : f32 to vector<8x1xf32>
    %169 = arith.mulf %167, %168 : vector<8x1xf32>
    %170 = arith.mulf %161, %161 : vector<8x128xf32>
    %cst_73 = arith.constant dense<0.000000e+00> : vector<8xf32>
    %171 = vector.multi_reduction <add>, %170, %cst_73 [1] : vector<8x128xf32> to vector<8xf32>
    %172 = vector.shape_cast %171 : vector<8xf32> to vector<8x1xf32>
    %cst_74 = arith.constant 3.200000e+01 : f32
    %173 = vector.broadcast %cst_74 : f32 to vector<8x1xf32>
    %174 = arith.mulf %173, %169 : vector<8x1xf32>
    %175 = arith.mulf %174, %169 : vector<8x1xf32>
    %176 = arith.subf %172, %175 : vector<8x1xf32>
    %cst_75 = arith.constant 0.000000e+00 : f32
    %177 = vector.broadcast %cst_75 : f32 to vector<8x1xf32>
    %178 = arith.maximumf %176, %177 : vector<8x1xf32>
    %cst_76 = arith.constant 0.0322580636 : f32
    %179 = vector.broadcast %cst_76 : f32 to vector<8x1xf32>
    %180 = arith.mulf %178, %179 : vector<8x1xf32>
    %181 = math.sqrt %180 : vector<8x1xf32>
    %cst_77 = arith.constant 9.99999997E-7 : f32
    %182 = vector.broadcast %cst_77 : f32 to vector<8x1xf32>
    %183 = arith.addf %181, %182 : vector<8x1xf32>
    %cst_78 = arith.constant 1.000000e+00 : f32
    %184 = vector.broadcast %cst_78 : f32 to vector<8x1xf32>
    %185 = arith.divf %184, %183 : vector<8x1xf32>
    %186 = vector.broadcast %169 : vector<8x1xf32> to vector<8x128xf32>
    %187 = arith.subf %161, %186 : vector<8x128xf32>
    %188 = vector.broadcast %163 : vector<1x128xf32> to vector<8x128xf32>
    %189 = arith.mulf %188, %187 : vector<8x128xf32>
    %190 = vector.broadcast %185 : vector<8x1xf32> to vector<8x128xf32>
    %191 = arith.mulf %189, %190 : vector<8x128xf32>
    %192 = vector.broadcast %165 : vector<1x128xf32> to vector<8x128xf32>
    %193 = arith.addf %191, %192 : vector<8x128xf32>
    %194 = arith.truncf %193 : vector<8x128xf32> to vector<8x128xbf16>
    %c0_79 = arith.constant 0 : index
    %c0_80 = arith.constant 0 : index
    %c0_81 = arith.constant 0 : index
    %195 = vector.load %arg10[%c0_79, %c0_80, %c0_81] : memref<1x128x128xbf16, #tpu.memory_space<vmem>>, vector<1x128x128xbf16>
    %196 = vector.shape_cast %195 : vector<1x128x128xbf16> to vector<128x128xbf16>
    %cst_82 = arith.constant dense<0.000000e+00> : vector<8x128xf32>
    %197 = tpu.matmul %194, %196, %cst_82 {dimension_numbers = #tpu.dot_dimension_numbers<[1], [0], [0], [1], [0, 0, 1, 1], [], []>} : vector<8x128xbf16>, vector<128x128xbf16>, vector<8x128xf32> -> vector<8x128xf32>
    %c0_83 = arith.constant 0 : index
    %c0_84 = arith.constant 0 : index
    %c0_85 = arith.constant 0 : index
    %198 = vector.load %arg11[%c0_83, %c0_84, %c0_85] : memref<1x128x160xbf16, #tpu.memory_space<vmem>>, vector<1x128x160xbf16>
    %199 = vector.shape_cast %198 : vector<1x128x160xbf16> to vector<128x160xbf16>
    %cst_86 = arith.constant dense<0.000000e+00> : vector<128x160xf32>
    %200 = tpu.matmul %7, %199, %cst_86 {dimension_numbers = #tpu.dot_dimension_numbers<[1], [0], [0], [1], [0, 0, 1, 1], [], []>} : vector<128x128xbf16>, vector<128x160xbf16>, vector<128x160xf32> -> vector<128x160xf32>
    %201 = vector.extract_strided_slice %200 {offsets = [0, 0], sizes = [128, 128], strides = [1, 1]} : vector<128x160xf32> to vector<128x128xf32>
    %202 = vector.extract_strided_slice %200 {offsets = [0, 128], sizes = [128, 32], strides = [1, 1]} : vector<128x160xf32> to vector<128x32xf32>
    %c0_87 = arith.constant 0 : index
    %c0_88 = arith.constant 0 : index
    %c0_89 = arith.constant 0 : index
    %203 = vector.load %arg12[%c0_87, %c0_88, %c0_89] : memref<1x32x128xbf16, #tpu.memory_space<vmem>>, vector<1x32x128xbf16>
    %204 = vector.shape_cast %203 : vector<1x32x128xbf16> to vector<32x128xbf16>
    %205 = vector.extract_strided_slice %197 {offsets = [0, 0], sizes = [8, 8], strides = [1, 1]} : vector<8x128xf32> to vector<8x8xf32>
    %cst_90 = arith.constant 0.353553385 : f32
    %206 = vector.broadcast %cst_90 : f32 to vector<8x8xf32>
    %207 = arith.mulf %205, %206 : vector<8x8xf32>
    %208 = arith.truncf %207 : vector<8x8xf32> to vector<8x8xbf16>
    %209 = vector.extract_strided_slice %201 {offsets = [0, 0], sizes = [128, 8], strides = [1, 1]} : vector<128x128xf32> to vector<128x8xf32>
    %210 = arith.truncf %209 : vector<128x8xf32> to vector<128x8xbf16>
    %211 = vector.extract_strided_slice %202 {offsets = [0, 0], sizes = [128, 8], strides = [1, 1]} : vector<128x32xf32> to vector<128x8xf32>
    %212 = arith.truncf %211 : vector<128x8xf32> to vector<128x8xbf16>
    %cst_91 = arith.constant dense<0.000000e+00> : vector<8x128xf32>
    %213 = tpu.matmul %208, %210, %cst_91 {dimension_numbers = #tpu.dot_dimension_numbers<[1], [1], [0], [0], [0, 0, 1, 0], [], []>} : vector<8x8xbf16>, vector<128x8xbf16>, vector<8x128xf32> -> vector<8x128xf32>
    %cst_92 = arith.constant -9.99999984E+17 : f32
    %214 = vector.shape_cast %20 : vector<1x128xi1> to vector<1x128xi1>
    %215 = vector.broadcast %214 : vector<1x128xi1> to vector<8x128xi1>
    %216 = vector.broadcast %cst_92 : f32 to vector<8x128xf32>
    %217 = arith.select %215, %216, %213 : vector<8x128xi1>, vector<8x128xf32>
    %cst_93 = arith.constant dense<0xFF800000> : vector<8xf32>
    %218 = vector.multi_reduction <maximumf>, %217, %cst_93 [1] : vector<8x128xf32> to vector<8xf32>
    %219 = vector.shape_cast %218 : vector<8xf32> to vector<8x1xf32>
    %220 = vector.broadcast %219 : vector<8x1xf32> to vector<8x128xf32>
    %221 = arith.subf %217, %220 : vector<8x128xf32>
    %222 = math.exp %221 : vector<8x128xf32>
    %cst_94 = arith.constant dense<0.000000e+00> : vector<8xf32>
    %223 = vector.multi_reduction <add>, %222, %cst_94 [1] : vector<8x128xf32> to vector<8xf32>
    %224 = vector.shape_cast %223 : vector<8xf32> to vector<8x1xf32>
    %225 = tpu.reciprocal %224 {approx = true} : vector<8x1xf32> -> vector<8x1xf32>
    %226 = vector.broadcast %225 : vector<8x1xf32> to vector<8x128xf32>
    %227 = arith.mulf %222, %226 : vector<8x128xf32>
    %228 = arith.truncf %227 : vector<8x128xf32> to vector<8x128xbf16>
    %cst_95 = arith.constant dense<0.000000e+00> : vector<8x8xf32>
    %229 = tpu.matmul %228, %212, %cst_95 {dimension_numbers = #tpu.dot_dimension_numbers<[1], [0], [0], [1], [0, 0, 1, 1], [], []>} : vector<8x128xbf16>, vector<128x8xbf16>, vector<8x8xf32> -> vector<8x8xf32>
    %c0_96 = arith.constant 0 : index
    %c0_97 = arith.constant 0 : index
    %230 = vector.load %arg28[%c0_96, %c0_97] : memref<8x32xf32, #tpu.memory_space<vmem>>, vector<8x8xf32>
    tpu.vector_store %arg28[%c0_96, %c0_97], %229 {strides = array<i32>} : memref<8x32xf32, #tpu.memory_space<vmem>>, vector<8x8xf32>,
    %231 = vector.extract_strided_slice %197 {offsets = [0, 8], sizes = [8, 8], strides = [1, 1]} : vector<8x128xf32> to vector<8x8xf32>
    %cst_98 = arith.constant 0.353553385 : f32
    %232 = vector.broadcast %cst_98 : f32 to vector<8x8xf32>
    %233 = arith.mulf %231, %232 : vector<8x8xf32>
    %234 = arith.truncf %233 : vector<8x8xf32> to vector<8x8xbf16>
    %235 = vector.extract_strided_slice %201 {offsets = [0, 8], sizes = [128, 8], strides = [1, 1]} : vector<128x128xf32> to vector<128x8xf32>
    %236 = arith.truncf %235 : vector<128x8xf32> to vector<128x8xbf16>
    %237 = vector.extract_strided_slice %202 {offsets = [0, 8], sizes = [128, 8], strides = [1, 1]} : vector<128x32xf32> to vector<128x8xf32>
    %238 = arith.truncf %237 : vector<128x8xf32> to vector<128x8xbf16>
    %cst_99 = arith.constant dense<0.000000e+00> : vector<8x128xf32>
    %239 = tpu.matmul %234, %236, %cst_99 {dimension_numbers = #tpu.dot_dimension_numbers<[1], [1], [0], [0], [0, 0, 1, 0], [], []>} : vector<8x8xbf16>, vector<128x8xbf16>, vector<8x128xf32> -> vector<8x128xf32>
    %cst_100 = arith.constant -9.99999984E+17 : f32
    %240 = vector.shape_cast %20 : vector<1x128xi1> to vector<1x128xi1>
    %241 = vector.broadcast %240 : vector<1x128xi1> to vector<8x128xi1>
    %242 = vector.broadcast %cst_100 : f32 to vector<8x128xf32>
    %243 = arith.select %241, %242, %239 : vector<8x128xi1>, vector<8x128xf32>
    %cst_101 = arith.constant dense<0xFF800000> : vector<8xf32>
    %244 = vector.multi_reduction <maximumf>, %243, %cst_101 [1] : vector<8x128xf32> to vector<8xf32>
    %245 = vector.shape_cast %244 : vector<8xf32> to vector<8x1xf32>
    %246 = vector.broadcast %245 : vector<8x1xf32> to vector<8x128xf32>
    %247 = arith.subf %243, %246 : vector<8x128xf32>
    %248 = math.exp %247 : vector<8x128xf32>
    %cst_102 = arith.constant dense<0.000000e+00> : vector<8xf32>
    %249 = vector.multi_reduction <add>, %248, %cst_102 [1] : vector<8x128xf32> to vector<8xf32>
    %250 = vector.shape_cast %249 : vector<8xf32> to vector<8x1xf32>
    %251 = tpu.reciprocal %250 {approx = true} : vector<8x1xf32> -> vector<8x1xf32>
    %252 = vector.broadcast %251 : vector<8x1xf32> to vector<8x128xf32>
    %253 = arith.mulf %248, %252 : vector<8x128xf32>
    %254 = arith.truncf %253 : vector<8x128xf32> to vector<8x128xbf16>
    %cst_103 = arith.constant dense<0.000000e+00> : vector<8x8xf32>
    %255 = tpu.matmul %254, %238, %cst_103 {dimension_numbers = #tpu.dot_dimension_numbers<[1], [0], [0], [1], [0, 0, 1, 1], [], []>} : vector<8x128xbf16>, vector<128x8xbf16>, vector<8x8xf32> -> vector<8x8xf32>
    %c0_104 = arith.constant 0 : index
    %c8_105 = arith.constant 8 : index
    %256 = vector.load %arg28[%c0_104, %c8_105] : memref<8x32xf32, #tpu.memory_space<vmem>>, vector<8x8xf32>
    tpu.vector_store %arg28[%c0_104, %c8_105], %255 {strides = array<i32>} : memref<8x32xf32, #tpu.memory_space<vmem>>, vector<8x8xf32>,
    %257 = vector.extract_strided_slice %197 {offsets = [0, 16], sizes = [8, 8], strides = [1, 1]} : vector<8x128xf32> to vector<8x8xf32>
    %cst_106 = arith.constant 0.353553385 : f32
    %258 = vector.broadcast %cst_106 : f32 to vector<8x8xf32>
    %259 = arith.mulf %257, %258 : vector<8x8xf32>
    %260 = arith.truncf %259 : vector<8x8xf32> to vector<8x8xbf16>
    %261 = vector.extract_strided_slice %201 {offsets = [0, 16], sizes = [128, 8], strides = [1, 1]} : vector<128x128xf32> to vector<128x8xf32>
    %262 = arith.truncf %261 : vector<128x8xf32> to vector<128x8xbf16>
    %263 = vector.extract_strided_slice %202 {offsets = [0, 16], sizes = [128, 8], strides = [1, 1]} : vector<128x32xf32> to vector<128x8xf32>
    %264 = arith.truncf %263 : vector<128x8xf32> to vector<128x8xbf16>
    %cst_107 = arith.constant dense<0.000000e+00> : vector<8x128xf32>
    %265 = tpu.matmul %260, %262, %cst_107 {dimension_numbers = #tpu.dot_dimension_numbers<[1], [1], [0], [0], [0, 0, 1, 0], [], []>} : vector<8x8xbf16>, vector<128x8xbf16>, vector<8x128xf32> -> vector<8x128xf32>
    %cst_108 = arith.constant -9.99999984E+17 : f32
    %266 = vector.shape_cast %20 : vector<1x128xi1> to vector<1x128xi1>
    %267 = vector.broadcast %266 : vector<1x128xi1> to vector<8x128xi1>
    %268 = vector.broadcast %cst_108 : f32 to vector<8x128xf32>
    %269 = arith.select %267, %268, %265 : vector<8x128xi1>, vector<8x128xf32>
    %cst_109 = arith.constant dense<0xFF800000> : vector<8xf32>
    %270 = vector.multi_reduction <maximumf>, %269, %cst_109 [1] : vector<8x128xf32> to vector<8xf32>
    %271 = vector.shape_cast %270 : vector<8xf32> to vector<8x1xf32>
    %272 = vector.broadcast %271 : vector<8x1xf32> to vector<8x128xf32>
    %273 = arith.subf %269, %272 : vector<8x128xf32>
    %274 = math.exp %273 : vector<8x128xf32>
    %cst_110 = arith.constant dense<0.000000e+00> : vector<8xf32>
    %275 = vector.multi_reduction <add>, %274, %cst_110 [1] : vector<8x128xf32> to vector<8xf32>
    %276 = vector.shape_cast %275 : vector<8xf32> to vector<8x1xf32>
    %277 = tpu.reciprocal %276 {approx = true} : vector<8x1xf32> -> vector<8x1xf32>
    %278 = vector.broadcast %277 : vector<8x1xf32> to vector<8x128xf32>
    %279 = arith.mulf %274, %278 : vector<8x128xf32>
    %280 = arith.truncf %279 : vector<8x128xf32> to vector<8x128xbf16>
    %cst_111 = arith.constant dense<0.000000e+00> : vector<8x8xf32>
    %281 = tpu.matmul %280, %264, %cst_111 {dimension_numbers = #tpu.dot_dimension_numbers<[1], [0], [0], [1], [0, 0, 1, 1], [], []>} : vector<8x128xbf16>, vector<128x8xbf16>, vector<8x8xf32> -> vector<8x8xf32>
    %c0_112 = arith.constant 0 : index
    %c16_113 = arith.constant 16 : index
    %282 = vector.load %arg28[%c0_112, %c16_113] : memref<8x32xf32, #tpu.memory_space<vmem>>, vector<8x8xf32>
    tpu.vector_store %arg28[%c0_112, %c16_113], %281 {strides = array<i32>} : memref<8x32xf32, #tpu.memory_space<vmem>>, vector<8x8xf32>,
    %283 = vector.extract_strided_slice %197 {offsets = [0, 24], sizes = [8, 8], strides = [1, 1]} : vector<8x128xf32> to vector<8x8xf32>
    %cst_114 = arith.constant 0.353553385 : f32
    %284 = vector.broadcast %cst_114 : f32 to vector<8x8xf32>
    %285 = arith.mulf %283, %284 : vector<8x8xf32>
    %286 = arith.truncf %285 : vector<8x8xf32> to vector<8x8xbf16>
    %287 = vector.extract_strided_slice %201 {offsets = [0, 24], sizes = [128, 8], strides = [1, 1]} : vector<128x128xf32> to vector<128x8xf32>
    %288 = arith.truncf %287 : vector<128x8xf32> to vector<128x8xbf16>
    %289 = vector.extract_strided_slice %202 {offsets = [0, 24], sizes = [128, 8], strides = [1, 1]} : vector<128x32xf32> to vector<128x8xf32>
    %290 = arith.truncf %289 : vector<128x8xf32> to vector<128x8xbf16>
    %cst_115 = arith.constant dense<0.000000e+00> : vector<8x128xf32>
    %291 = tpu.matmul %286, %288, %cst_115 {dimension_numbers = #tpu.dot_dimension_numbers<[1], [1], [0], [0], [0, 0, 1, 0], [], []>} : vector<8x8xbf16>, vector<128x8xbf16>, vector<8x128xf32> -> vector<8x128xf32>
    %cst_116 = arith.constant -9.99999984E+17 : f32
    %292 = vector.shape_cast %20 : vector<1x128xi1> to vector<1x128xi1>
    %293 = vector.broadcast %292 : vector<1x128xi1> to vector<8x128xi1>
    %294 = vector.broadcast %cst_116 : f32 to vector<8x128xf32>
    %295 = arith.select %293, %294, %291 : vector<8x128xi1>, vector<8x128xf32>
    %cst_117 = arith.constant dense<0xFF800000> : vector<8xf32>
    %296 = vector.multi_reduction <maximumf>, %295, %cst_117 [1] : vector<8x128xf32> to vector<8xf32>
    %297 = vector.shape_cast %296 : vector<8xf32> to vector<8x1xf32>
    %298 = vector.broadcast %297 : vector<8x1xf32> to vector<8x128xf32>
    %299 = arith.subf %295, %298 : vector<8x128xf32>
    %300 = math.exp %299 : vector<8x128xf32>
    %cst_118 = arith.constant dense<0.000000e+00> : vector<8xf32>
    %301 = vector.multi_reduction <add>, %300, %cst_118 [1] : vector<8x128xf32> to vector<8xf32>
    %302 = vector.shape_cast %301 : vector<8xf32> to vector<8x1xf32>
    %303 = tpu.reciprocal %302 {approx = true} : vector<8x1xf32> -> vector<8x1xf32>
    %304 = vector.broadcast %303 : vector<8x1xf32> to vector<8x128xf32>
    %305 = arith.mulf %300, %304 : vector<8x128xf32>
    %306 = arith.truncf %305 : vector<8x128xf32> to vector<8x128xbf16>
    %cst_119 = arith.constant dense<0.000000e+00> : vector<8x8xf32>
    %307 = tpu.matmul %306, %290, %cst_119 {dimension_numbers = #tpu.dot_dimension_numbers<[1], [0], [0], [1], [0, 0, 1, 1], [], []>} : vector<8x128xbf16>, vector<128x8xbf16>, vector<8x8xf32> -> vector<8x8xf32>
    %c0_120 = arith.constant 0 : index
    %c24_121 = arith.constant 24 : index
    %308 = vector.load %arg28[%c0_120, %c24_121] : memref<8x32xf32, #tpu.memory_space<vmem>>, vector<8x8xf32>
    tpu.vector_store %arg28[%c0_120, %c24_121], %307 {strides = array<i32>} : memref<8x32xf32, #tpu.memory_space<vmem>>, vector<8x8xf32>,
    %c0_122 = arith.constant 0 : index
    %c0_123 = arith.constant 0 : index
    %309 = vector.load %arg28[%c0_122, %c0_123] : memref<8x32xf32, #tpu.memory_space<vmem>>, vector<8x32xf32>
    %310 = arith.truncf %309 : vector<8x32xf32> to vector<8x32xbf16>
    %cst_124 = arith.constant dense<0.000000e+00> : vector<8x128xf32>
    %311 = tpu.matmul %310, %204, %cst_124 {dimension_numbers = #tpu.dot_dimension_numbers<[1], [0], [0], [1], [0, 0, 1, 1], [], []>} : vector<8x32xbf16>, vector<32x128xbf16>, vector<8x128xf32> -> vector<8x128xf32>
    %312 = arith.addf %161, %311 : vector<8x128xf32>
    %c0_125 = arith.constant 0 : index
    %c0_126 = arith.constant 0 : index
    %c0_127 = arith.constant 0 : index
    %313 = vector.load %arg21[%c0_125, %c0_126, %c0_127] : memref<1x1x128xf32, #tpu.memory_space<vmem>>, vector<1x1x128xf32>
    %314 = vector.shape_cast %313 : vector<1x1x128xf32> to vector<1x128xf32>
    %c0_128 = arith.constant 0 : index
    %c0_129 = arith.constant 0 : index
    %c0_130 = arith.constant 0 : index
    %315 = vector.load %arg22[%c0_128, %c0_129, %c0_130] : memref<1x1x128xf32, #tpu.memory_space<vmem>>, vector<1x1x128xf32>
    %316 = vector.shape_cast %315 : vector<1x1x128xf32> to vector<1x128xf32>
    %cst_131 = arith.constant dense<0.000000e+00> : vector<8xf32>
    %317 = vector.multi_reduction <add>, %312, %cst_131 [1] : vector<8x128xf32> to vector<8xf32>
    %318 = vector.shape_cast %317 : vector<8xf32> to vector<8x1xf32>
    %cst_132 = arith.constant 3.125000e-02 : f32
    %319 = vector.broadcast %cst_132 : f32 to vector<8x1xf32>
    %320 = arith.mulf %318, %319 : vector<8x1xf32>
    %321 = arith.mulf %312, %312 : vector<8x128xf32>
    %cst_133 = arith.constant dense<0.000000e+00> : vector<8xf32>
    %322 = vector.multi_reduction <add>, %321, %cst_133 [1] : vector<8x128xf32> to vector<8xf32>
    %323 = vector.shape_cast %322 : vector<8xf32> to vector<8x1xf32>
    %cst_134 = arith.constant 3.200000e+01 : f32
    %324 = vector.broadcast %cst_134 : f32 to vector<8x1xf32>
    %325 = arith.mulf %324, %320 : vector<8x1xf32>
    %326 = arith.mulf %325, %320 : vector<8x1xf32>
    %327 = arith.subf %323, %326 : vector<8x1xf32>
    %cst_135 = arith.constant 0.000000e+00 : f32
    %328 = vector.broadcast %cst_135 : f32 to vector<8x1xf32>
    %329 = arith.maximumf %327, %328 : vector<8x1xf32>
    %cst_136 = arith.constant 0.0322580636 : f32
    %330 = vector.broadcast %cst_136 : f32 to vector<8x1xf32>
    %331 = arith.mulf %329, %330 : vector<8x1xf32>
    %332 = math.sqrt %331 : vector<8x1xf32>
    %cst_137 = arith.constant 9.99999997E-7 : f32
    %333 = vector.broadcast %cst_137 : f32 to vector<8x1xf32>
    %334 = arith.addf %332, %333 : vector<8x1xf32>
    %cst_138 = arith.constant 1.000000e+00 : f32
    %335 = vector.broadcast %cst_138 : f32 to vector<8x1xf32>
    %336 = arith.divf %335, %334 : vector<8x1xf32>
    %337 = vector.broadcast %320 : vector<8x1xf32> to vector<8x128xf32>
    %338 = arith.subf %312, %337 : vector<8x128xf32>
    %339 = vector.broadcast %314 : vector<1x128xf32> to vector<8x128xf32>
    %340 = arith.mulf %339, %338 : vector<8x128xf32>
    %341 = vector.broadcast %336 : vector<8x1xf32> to vector<8x128xf32>
    %342 = arith.mulf %340, %341 : vector<8x128xf32>
    %343 = vector.broadcast %316 : vector<1x128xf32> to vector<8x128xf32>
    %344 = arith.addf %342, %343 : vector<8x128xf32>
    %c0_139 = arith.constant 0 : index
    %c0_140 = arith.constant 0 : index
    %c0_141 = arith.constant 0 : index
    %345 = vector.load %arg13[%c0_139, %c0_140, %c0_141] : memref<1x384x128xbf16, #tpu.memory_space<vmem>>, vector<1x384x128xbf16>
    %346 = vector.shape_cast %345 : vector<1x384x128xbf16> to vector<384x128xbf16>
    %c0_142 = arith.constant 0 : index
    %c0_143 = arith.constant 0 : index
    %c0_144 = arith.constant 0 : index
    %347 = vector.load %arg14[%c0_142, %c0_143, %c0_144] : memref<1x1x128xf32, #tpu.memory_space<vmem>>, vector<1x1x128xf32>
    %348 = vector.shape_cast %347 : vector<1x1x128xf32> to vector<1x128xf32>
    %349 = tpu.iota {dimensions = array<i32: 0>} : vector<8x128xi32>
    %350 = arith.truncf %344 : vector<8x128xf32> to vector<8x128xbf16>
    %c0_145 = arith.constant 0 : index
    %c256 = arith.constant 256 : index
    %351 = vector.load %arg29[%c0_145, %c256] : memref<8x384xbf16, #tpu.memory_space<vmem>>, vector<8x128xbf16>
    tpu.vector_store %arg29[%c0_145, %c256], %350 {strides = array<i32>} : memref<8x384xbf16, #tpu.memory_space<vmem>>, vector<8x128xbf16>,
    %c1_i32 = arith.constant 1 : i32
    %352 = vector.broadcast %c1_i32 : i32 to vector<8x128xi32>
    %353 = arith.cmpi slt, %349, %352 : vector<8x128xi32>
    %c1_i32_146 = arith.constant 1 : i32
    %354 = tpu.dynamic_rotate %344 by %c1_i32_146 dim 0 : vector<8x128xf32>, i32 -> vector<8x128xf32>
    %cst_147 = arith.constant 0.000000e+00 : f32
    %355 = vector.broadcast %cst_147 : f32 to vector<8x128xf32>
    %356 = arith.select %353, %355, %354 : vector<8x128xi1>, vector<8x128xf32>
    %357 = arith.truncf %356 : vector<8x128xf32> to vector<8x128xbf16>
    %c0_148 = arith.constant 0 : index
    %c128 = arith.constant 128 : index
    %358 = vector.load %arg29[%c0_148, %c128] : memref<8x384xbf16, #tpu.memory_space<vmem>>, vector<8x128xbf16>
    tpu.vector_store %arg29[%c0_148, %c128], %357 {strides = array<i32>} : memref<8x384xbf16, #tpu.memory_space<vmem>>, vector<8x128xbf16>,
    %c2_i32 = arith.constant 2 : i32
    %359 = vector.broadcast %c2_i32 : i32 to vector<8x128xi32>
    %360 = arith.cmpi slt, %349, %359 : vector<8x128xi32>
    %c2_i32_149 = arith.constant 2 : i32
    %361 = tpu.dynamic_rotate %344 by %c2_i32_149 dim 0 : vector<8x128xf32>, i32 -> vector<8x128xf32>
    %cst_150 = arith.constant 0.000000e+00 : f32
    %362 = vector.broadcast %cst_150 : f32 to vector<8x128xf32>
    %363 = arith.select %360, %362, %361 : vector<8x128xi1>, vector<8x128xf32>
    %364 = arith.truncf %363 : vector<8x128xf32> to vector<8x128xbf16>
    %c0_151 = arith.constant 0 : index
    %c0_152 = arith.constant 0 : index
    %365 = vector.load %arg29[%c0_151, %c0_152] : memref<8x384xbf16, #tpu.memory_space<vmem>>, vector<8x128xbf16>
    tpu.vector_store %arg29[%c0_151, %c0_152], %364 {strides = array<i32>} : memref<8x384xbf16, #tpu.memory_space<vmem>>, vector<8x128xbf16>,
    %c0_153 = arith.constant 0 : index
    %c0_154 = arith.constant 0 : index
    %366 = vector.load %arg29[%c0_153, %c0_154] : memref<8x384xbf16, #tpu.memory_space<vmem>>, vector<8x384xbf16>
    %cst_155 = arith.constant dense<0.000000e+00> : vector<8x128xf32>
    %367 = tpu.matmul %366, %346, %cst_155 {dimension_numbers = #tpu.dot_dimension_numbers<[1], [0], [0], [1], [0, 0, 1, 1], [], []>} : vector<8x384xbf16>, vector<384x128xbf16>, vector<8x128xf32> -> vector<8x128xf32>
    %368 = vector.broadcast %348 : vector<1x128xf32> to vector<8x128xf32>
    %369 = arith.addf %367, %368 : vector<8x128xf32>
    %cst_156 = arith.constant 0.000000e+00 : f32
    %370 = vector.broadcast %cst_156 : f32 to vector<8x128xf32>
    %371 = arith.maximumf %369, %370 : vector<8x128xf32>
    %c0_157 = arith.constant 0 : index
    %c0_158 = arith.constant 0 : index
    %c0_159 = arith.constant 0 : index
    %372 = vector.load %arg15[%c0_157, %c0_158, %c0_159] : memref<1x384x128xbf16, #tpu.memory_space<vmem>>, vector<1x384x128xbf16>
    %373 = vector.shape_cast %372 : vector<1x384x128xbf16> to vector<384x128xbf16>
    %c0_160 = arith.constant 0 : index
    %c0_161 = arith.constant 0 : index
    %c0_162 = arith.constant 0 : index
    %374 = vector.load %arg16[%c0_160, %c0_161, %c0_162] : memref<1x1x128xf32, #tpu.memory_space<vmem>>, vector<1x1x128xf32>
    %375 = vector.shape_cast %374 : vector<1x1x128xf32> to vector<1x128xf32>
    %376 = tpu.iota {dimensions = array<i32: 0>} : vector<8x128xi32>
    %377 = arith.truncf %371 : vector<8x128xf32> to vector<8x128xbf16>
    %c0_163 = arith.constant 0 : index
    %c256_164 = arith.constant 256 : index
    %378 = vector.load %arg30[%c0_163, %c256_164] : memref<8x384xbf16, #tpu.memory_space<vmem>>, vector<8x128xbf16>
    tpu.vector_store %arg30[%c0_163, %c256_164], %377 {strides = array<i32>} : memref<8x384xbf16, #tpu.memory_space<vmem>>, vector<8x128xbf16>,
    %c1_i32_165 = arith.constant 1 : i32
    %379 = vector.broadcast %c1_i32_165 : i32 to vector<8x128xi32>
    %380 = arith.cmpi slt, %376, %379 : vector<8x128xi32>
    %c1_i32_166 = arith.constant 1 : i32
    %381 = tpu.dynamic_rotate %371 by %c1_i32_166 dim 0 : vector<8x128xf32>, i32 -> vector<8x128xf32>
    %cst_167 = arith.constant 0.000000e+00 : f32
    %382 = vector.broadcast %cst_167 : f32 to vector<8x128xf32>
    %383 = arith.select %380, %382, %381 : vector<8x128xi1>, vector<8x128xf32>
    %384 = arith.truncf %383 : vector<8x128xf32> to vector<8x128xbf16>
    %c0_168 = arith.constant 0 : index
    %c128_169 = arith.constant 128 : index
    %385 = vector.load %arg30[%c0_168, %c128_169] : memref<8x384xbf16, #tpu.memory_space<vmem>>, vector<8x128xbf16>
    tpu.vector_store %arg30[%c0_168, %c128_169], %384 {strides = array<i32>} : memref<8x384xbf16, #tpu.memory_space<vmem>>, vector<8x128xbf16>,
    %c2_i32_170 = arith.constant 2 : i32
    %386 = vector.broadcast %c2_i32_170 : i32 to vector<8x128xi32>
    %387 = arith.cmpi slt, %376, %386 : vector<8x128xi32>
    %c2_i32_171 = arith.constant 2 : i32
    %388 = tpu.dynamic_rotate %371 by %c2_i32_171 dim 0 : vector<8x128xf32>, i32 -> vector<8x128xf32>
    %cst_172 = arith.constant 0.000000e+00 : f32
    %389 = vector.broadcast %cst_172 : f32 to vector<8x128xf32>
    %390 = arith.select %387, %389, %388 : vector<8x128xi1>, vector<8x128xf32>
    %391 = arith.truncf %390 : vector<8x128xf32> to vector<8x128xbf16>
    %c0_173 = arith.constant 0 : index
    %c0_174 = arith.constant 0 : index
    %392 = vector.load %arg30[%c0_173, %c0_174] : memref<8x384xbf16, #tpu.memory_space<vmem>>, vector<8x128xbf16>
    tpu.vector_store %arg30[%c0_173, %c0_174], %391 {strides = array<i32>} : memref<8x384xbf16, #tpu.memory_space<vmem>>, vector<8x128xbf16>,
    %c0_175 = arith.constant 0 : index
    %c0_176 = arith.constant 0 : index
    %393 = vector.load %arg30[%c0_175, %c0_176] : memref<8x384xbf16, #tpu.memory_space<vmem>>, vector<8x384xbf16>
    %cst_177 = arith.constant dense<0.000000e+00> : vector<8x128xf32>
    %394 = tpu.matmul %393, %373, %cst_177 {dimension_numbers = #tpu.dot_dimension_numbers<[1], [0], [0], [1], [0, 0, 1, 1], [], []>} : vector<8x384xbf16>, vector<384x128xbf16>, vector<8x128xf32> -> vector<8x128xf32>
    %395 = vector.broadcast %375 : vector<1x128xf32> to vector<8x128xf32>
    %396 = arith.addf %394, %395 : vector<8x128xf32>
    %397 = arith.addf %312, %396 : vector<8x128xf32>
    %398 = arith.index_cast %arg1 : i32 to index
    %c0_178 = arith.constant 0 : index
    %c0_179 = arith.constant 0 : index
    %399 = vector.load %arg27[%398, %c0_178, %c0_179] : memref<2x8x128xf32, #tpu.memory_space<vmem>>, vector<1x8x128xf32>
    %400 = vector.shape_cast %399 : vector<1x8x128xf32> to vector<8x128xf32>
    %401 = vector.shape_cast %397 : vector<8x128xf32> to vector<1x8x128xf32>
    tpu.vector_store %arg27[%398, %c0_178, %c0_179], %401 {strides = array<i32>} : memref<2x8x128xf32, #tpu.memory_space<vmem>>, vector<1x8x128xf32>,
    %c1_i32_180 = arith.constant 1 : i32
    %402 = arith.cmpi eq, %arg0, %c1_i32_180 : i32
    %403 = arith.extui %402 : i1 to i32
    %c0_i32_181 = arith.constant 0 : i32
    %404 = arith.cmpi ne, %403, %c0_i32_181 : i32
    scf.if %404 {
      %c0_182 = arith.constant 0 : index
      %c0_183 = arith.constant 0 : index
      %405 = vector.load %arg23[%c0_182, %c0_183] : memref<1x128xf32, #tpu.memory_space<vmem>>, vector<1x128xf32>
      %c0_184 = arith.constant 0 : index
      %c0_185 = arith.constant 0 : index
      %406 = vector.load %arg24[%c0_184, %c0_185] : memref<1x128xf32, #tpu.memory_space<vmem>>, vector<1x128xf32>
      %cst_186 = arith.constant dense<0.000000e+00> : vector<8xf32>
      %407 = vector.multi_reduction <add>, %397, %cst_186 [1] : vector<8x128xf32> to vector<8xf32>
      %408 = vector.shape_cast %407 : vector<8xf32> to vector<8x1xf32>
      %cst_187 = arith.constant 3.125000e-02 : f32
      %409 = vector.broadcast %cst_187 : f32 to vector<8x1xf32>
      %410 = arith.mulf %408, %409 : vector<8x1xf32>
      %411 = arith.mulf %397, %397 : vector<8x128xf32>
      %cst_188 = arith.constant dense<0.000000e+00> : vector<8xf32>
      %412 = vector.multi_reduction <add>, %411, %cst_188 [1] : vector<8x128xf32> to vector<8xf32>
      %413 = vector.shape_cast %412 : vector<8xf32> to vector<8x1xf32>
      %cst_189 = arith.constant 3.200000e+01 : f32
      %414 = vector.broadcast %cst_189 : f32 to vector<8x1xf32>
      %415 = arith.mulf %414, %410 : vector<8x1xf32>
      %416 = arith.mulf %415, %410 : vector<8x1xf32>
      %417 = arith.subf %413, %416 : vector<8x1xf32>
      %cst_190 = arith.constant 0.000000e+00 : f32
      %418 = vector.broadcast %cst_190 : f32 to vector<8x1xf32>
      %419 = arith.maximumf %417, %418 : vector<8x1xf32>
      %cst_191 = arith.constant 0.0322580636 : f32
      %420 = vector.broadcast %cst_191 : f32 to vector<8x1xf32>
      %421 = arith.mulf %419, %420 : vector<8x1xf32>
      %422 = math.sqrt %421 : vector<8x1xf32>
      %cst_192 = arith.constant 9.99999997E-7 : f32
      %423 = vector.broadcast %cst_192 : f32 to vector<8x1xf32>
      %424 = arith.addf %422, %423 : vector<8x1xf32>
      %cst_193 = arith.constant 1.000000e+00 : f32
      %425 = vector.broadcast %cst_193 : f32 to vector<8x1xf32>
      %426 = arith.divf %425, %424 : vector<8x1xf32>
      %427 = vector.broadcast %410 : vector<8x1xf32> to vector<8x128xf32>
      %428 = arith.subf %397, %427 : vector<8x128xf32>
      %429 = vector.broadcast %405 : vector<1x128xf32> to vector<8x128xf32>
      %430 = arith.mulf %429, %428 : vector<8x128xf32>
      %431 = vector.broadcast %426 : vector<8x1xf32> to vector<8x128xf32>
      %432 = arith.mulf %430, %431 : vector<8x128xf32>
      %433 = vector.broadcast %406 : vector<1x128xf32> to vector<8x128xf32>
      %434 = arith.addf %432, %433 : vector<8x128xf32>
      %c0_194 = arith.constant 0 : index
      %c0_195 = arith.constant 0 : index
      %c0_196 = arith.constant 0 : index
      %435 = vector.load %arg25[%c0_194, %c0_195, %c0_196] : memref<1x8x128xf32, #tpu.memory_space<vmem>>, vector<1x8x128xf32>
      %436 = vector.shape_cast %435 : vector<1x8x128xf32> to vector<8x128xf32>
      %437 = vector.shape_cast %434 : vector<8x128xf32> to vector<1x8x128xf32>
      tpu.vector_store %arg25[%c0_194, %c0_195, %c0_196], %437 {strides = array<i32>} : memref<1x8x128xf32, #tpu.memory_space<vmem>>, vector<1x8x128xf32>,
      %cst_197 = arith.constant 0.353553385 : f32
      %438 = vector.broadcast %cst_197 : f32 to vector<8x128xf32>
      %439 = arith.mulf %197, %438 : vector<8x128xf32>
      %440 = arith.truncf %439 : vector<8x128xf32> to vector<8x128xbf16>
      %441 = arith.truncf %201 : vector<128x128xf32> to vector<128x128xbf16>
      %cst_198 = arith.constant dense<0.000000e+00> : vector<8x128xf32>
      %442 = tpu.matmul %440, %441, %cst_198 {dimension_numbers = #tpu.dot_dimension_numbers<[1], [1], [0], [0], [0, 0, 1, 0], [], []>} : vector<8x128xbf16>, vector<128x128xbf16>, vector<8x128xf32> -> vector<8x128xf32>
      %cst_199 = arith.constant 2.500000e-01 : f32
      %443 = vector.broadcast %cst_199 : f32 to vector<8x128xf32>
      %444 = arith.mulf %442, %443 : vector<8x128xf32>
      %cst_200 = arith.constant -9.99999984E+17 : f32
      %445 = vector.shape_cast %20 : vector<1x128xi1> to vector<1x128xi1>
      %446 = vector.broadcast %445 : vector<1x128xi1> to vector<8x128xi1>
      %447 = vector.broadcast %cst_200 : f32 to vector<8x128xf32>
      %448 = arith.select %446, %447, %444 : vector<8x128xi1>, vector<8x128xf32>
      %c0_201 = arith.constant 0 : index
      %c0_202 = arith.constant 0 : index
      %c0_203 = arith.constant 0 : index
      %449 = vector.load %arg26[%c0_201, %c0_202, %c0_203] : memref<1x8x128xf32, #tpu.memory_space<vmem>>, vector<1x8x128xf32>
      %450 = vector.shape_cast %449 : vector<1x8x128xf32> to vector<8x128xf32>
      %451 = vector.shape_cast %448 : vector<8x128xf32> to vector<1x8x128xf32>
      tpu.vector_store %arg26[%c0_201, %c0_202, %c0_203], %451 {strides = array<i32>} : memref<1x8x128xf32, #tpu.memory_space<vmem>>, vector<1x8x128xf32>,
    } else {
    }
    return
  }
  func.func @transform_0(%arg0: i32, %arg1: i32) -> (i32, i32, i32) {
    %c0_i32 = arith.constant 0 : i32
    %0 = arith.cmpi eq, %arg0, %c0_i32 : i32
    %c0_i32_0 = arith.constant 0 : i32
    %1 = arith.select %0, %arg1, %c0_i32_0 : i32
    %c0_i32_1 = arith.constant 0 : i32
    %c0_i32_2 = arith.constant 0 : i32
    %c0_i32_3 = arith.constant 0 : i32
    return %1, %c0_i32_1, %c0_i32_2 : i32, i32, i32
  }
  func.func @transform_1(%arg0: i32, %arg1: i32) -> (i32, i32, i32) {
    %c0_i32 = arith.constant 0 : i32
    %c0_i32_0 = arith.constant 0 : i32
    %c0_i32_1 = arith.constant 0 : i32
    return %arg1, %c0_i32, %c0_i32_0 : i32, i32, i32
  }
  func.func @transform_2(%arg0: i32, %arg1: i32) -> (i32, i32, i32) {
    %c0_i32 = arith.constant 0 : i32
    %c0_i32_0 = arith.constant 0 : i32
    %c0_i32_1 = arith.constant 0 : i32
    return %arg1, %c0_i32, %c0_i32_0 : i32, i32, i32
  }
  func.func @transform_3(%arg0: i32, %arg1: i32) -> (i32, i32, i32) {
    %c0_i32 = arith.constant 0 : i32
    %c0_i32_0 = arith.constant 0 : i32
    %c0_i32_1 = arith.constant 0 : i32
    return %arg1, %c0_i32, %c0_i32_0 : i32, i32, i32
  }
  func.func @transform_4(%arg0: i32, %arg1: i32) -> (i32, i32) {
    %c0_i32 = arith.constant 0 : i32
    %c0_i32_0 = arith.constant 0 : i32
    %c0_i32_1 = arith.constant 0 : i32
    return %c0_i32, %c0_i32_0 : i32, i32
  }
  func.func @transform_5(%arg0: i32, %arg1: i32) -> (i32, i32) {
    %c0_i32 = arith.constant 0 : i32
    %c0_i32_0 = arith.constant 0 : i32
    %c0_i32_1 = arith.constant 0 : i32
    return %c0_i32, %c0_i32_0 : i32, i32
  }
  func.func @transform_6(%arg0: i32, %arg1: i32) -> (i32, i32, i32) {
    %c0_i32 = arith.constant 0 : i32
    %c0_i32_0 = arith.constant 0 : i32
    %c0_i32_1 = arith.constant 0 : i32
    return %arg0, %c0_i32, %c0_i32_0 : i32, i32, i32
  }
  func.func @transform_7(%arg0: i32, %arg1: i32) -> (i32, i32, i32) {
    %c0_i32 = arith.constant 0 : i32
    %c0_i32_0 = arith.constant 0 : i32
    %c0_i32_1 = arith.constant 0 : i32
    return %arg0, %c0_i32, %c0_i32_0 : i32, i32, i32
  }
  func.func @transform_8(%arg0: i32, %arg1: i32) -> (i32, i32, i32) {
    %c0_i32 = arith.constant 0 : i32
    %c0_i32_0 = arith.constant 0 : i32
    %c0_i32_1 = arith.constant 0 : i32
    return %arg0, %c0_i32, %c0_i32_0 : i32, i32, i32
  }
  func.func @transform_9(%arg0: i32, %arg1: i32) -> (i32, i32, i32) {
    %c0_i32 = arith.constant 0 : i32
    %c0_i32_0 = arith.constant 0 : i32
    %c0_i32_1 = arith.constant 0 : i32
    return %arg0, %c0_i32, %c0_i32_0 : i32, i32, i32
  }
  func.func @transform_10(%arg0: i32, %arg1: i32) -> (i32, i32, i32) {
    %c0_i32 = arith.constant 0 : i32
    %c0_i32_0 = arith.constant 0 : i32
    %c0_i32_1 = arith.constant 0 : i32
    return %arg0, %c0_i32, %c0_i32_0 : i32, i32, i32
  }
  func.func @transform_11(%arg0: i32, %arg1: i32) -> (i32, i32, i32) {
    %c0_i32 = arith.constant 0 : i32
    %c0_i32_0 = arith.constant 0 : i32
    %c0_i32_1 = arith.constant 0 : i32
    return %arg0, %c0_i32, %c0_i32_0 : i32, i32, i32
  }
  func.func @transform_12(%arg0: i32, %arg1: i32) -> (i32, i32, i32) {
    %c0_i32 = arith.constant 0 : i32
    %c0_i32_0 = arith.constant 0 : i32
    %c0_i32_1 = arith.constant 0 : i32
    return %arg0, %c0_i32, %c0_i32_0 : i32, i32, i32
  }
  func.func @transform_13(%arg0: i32, %arg1: i32) -> (i32, i32, i32) {
    %c0_i32 = arith.constant 0 : i32
    %c0_i32_0 = arith.constant 0 : i32
    %c0_i32_1 = arith.constant 0 : i32
    return %arg0, %c0_i32, %c0_i32_0 : i32, i32, i32
  }
  func.func @transform_14(%arg0: i32, %arg1: i32) -> (i32, i32, i32) {
    %c0_i32 = arith.constant 0 : i32
    %c0_i32_0 = arith.constant 0 : i32
    %c0_i32_1 = arith.constant 0 : i32
    return %arg0, %c0_i32, %c0_i32_0 : i32, i32, i32
  }
  func.func @transform_15(%arg0: i32, %arg1: i32) -> (i32, i32, i32) {
    %c0_i32 = arith.constant 0 : i32
    %c0_i32_0 = arith.constant 0 : i32
    %c0_i32_1 = arith.constant 0 : i32
    return %arg0, %c0_i32, %c0_i32_0 : i32, i32, i32
  }
  func.func @transform_16(%arg0: i32, %arg1: i32) -> (i32, i32, i32) {
    %c0_i32 = arith.constant 0 : i32
    %c0_i32_0 = arith.constant 0 : i32
    %c0_i32_1 = arith.constant 0 : i32
    return %arg0, %c0_i32, %c0_i32_0 : i32, i32, i32
  }
  func.func @transform_17(%arg0: i32, %arg1: i32) -> (i32, i32, i32) {
    %c0_i32 = arith.constant 0 : i32
    %c0_i32_0 = arith.constant 0 : i32
    %c0_i32_1 = arith.constant 0 : i32
    return %arg0, %c0_i32, %c0_i32_0 : i32, i32, i32
  }
  func.func @transform_18(%arg0: i32, %arg1: i32) -> (i32, i32, i32) {
    %c0_i32 = arith.constant 0 : i32
    %c0_i32_0 = arith.constant 0 : i32
    %c0_i32_1 = arith.constant 0 : i32
    return %arg0, %c0_i32, %c0_i32_0 : i32, i32, i32
  }
  func.func @transform_19(%arg0: i32, %arg1: i32) -> (i32, i32, i32) {
    %c0_i32 = arith.constant 0 : i32
    %c0_i32_0 = arith.constant 0 : i32
    %c0_i32_1 = arith.constant 0 : i32
    return %arg0, %c0_i32, %c0_i32_0 : i32, i32, i32
  }
  func.func @transform_20(%arg0: i32, %arg1: i32) -> (i32, i32, i32) {
    %c0_i32 = arith.constant 0 : i32
    %c0_i32_0 = arith.constant 0 : i32
    %c0_i32_1 = arith.constant 0 : i32
    return %arg0, %c0_i32, %c0_i32_0 : i32, i32, i32
  }
  func.func @transform_21(%arg0: i32, %arg1: i32) -> (i32, i32) {
    %c0_i32 = arith.constant 0 : i32
    %c0_i32_0 = arith.constant 0 : i32
    %c0_i32_1 = arith.constant 0 : i32
    return %c0_i32, %c0_i32_0 : i32, i32
  }
  func.func @transform_22(%arg0: i32, %arg1: i32) -> (i32, i32) {
    %c0_i32 = arith.constant 0 : i32
    %c0_i32_0 = arith.constant 0 : i32
    %c0_i32_1 = arith.constant 0 : i32
    return %c0_i32, %c0_i32_0 : i32, i32
  }
  func.func @transform_23(%arg0: i32, %arg1: i32) -> (i32, i32, i32) {
    %c1_i32 = arith.constant 1 : i32
    %0 = arith.cmpi eq, %arg0, %c1_i32 : i32
    %c0_i32 = arith.constant 0 : i32
    %1 = arith.select %0, %arg1, %c0_i32 : i32
    %c0_i32_0 = arith.constant 0 : i32
    %c0_i32_1 = arith.constant 0 : i32
    %c0_i32_2 = arith.constant 0 : i32
    return %1, %c0_i32_0, %c0_i32_1 : i32, i32, i32
  }
  func.func @transform_24(%arg0: i32, %arg1: i32) -> (i32, i32, i32) {
    %c1_i32 = arith.constant 1 : i32
    %0 = arith.cmpi eq, %arg0, %c1_i32 : i32
    %c0_i32 = arith.constant 0 : i32
    %1 = arith.select %0, %arg1, %c0_i32 : i32
    %c0_i32_0 = arith.constant 0 : i32
    %c0_i32_1 = arith.constant 0 : i32
    %c0_i32_2 = arith.constant 0 : i32
    return %1, %c0_i32_0, %c0_i32_1 : i32, i32, i32
  }
}

</mosaic_0001>

<bundles_post_ra>
// kernel: decoder_forward.1
= control target key start
LH: loop header
LB: loop body
LE: loop exit
PB: predicated region body
PF: predicated region fallthrough
CT: control target
= control target key end

     0   :  { %s6367_s0 = inlined_call_operand.vmem [shape: bf16[2,8,32], index: 0, kind: input, shape index: {}]   ;;  %s6368_s1 = inlined_call_operand.vmem [shape: bf16[2,128,128], index: 1, kind: input, shape index: {}]   ;;  %s6369_s2 = inlined_call_operand.vmem [shape: f32[2,1,8], index: 2, kind: input, shape index: {}]   ;;  %s6370_s3 = inlined_call_operand.vmem [shape: f32[2,1,128], index: 3, kind: input, shape index: {}]   ;;  %s6371_s4 = inlined_call_operand.vmem [shape: f32[8,128], index: 4, kind: input, shape index: {}]   ;;  %s6372_s5 = inlined_call_operand.vmem [shape: bf16[32,128], index: 5, kind: input, shape index: {}]   ;;  %s6373_s6 = inlined_call_operand.vmem [shape: bf16[2,128,288], index: 6, kind: input, shape index: {}]   ;;  %s6374_s7 = inlined_call_operand.vmem [shape: bf16[2,32,128], index: 7, kind: input, shape index: {}]   ;;  %s6375_s8 = inlined_call_operand.vmem [shape: bf16[2,128,128], index: 8, kind: input, shape index: {}]   ;;  %s6376_s9 = inlined_call_operand.vmem [shape: bf16[2,128,160], index: 9, kind: input, shape index: {}]   ;;  %s6377_s10 = inlined_call_operand.vmem [shape: bf16[2,32,128], index: 10, kind: input, shape index: {}]   ;;  %s6378_s11 = inlined_call_operand.vmem [shape: bf16[2,384,128], index: 11, kind: input, shape index: {}]   ;;  %s6379_s12 = inlined_call_operand.vmem [shape: f32[2,1,128], index: 12, kind: input, shape index: {}]   ;;  %s6380_s13 = inlined_call_operand.vmem [shape: bf16[2,384,128], index: 13, kind: input, shape index: {}]   ;;  %s6381_s14 = inlined_call_operand.vmem [shape: f32[2,1,128], index: 14, kind: input, shape index: {}]   ;;  %s6382_s15 = inlined_call_operand.vmem [shape: f32[2,1,128], index: 15, kind: input, shape index: {}]   ;;  %s6383_s16 = inlined_call_operand.vmem [shape: f32[2,1,128], index: 16, kind: input, shape index: {}]   ;;  %s6384_s17 = inlined_call_operand.vmem [shape: f32[2,1,128], index: 17, kind: input, shape index: {}]   ;;  %s6385_s18 = inlined_call_operand.vmem [shape: f32[2,1,128], index: 18, kind: input, shape index: {}]   ;;  %s6386_s19 = inlined_call_operand.vmem [shape: f32[2,1,128], index: 19, kind: input, shape index: {}]   ;;  %s6387_s20 = inlined_call_operand.vmem [shape: f32[2,1,128], index: 20, kind: input, shape index: {}]   ;;  %s6388_s21 = inlined_call_operand.vmem [shape: f32[1,128], index: 21, kind: input, shape index: {}]   ;;  %s6389_s22 = inlined_call_operand.vmem [shape: f32[1,128], index: 22, kind: input, shape index: {}]   ;;  %s6390_s23 = inlined_call_operand.hbm [shape: f32[2,8,128], index: 23, kind: output, shape index: {0}]   ;;  %s6391_s24 = inlined_call_operand.hbm [shape: f32[2,8,128], index: 24, kind: output, shape index: {1}]  }
   0x1   :  { %6413 = sst [smem:[#allocation29_spill]] %s6367_s0 }
   0x2   :  { %6414 = sst [smem:[#allocation30_spill]] %s6368_s1 }
   0x3   :  { %6415 = sst [smem:[#allocation31_spill]] %s6369_s2 }
   0x4   :  { %6416 = sst [smem:[#allocation32_spill]] %s6370_s3 }
   0x5   :  { %6417 = sst [smem:[#allocation33_spill]] %s6371_s4 }
   0x6   :  { %6418 = sst [smem:[#allocation34_spill]] %s6372_s5 }
   0x7   :  { %6419 = sst [smem:[#allocation35_spill]] %s6373_s6 }
   0x8   :  { %6420 = sst [smem:[#allocation36_spill]] %s6374_s7 }
   0x9   :  { %6421 = sst [smem:[#allocation37_spill]] %s6375_s8 }
   0xa   :  { %6422 = sst [smem:[#allocation38_spill]] %s6376_s9 }
   0xb   :  { %6423 = sst [smem:[#allocation39_spill]] %s6377_s10 }
   0xc   :  { %6424 = sst [smem:[#allocation40_spill]] %s6378_s11 }
   0xd   :  { %6425 = sst [smem:[#allocation41_spill]] %s6379_s12 }
   0xe   :  { %6426 = sst [smem:[#allocation42_spill]] %s6380_s13 }
   0xf   :  { %6427 = sst [smem:[#allocation43_spill]] %s6381_s14 }
  0x10   :  { %6428 = sst [smem:[#allocation44_spill]] %s6384_s17 }
  0x11   :  { %6429 = sst [smem:[#allocation45_spill]] %s6385_s18 }
  0x12   :  { %6430 = sst [smem:[#allocation46_spill]] %s6386_s19 }
  0x13   :  { %6431 = sst [smem:[#allocation47_spill]] %s6387_s20 }
  0x14   :  { %6432 = sst [smem:[#allocation48_spill]] %s6388_s21 }
  0x15   :  { %6433 = sst [smem:[#allocation49_spill]] %s6389_s22 }
  0x16   :  { %6434 = sst [smem:[#allocation50_spill]] %s6390_s23 }
  0x17   :  { %6435 = sst [smem:[#allocation51_spill]] %s6391_s24 }
  0x18   :  { %30 = vsyncpa [#allocation7], 0 }
  0x19   :  { %32 = vsyncpa [#allocation7 + $0x1], 0 }
  0x1a   :  { %33 = vsyncpa [#allocation9], 0 }
  0x1b   :  { %35 = vsyncpa [#allocation9 + $0x1], 0  ;;  %s5427_s5 = smov 0   ;;  %s5429_s26 = smov 0  }
  0x1c   :  { %s5431_s27 = smov 0   ;;  %s5433_s28 = smov 0  }
  0x1d   :  { %s5435_s6 = smov 0   ;;  %s5437_s2 = smov 0  }
  0x1e   :  { %s5439_s29 = smov 0   ;;  %s5441_s0 = smov 0  }
  0x1f LB: > { %6436 = sst [smem:[#allocation12_spill]] %s5257_s5  ;;  %s4178_s7 = sadd.s32 4294967295, %s5285_s0   ;;  %s5285_s0 = sphi %s5441_s0, %s41_s0   ;;  %s5281_s29 = sphi %s5439_s29, %s6513_s29   ;;  %s5277_s2 = sphi %s5437_s2, %s6512_s2   ;;  %s5273_s6 = sphi %s5435_s6, %s6511_s6   ;;  %s5269_s28 = sphi %s5433_s28, %s6510_s28   ;;  %s5265_s27 = sphi %s5431_s27, %s6509_s27   ;;  %s5261_s26 = sphi %s5429_s26, %s6508_s26   ;;  %s5257_s5 = sphi %s5427_s5, %s6507_s5  }
  0x20   : > { %6437 = sst [smem:[#allocation13_spill]] %s5261_s26  ;;  %s50_s30 = sadd.s32 1, %s5277_s2 }
  0x21   : > { %6438 = sst [smem:[#allocation14_spill]] %s5265_s27  ;;  %s53_s3 = sadd.s32 1, %s5281_s29 }
  0x22   : > { %6439 = sst [smem:[#allocation15_spill]] %s5269_s28  ;;  %p51_p0 = scmp.ge.s32.totalorder %s50_s30, 2 }
  0x23   : > { %6440 = sst [smem:[#allocation16_spill]] %s5277_s2  ;;  %p639_p1 = scmp.eq.s32.totalorder %s5281_s29, 1 }
  0x24   : > { %6441 = sst [smem:[#allocation17_spill]] %s5281_s29  ;;  %s4179_s25 = sadd.s32 4294967294, %s5285_s0  }
  0x25   : > { %6442 = sst [smem:[#allocation18_spill]] %s5285_s0  ;;  %p656_p2 = scmp.ne.s32.totalorder %s5265_s27, %s5261_s26 }
  0x26   : > { %s6515_s30 = smov (%p51_p0, %s50_s30), 0  ;;  %s6517_s3 = smov (!%p51_p0, %s53_s3), %s5281_s29 }
  0x27   : > { %6443 = sst [smem:[#allocation19_spill]] %s6515_s30  ;;  %p55_p3 = scmp.ge.s32.totalorder %s6517_s3, 2 }
  0x28   : > { %s640_s8 = scalar_select %p639_p1, %s5277_s2, 0 }
  0x29   : > { %p657_p4 = scmp.eq.s32.totalorder %s4178_s7, 3  ;;  %p662_p5 = scmp.ne.s32.totalorder %s5261_s26, %s5257_s5 }
  0x2a   : > { %p663_p6 = scmp.eq.s32.totalorder %s4179_s25, 3  ;;  %s6519_s3 = smov (%p55_p3, %s6517_s3), 0 }
  0x2b   : > { %6444 = sst [smem:[#allocation20_spill]] %s6519_s3  ;;  %p5482_p7 = por %p657_p4, %p656_p2 }
  0x2c   : > { %p5486_p8 = por %p663_p6, %p662_p5  ;;  %p641_p9 = scmp.eq.s32.totalorder %s6519_s3, 1 }
  0x2d   : > { %s6445_s4 = scalar_select %p5482_p7, 1, 0 }
  0x2e   : > { %s6447_s1 = scalar_select %p5486_p8, 1, 0 }
  0x2f   : > { %6446 = sst [smem:[#allocation21_spill]] %s6445_s4  ;;  %p4182_p10 = scmp.ge.s32.totalorder %s5285_s0, 1 }
  0x30   : > { %6448 = sst [smem:[#allocation22_spill]] %s6447_s1  ;;  %p858_p11 = scmp.lt.s32.totalorder %s5285_s0, 5 }
  0x31   : > { %s642_s29 = scalar_select %p641_p9, %s6515_s30, 0 }
  0x32   : > { %p859_p12 = pnand %p4182_p10, %p858_p11  ;;  %s646_s7 = sadd.s32 1, %s5265_s27 }
  0x33   : > { %s643_s2 = ssub.s32 %s640_s8, %s642_s29 }
  0x34   : > { %p644_p13 = scmp.eq.s32.totalorder %s643_s2, 0  ;;  %862 = sbr.rel (%p859_p12) target bundleno = 6029 (0x178d), region = 112 }
  0x36   : > { %s5496_s25 = scalar_select %p644_p13, %s5265_s27, %s646_s7  }
  0x38   : > { %6449 = sst [smem:[#allocation23_spill]] %s5496_s25 }
  0x3b   : > { %s5499_s5 = sand.u32 1, %s5261_s26   ;;  %p1000_p0 = scmp.eq.s32.totalorder %s5273_s6, 0 }
  0x3c   : > { %p1008_p1 = scmp.lt.s32.totalorder %s5269_s28, 1  ;;  %p1019_p3 = scmp.lt.s32.totalorder %s5273_s6, 1 }
  0x3d   : > { %s1001_s30 = scalar_select %p1000_p0, %s5269_s28, 0 }
  0x3e   : > { %s5506_s29 = scalar_select %p1008_p1, %s5269_s28, 1 }
  0x3f   : > { %p1002_p2 = scmp.lt.s32.totalorder %s1001_s30, 1  ;;  %s6451_s0 = sld [smem:[#allocation30_spill]] }
  0x40   : > { %s4350_s2 = sshll.u32 %s5506_s29, 6  ;;  %s6454_s19 = sld [smem:[#allocation29_spill]] }
  0x41   : > { %s6521_s30 = smov (!%p1002_p2, %s1001_s30), 1  ;;  %s6455_s3 = sld [smem:[#allocation36_spill]] }
  0x42   : > { %s4185_s21 = sshll.u32 %s6521_s30, 2  ;;  %s6457_s4 = sld [smem:[#allocation35_spill]] }
  0x43   : > { %s5529_s17 = scalar_select %p1019_p3, %s5273_s6, 1 }
  0x44   : > { %s6458_s8 = sld [smem:[#allocation37_spill]]  ;;  %s6460_s10 = sld [smem:[#allocation39_spill]] }
  0x45   : > { %s5517_s24 = scalar_lea.vmem %s6451_s0, %s4350_s2  ;;  %s4878_s26 = smul.u32 192, %s5529_s17 }
  0x46   : > { %6452 = sst [smem:[#allocation24_spill]] %s5517_s24  ;;  %s5526_s18 = scalar_lea.vmem %s6454_s19, %s4185_s21 }
  0x47   : > { %s4351_s23 = sshll.u32 %s5529_s17, 4  ;;  %s4352_s20 = sshll.u32 %s5529_s17, 6 }
  0x48   : > { %s5536_s19 = scalar_lea.vmem %s6455_s3, %s4351_s23  ;;  %s5542_s1 = scalar_lea.vmem %s6457_s4, %s4878_s26 }
  0x49   : > { %6456 = sst [smem:[#allocation25_spill]] %s5536_s19  ;;  %s4353_s22 = sshll.u32 %s5529_s17, 7 }
  0x4a   : > { %s5547_s7 = scalar_lea.vmem %s6458_s8, %s4352_s20  ;;  %s5553_s30 = scalar_lea.vmem %s6460_s10, %s4351_s23 }
  0x4b   : > { %6459 = sst [smem:[#allocation26_spill]] %s5547_s7  ;;  %s6461_s9 = sld [smem:[#allocation38_spill]] }
  0x4c   : > { %s6462_s11 = sld [smem:[#allocation40_spill]]  ;;  %s6465_s13 = sld [smem:[#allocation42_spill]] }
  0x4d   : > { %s1065_s10 = scalar_lea.vmem %s6383_s16, %s5529_s17  ;;  %s6468_s2 = sld [smem:[#allocation44_spill]] }
  0x4e   : > { %s6470_s23 = sld [smem:[#allocation46_spill]]  ;;  %p4199_p4 = scmp.ne.s32.totalorder %s5273_s6, 0 }
  0x4f   : > { %s6474_s25 = sld [smem:[#allocation34_spill]] (!%p4199_p4)  ;;  %v5287_v1 = vmov (!%p4199_p4), 0.0   ;;  %vm5288_vm0 = vmmov (!%p4199_p4), 0   ;;  %v1087_v3 = vld [vmem:[%s5526_s18] sm:$0xf] (!%p4199_p4)  ;;  %vm1105_vm1 = vcmask (!%p4199_p4), 261120  }
  0x50   : > { %4546 = vmatprep.subr.bf16.mxu0 (!%p4199_p4), %v5287_v1  ;;  %4550 = vmatprep.mubr.msk.bf16.mxu0 (!%p4199_p4), %vm5288_vm0, %v5287_v1  ;;  %s6476_s7 = sld [smem:[#allocation33_spill]] (!%p4199_p4) }
  0x51   : > { %s5558_s19 = scalar_lea.vmem %s6461_s9, %s4353_s22  ;;  %s6471_s22 = sld [smem:[#allocation47_spill]] }
  0x52   : > { %s5563_s4 = scalar_lea.vmem %s6462_s11, %s4878_s26  ;;  %s5572_s27 = scalar_lea.vmem %s6465_s13, %s4878_s26 }
  0x53   : > { %6463 = sst [smem:[#allocation27_spill]] %s5563_s4  ;;  %s1068_s20 = scalar_lea.vmem %s6468_s2, %s5529_s17 }
  0x54   : > { %6466 = sst [smem:[#allocation28_spill]] %s5572_s27  ;;  %s6469_s26 = sld [smem:[#allocation45_spill]] }
  0x55   : > { %s1074_s0 = scalar_lea.vmem %s6470_s23, %s5529_s17  ;;  %s6472_s9 = sshll.u32 %s5499_s5, 3  ;;  %v4968_v0 = vld [vmem:[%s6474_s25] sm:$0xff] (!%p4199_p4)   ;;  %v4969_v2 = vld [vmem:[%s6474_s25 + $0x8] sm:$0xff] (!%p4199_p4)  }
  0x56   : > { %s5604_s4 = scalar_lea.vmem [#allocation6], %s6472_s9  ;;  %s6473_s21 = smov %s6472_s9  ;;  %4547 = vmatpush3.bf16.msra.mxu0 (!%p4199_p4), %v4968_v0  ;;  %v1092_v4 = vld [vmem:[%s6476_s7] sm:$0xff] (!%p4199_p4) }
  0x57   : > { %s1077_s3 = scalar_lea.vmem %s6471_s22, %s5529_s17  ;;  %s5608_s28 = scalar_lea.vmem [#allocation8], %s6473_s21  ;;  %4548 = vmatprep.subr.bf16.mxu0 (!%p4199_p4), %v5287_v1 }
  0x58   : > { %1086 = sbr.rel (%p4199_p4) target bundleno = 308 (0x134), region = 116  ;;  %s6475_s2 = sld [smem:[#allocation15_spill]] (!%p4199_p4) }
  0x5a   : > { %s1071_s8 = scalar_lea.vmem %s6469_s26, %s5529_s17  ;;  %4549 = vmatpush3.bf16.msra.mxu0 (!%p4199_p4), %v4969_v2 }
  0x5d   : > { %4551 = vmatmul.mubr.msk.bf16.vlgmr.msra.gmra.mrb[0].mxu0 (!%p4199_p4), %vm1105_vm1, %v1087_v3 }
  0x5e   : > { %s4203_s9 = sshll.u32 (!%p4199_p4), %s6475_s2, 3 }
  0x5f   : > { %s1150_s26 = scalar_lea.vmem [#allocation2], %s4203_s9 }
 0x130   : > { %v1143_v5 = vpop.f32.mrb[0].mxu0 }
 0x131   : > { %v1144_v6 = vadd.f32 %v1143_v5, %v1092_v4  ;;  %v4552_v7 = vpop.f32.mrb[1].mxu0 }
 0x132   : > { %v1146_v8 = vpop.f32.mrb[2].mxu0 }
 0x133   : > { %1151 = vst [vmem:[%s1150_s26] sm:$0xff] %v1144_v6  ;;  %v4553_v9 = vpop.f32.mrb[3].mxu0 }
 0x134 PF: > { %s6477_s23 = sld [smem:[#allocation15_spill]]  ;;  %v4970_v12 = vld [vmem:[%s5542_s1 + $0x4] ss:$12 sps:$4 sm:$0xff]   ;;  %v4972_v13 = vld [vmem:[%s5542_s1] ss:$12 sps:$4 sm:$0xff]   ;;  %v5289_v15 = vmov 0.0   ;;  %s6478_s11 = scalar_lea.vmem %s6382_s15, %s5529_s17 }
 0x135   : > { %v4973_v14 = vld [vmem:[%s5542_s1 + $0x8] ss:$12 sps:$4 sm:$0xff]   ;;  %1387 = vmatprep.subr.bf16.mxu0 %v4970_v12  ;;  %4554 = vmatprep.subr.bf16.mxu1 %v5289_v15  ;;  %v4976_v17 = vld [vmem:[%s5542_s1 + $0x18] ss:$12 sps:$4 sm:$0xff]   ;;  %v4977_v18 = vld [vmem:[%s5542_s1 + $0x20] ss:$12 sps:$4 sm:$0xff]  }
 0x136   : > { %1388 = vmatpush1.bf16.msra.mxu0 %v4972_v13  ;;  %4555 = vmatpush3.bf16.msra.mxu1 %v4973_v14  ;;  %v4974_v16 = vld [vmem:[%s5542_s1 + $0x1c] ss:$12 sps:$4 sm:$0xff]   ;;  %v4978_v19 = vld [vmem:[%s5542_s1 + $0x34] ss:$12 sps:$4 sm:$0xff]   ;;  %v4981_v21 = vld [vmem:[%s5542_s1 + $0x38] ss:$12 sps:$4 sm:$0xff]  }
 0x137   : > { %4556 = vmatprep.subr.bf16.mxu1 %v5289_v15  ;;  %1389 = vmatprep.subr.bf16.mxu0 %v4974_v16  ;;  %v4980_v20 = vld [vmem:[%s5542_s1 + $0x30] ss:$12 sps:$4 sm:$0xff]   ;;  %v4982_v22 = vld [vmem:[%s5542_s1 + $0x4c] ss:$12 sps:$4 sm:$0xff]   ;;  %v4984_v23 = vld [vmem:[%s5542_s1 + $0x48] ss:$12 sps:$4 sm:$0xff]  }
 0x138   : > { %v4985_v24 = vld [vmem:[%s5542_s1 + $0x50] ss:$12 sps:$4 sm:$0xff]   ;;  %v4988_v26 = vld [vmem:[%s5542_s1 + $0x60] ss:$12 sps:$4 sm:$0xff]   ;;  %v4989_v27 = vld [vmem:[%s5542_s1 + $0x68] ss:$12 sps:$4 sm:$0xff]  }
 0x139   : > { %v4986_v25 = vld [vmem:[%s5542_s1 + $0x64] ss:$12 sps:$4 sm:$0xff]   ;;  %v4990_v28 = vld [vmem:[%s5542_s1 + $0x7c] ss:$12 sps:$4 sm:$0xff]   ;;  %v4993_v30 = vld [vmem:[%s5542_s1 + $0x80] ss:$12 sps:$4 sm:$0xff]  }
 0x13a   : > { %s4204_s18 = sshll.u32 %s6477_s23, 3  ;;  %1390 = vmatpush1.bf16.msra.mxu0 %v4976_v17  ;;  %4557 = vmatpush3.bf16.msra.mxu1 %v4977_v18  ;;  %v4992_v29 = vld [vmem:[%s5542_s1 + $0x78] ss:$12 sps:$4 sm:$0xff]   ;;  %v4994_v31 = vld [vmem:[%s5542_s1 + $0x94] ss:$12 sps:$4 sm:$0xff]   ;;  %v5290_v32 = vmov 0  }
 0x13b   : > { %s5623_s22 = scalar_lea.vmem [#allocation2], %s4204_s18  ;;  %4558 = vmatprep.subr.bf16.mxu1 %v5289_v15  ;;  %1391 = vmatprep.subr.bf16.mxu0 %v4978_v19  ;;  %vm5291_vm2 = vmmov 0   ;;  %v4996_v33 = vld [vmem:[%s5542_s1 + $0x90] ss:$12 sps:$4 sm:$0xff]   ;;  %v4997_v34 = vld [vmem:[%s5542_s1 + $0x98] ss:$12 sps:$4 sm:$0xff]  }
 0x13c   : > { %v5626_v10 = vld [vmem:[%s5623_s22] sm:$0xff]  ;;  %1419 = vmatprep.mubr.bf16.mxu0 %v5290_v32  ;;  %4570 = vmatprep.mubr.msk.bf16.mxu1 %vm5291_vm2, %v5289_v15  ;;  %v4998_v35 = vld [vmem:[%s5542_s1 + $0xac] ss:$12 sps:$4 sm:$0xff]   ;;  %v5000_v36 = vld [vmem:[%s5542_s1 + $0xa8] ss:$12 sps:$4 sm:$0xff]   ;;  %vm1476_vm5 = vcmask 64512  }
 0x13d   : > { %1189 = vadd.xlane.f32.xlu0 %v5626_v10  ;;  %v1192_v11 = vmul.f32 %v5626_v10, %v5626_v10  ;;  %v5001_v37 = vld [vmem:[%s5542_s1 + $0xb0] ss:$12 sps:$4 sm:$0xff]   ;;  %v4205_v53 = vld [vmem:[%s6478_s11] ss:$0 sm:$0xff]  ;;  %s5293_s13 = smov 104   ;;  %vm1539_vm6 = vcmask 1043456  }
 0x13e   : > { %1392 = vmatpush1.bf16.msra.mxu0 %v4980_v20  ;;  %4559 = vmatpush3.bf16.msra.mxu1 %v4981_v21  ;;  %v4206_v56 = vld [vmem:[%s1065_s10] ss:$0 sm:$0xff]  ;;  %s5292_s10 = smov 120   ;;  %s6479_s27 = sld [smem:[#allocation31_spill]]  ;;  %vm1702_vm11 = vcmask 130112   ;;  %vm1819_vm12 = vcmask 195712  }
 0x13f   : > { %4560 = vmatprep.subr.bf16.mxu1 %v5289_v15  ;;  %1393 = vmatprep.subr.bf16.mxu0 %v4982_v22  ;;  %s5294_s7 = smov 112   ;;  %s6483_s26 = sld [smem:[#allocation25_spill]]  ;;  %vm1936_vm13 = vcmask 261312   ;;  %vm1952_vm14 = vcmask 261120  }
 0x140   : > { %s5295_s23 = smov 8   ;;  %s5296_s18 = smov 16  }
 0x141   : > { %1193 = vadd.xlane.f32.xlu0 %v1192_v11  ;;  %s5297_s1 = smov 24   ;;  %s6484_s21 = sld [smem:[#allocation24_spill]] }
 0x142   : > { %1394 = vmatpush1.bf16.msra.mxu0 %v4984_v23  ;;  %4561 = vmatpush3.bf16.msra.mxu1 %v4985_v24  ;;  %s6485_s11 = sld [smem:[#allocation26_spill]]  ;;  %s6496_s2 = sld [smem:[#allocation43_spill]] }
 0x143   : > { %1395 = vmatprep.subr.bf16.mxu0 %v4986_v25  ;;  %4562 = vmatprep.subr.bf16.mxu1 %v5289_v15  ;;  %p4341_p5 = scmp.ne.s32.totalorder %s5273_s6, 1 }
 0x144   : > { %s6480_s24 = scalar_lea.vmem %s6479_s27, %s5506_s29  ;;  %s6498_s9 = sld [smem:[#allocation48_spill]] (!%p4341_p5) }
 0x145   : > { %v1176_v11 = vld [vmem:[%s6480_s24] sm:$0x1]  ;;  %s6488_s24 = sld [smem:[#allocation32_spill]] }
 0x146   : > { %1396 = vmatpush1.bf16.msra.mxu0 %v4988_v26  ;;  %4563 = vmatpush3.bf16.msra.mxu1 %v4989_v27  ;;  %vm1177_vm7 = vcmp.gt.f32.partialorder %v1176_v11, 0.5 }
 0x147   : > { %1397 = vmatprep.subr.bf16.mxu0 %v4990_v28  ;;  %4564 = vmatprep.subr.bf16.mxu1 %v5289_v15  ;;  %v1178_v14 = vsel %vm1177_vm7, 1, %v5290_v32 }
 0x148   : > { %s6497_s14 = scalar_lea.vmem %s6496_s2, %s5529_s17 }
 0x14a   : > { %1398 = vmatpush1.bf16.msra.mxu0 %v4992_v29  ;;  %4565 = vmatpush3.bf16.msra.mxu1 %v4993_v30 }
 0x14b   : > { %1399 = vmatprep.subr.bf16.mxu0 %v4994_v31  ;;  %4566 = vmatprep.subr.bf16.mxu1 %v5289_v15 }
 0x14e   : > { %1400 = vmatpush1.bf16.msra.mxu0 %v4996_v33  ;;  %4567 = vmatpush3.bf16.msra.mxu1 %v4997_v34 }
 0x14f   : > { %1401 = vmatprep.subr.bf16.mxu0 %v4998_v35  ;;  %4568 = vmatprep.subr.bf16.mxu1 %v5289_v15 }
 0x152   : > { %1402 = vmatpush1.bf16.msra.mxu0 %v5000_v36  ;;  %4569 = vmatpush3.bf16.msra.mxu1 %v5001_v37 }
 0x153   : > { %4574 = vmatprep.subr.bf16.mxu0 %v5289_v15  ;;  %4592 = vmatprep.subr.bf16.mxu1 %v5289_v15 }
 0x1ca   : > { %v1190_v38 = vpop.xlane.xlu0 %1189 }
 0x1cb   : > { %v1191_v39 = vmul.f32 0.03125, %v1190_v38 }
 0x1cd   : > { %v1195_v40 = vmul.f32 32.0, %v1191_v39  ;;  %v1210_v52 = vsub.f32 %v5626_v10, %v1191_v39  ;;  %v1171_v10 = vlaneseq }
 0x1ce   : > { %v1194_v41 = vpop.xlane.xlu0 %1193 }
 0x1cf   : > { %v1196_v42 = vmul.f32 %v1195_v40, %v1191_v39  ;;  %v1217_v54 = vmul.f32 %v4205_v53, %v1210_v52  ;;  %v5700_v12 = vshrl.u32 %v1171_v10, 7  ;;  %v1174_v16 = vand.u32 127, %v1171_v10 }
 0x1d1   : > { %v1197_v43 = vsub.f32 %v1194_v41, %v1196_v42  ;;  %v1181_v13 = vsub.s32 0, %v5700_v12  ;;  %vm1175_vm8 = vcmp.gt.s32.totalorder %v1174_v16, %v5700_v12  ;;  %vm3210_vm7 = vcmp.lt.s32.totalorder %v5700_v12, 2 }
 0x1d3   : > { %v1198_v44 = vmax.f32 %v1197_v43, 0.0  ;;  %v1182_v17 = vrot.slane %v1178_v14, %v1181_v13 }
 0x1d5   : > { %v1199_v45 = vmul.f32 0.032258064, %v1198_v44  ;;  %vm1183_vm9 = vcmp.eq.s32.totalorder %v1182_v17, 1 }
 0x1d6   : > { %vm5707_vm10 = vmor %vm1175_vm8, %vm1183_vm9 }
 0x1d7   : > { %5098 = vrsqrt.f32 %v1199_v45  ;;  %vm1202_vm3 = vcmp.eq.f32.partialorder %v1199_v45, inf  ;;  %v1205_v48 = vand.u32 2147483648, %v1199_v45  ;;  %vm1204_vm4 = vcmp.eq.f32.partialorder %v1199_v45, 0.0  ;;  %vm5154_vm9 = vmneg %vm3210_vm7 }
 0x1e1   : > { %v5099_v46 = vpop.eup %5098 }
 0x1e2   : > { %v1201_v47 = vmul.f32 %v5099_v46, %v1199_v45 }
 0x1e4   : > { %v1203_v49 = vsel %vm1202_vm3, %v1199_v45, %v1201_v47 }
 0x1e5   : > { %v1206_v50 = vsel %vm1204_vm4, %v1205_v48, %v1203_v49 }
 0x1e6   : > { %v1207_v51 = vadd.f32 1e-06, %v1206_v50 }
 0x1e8   : > { %5100 = vrcp.f32 %v1207_v51 }
 0x1f2   : > { %v5101_v55 = vpop.eup %5100 }
 0x1f3   : > { %v1218_v57 = vmul.f32 %v5101_v55, %v1217_v54 }
 0x1f5   : > { %v1225_v58 = vadd.f32 %v4206_v56, %v1218_v57 }
 0x1f7   : > { %v1226_v59 = vpack.c.bf16 %v1225_v58, %v1225_v58 }
 0x1f9   : > { %1420 = vmatmul.mubr.bf16.vlgmr.msra.gmra.mrb[0].mxu0 %v1226_v59  ;;  %4571 = vmatmul.mubr.bf16.vlgmr.msra.gmra.mrb[0].mxu1 %v1226_v59 }
 0x1fa   : > { %4576 = vmatprep.mubr.msk.bf16.mxu0 %vm5291_vm2, %v5289_v15  ;;  %4594 = vmatprep.mubr.msk.bf16.mxu1 %vm5291_vm2, %v5289_v15 }
 0x2cc   : > { %v1421_v60 = vpop.f32.mrb[0].mxu0  ;;  %v1462_v61 = vpop.f32.mrb[0].mxu1 }
 0x2cd   : > { %v1423_v62 = vpop.f32.mrb[1].mxu0  ;;  %v4572_v63 = vpop.f32.mrb[1].mxu1  ;;  %v1472_v6 = vmul.f32 0.35355338, %v1421_v60  ;;  %v5686_v7 = vpack.c.bf16 %v1462_v61, %v1462_v61 }
 0x2ce   : > { %v1474_v0 = vpack.c.bf16 %v1423_v62, %v1423_v62  ;;  %v1425_v1 = vpop.f32.mrb[2].mxu0  ;;  %v1465_v2 = vpop.f32.mrb[2].mxu1 }
 0x2cf   : > { %v1426_v3 = vpop.f32.mrb[3].mxu0  ;;  %v4573_v4 = vpop.f32.mrb[3].mxu1  ;;  %v1473_v8 = vpack.c.bf16 %v1472_v6, %v1472_v6  ;;  %v1541_v9 = vsel %vm1539_vm6, %v5686_v7, 0 }
 0x2d0   : > { %1588 = vrot.lane.b32.xlu0 %v1474_v0, %s5292_s10  ;;  %v1481_v5 = vsel %vm1476_vm5, %v1474_v0, 0 }
 0x2d1   : > { %4575 = vmatpush3.bf16.xpose.msra.mxu0 %v1481_v5 }
 0x2d2   : > { %4580 = vmatprep.subr.bf16.mxu0 %v5289_v15 }
 0x2d4   : > { %1823 = vrot.lane.b32.xlu0 %v1474_v0, %s5293_s13 }
 0x2d8   : > { %4577 = vmatmul.mubr.msk.bf16.vlgmr.msra.gmra.mrb[4].mxu0 %vm1476_vm5, %v1473_v8 }
 0x2d9   : > { %4581 = vmatpush3.bf16.msra.mxu0 %v1541_v9  ;;  %4582 = vmatprep.mubr.msk.bf16.mxu0 %vm5291_vm2, %v5289_v15 }
 0x2da   : > { %4586 = vmatprep.subr.bf16.mxu0 %v5289_v15 }
 0x342   : > { %v1589_v34 = vpop.permute.xlu0 %1588 }
 0x343   : > { %v1594_v37 = vsel %vm1476_vm5, %v1589_v34, 0 }
 0x346   : > { %v1824_v40 = vpop.permute.xlu0 %1823 }
 0x347   : > { %v1829_v42 = vsel %vm1476_vm5, %v1824_v40, 0 }
 0x3ab   : > { %v1517_v19 = vpop.f32.mrb[4].mxu0 }
 0x3ac   : > { %v1523_v20 = vsel %vm5707_vm10, -1e+18, %v1517_v19  ;;  %v4578_v21 = vpop.f32.mrb[5].mxu0 }
 0x3ad   : > { %v1520_v22 = vpop.f32.mrb[6].mxu0  ;;  %v1524_v23 = vsel %vm1476_vm5, %v1523_v20, -inf }
 0x3ae   : > { %1525 = vmax.xlane.f32.xlu1 %v1524_v23  ;;  %v4579_v24 = vpop.f32.mrb[7].mxu0 }
 0x43b   : > { %v1526_v25 = vpop.xlane.xlu1 %1525 }
 0x43c   : > { %v1527_v26 = vsub.f32 %v1523_v20, %v1526_v25 }
 0x43e   : > { %v1528_v27 = vmul.f32 1.442695, %v1527_v26 }
 0x440   : > { %5102 = vpow2.f32 %v1528_v27 }
 0x44a   : > { %v5103_v28 = vpop.eup %5102 }
 0x44b   : > { %v1530_v29 = vsel %vm1476_vm5, %v5103_v28, 0.0 }
 0x44c   : > { %1531 = vadd.xlane.f32.xlu1 %v1530_v29 }
 0x45d   : > { %1585 = vrot.lane.b32.xlu1 %v1473_v8, %s5292_s10 }
 0x461   : > { %1706 = vrot.lane.b32.xlu1 %v1474_v0, %s5294_s7 }
 0x465   : > { %1704 = vrot.lane.b32.xlu1 %v1473_v8, %s5294_s7 }
 0x469   : > { %1821 = vrot.lane.b32.xlu1 %v1473_v8, %s5293_s13 }
 0x4d9   : > { %v1532_v30 = vpop.xlane.xlu1 %1531 }
 0x4da   : > { %5104 = vrcp.f32 %v1532_v30 }
 0x4dd   : > { %v1586_v36 = vpop.permute.xlu1 %1585 }
 0x4e1   : > { %v1707_v38 = vpop.permute.xlu1 %1706 }
 0x4e2   : > { %v1712_v39 = vsel %vm1476_vm5, %v1707_v38, 0 }
 0x4e4   : > { %v5105_v31 = vpop.eup %5104 }
 0x4e5   : > { %v1534_v33 = vmul.f32 %v5105_v31, %v5103_v28  ;;  %v1705_v41 = vpop.permute.xlu1 %1704 }
 0x4e7   : > { %v1535_v35 = vpack.c.bf16 %v1534_v33, %v1534_v33 }
 0x4e9   : > { %4583 = vmatmul.mubr.msk.bf16.vlgmr.msra.gmra.mrb[8].mxu0 %vm1476_vm5, %v1535_v35  ;;  %v1822_v43 = vpop.permute.xlu1 %1821 }
 0x4ea   : > { %4587 = vmatpush3.bf16.xpose.msra.mxu0 %v1594_v37  ;;  %4588 = vmatprep.mubr.msk.bf16.mxu0 %vm5291_vm2, %v5289_v15 }
 0x4eb   : > { %4598 = vmatprep.subr.bf16.mxu0 %v5289_v15 }
 0x4f1   : > { %4589 = vmatmul.mubr.msk.bf16.vlgmr.msra.gmra.mrb[12].mxu0 %vm1476_vm5, %v1586_v36 }
 0x4f2   : > { %4599 = vmatpush3.bf16.xpose.msra.mxu0 %v1712_v39  ;;  %4600 = vmatprep.mubr.msk.bf16.mxu0 %vm5291_vm2, %v5289_v15 }
 0x4f3   : > { %4610 = vmatprep.subr.bf16.mxu0 %v5289_v15 }
 0x4f9   : > { %4601 = vmatmul.mubr.msk.bf16.vlgmr.msra.gmra.mrb[16].mxu0 %vm1476_vm5, %v1705_v41 }
 0x4fa   : > { %4611 = vmatpush3.bf16.xpose.msra.mxu0 %v1829_v42  ;;  %4612 = vmatprep.mubr.msk.bf16.mxu0 %vm5291_vm2, %v5289_v15 }
 0x4fb   : > { %4622 = vmatprep.subr.bf16.mxu0 %v5289_v15 }
 0x501   : > { %4613 = vmatmul.mubr.msk.bf16.vlgmr.msra.gmra.mrb[20].mxu0 %vm1476_vm5, %v1822_v43  ;;  %v5002_v43 = vld [vmem:[%s6483_s26] sm:$0xff]  }
 0x502   : > { %4626 = vmatprep.mubr.msk.bf16.mxu0 %vm5291_vm2, %v5289_v15  ;;  %4623 = vmatpush3.bf16.msra.mxu0 %v5002_v43 }
 0x503   : > { %4624 = vmatprep.subr.bf16.mxu0 %v5289_v15 }
 0x5bc   : > { %v1577_v44 = vpop.f32.mrb[8].mxu0 }
 0x5bd   : > { %1583 = vst.msk [vmem:[#allocation3] sm:$0xff] %vm1476_vm5, %v1577_v44  ;;  %v4584_v45 = vpop.f32.mrb[9].mxu0  ;;  %v5003_v44 = vld [vmem:[%s6483_s26 + $0x8] sm:$0xff]   ;;  %s6489_s26 = scalar_lea.vmem %s6488_s24, %s5506_s29  ;;  %s6490_s29 = sld [smem:[#allocation27_spill]] }
 0x5be   : > { %v1580_v46 = vpop.f32.mrb[10].mxu0  ;;  %4625 = vmatpush3.bf16.msra.mxu0 %v5003_v44 }
 0x5bf   : > { %v4585_v47 = vpop.f32.mrb[11].mxu0 }
 0x5c4   : > { %v1630_v48 = vpop.f32.mrb[12].mxu0 }
 0x5c5   : > { %v1636_v49 = vsel %vm5707_vm10, -1e+18, %v1630_v48  ;;  %v4590_v50 = vpop.f32.mrb[13].mxu0 }
 0x5c6   : > { %v1633_v51 = vpop.f32.mrb[14].mxu0  ;;  %v1637_v52 = vsel %vm1476_vm5, %v1636_v49, -inf }
 0x5c7   : > { %1638 = vmax.xlane.f32.xlu0 %v1637_v52  ;;  %v4591_v53 = vpop.f32.mrb[15].mxu0 }
 0x5cc   : > { %v1748_v54 = vpop.f32.mrb[16].mxu0 }
 0x5cd   : > { %v1754_v55 = vsel %vm5707_vm10, -1e+18, %v1748_v54  ;;  %v4602_v56 = vpop.f32.mrb[17].mxu0 }
 0x5ce   : > { %v1751_v57 = vpop.f32.mrb[18].mxu0  ;;  %v1755_v58 = vsel %vm1476_vm5, %v1754_v55, -inf }
 0x5cf   : > { %1756 = vmax.xlane.f32.xlu1 %v1755_v58  ;;  %v4603_v59 = vpop.f32.mrb[19].mxu0  ;;  %v5004_v58 = vld [vmem:[%s5558_s19] ss:$8 sps:$4 sm:$0xff]  }
 0x5d0   : > { %v5006_v59 = vld [vmem:[%s5558_s19 + $0x4] ss:$8 sps:$4 sm:$0xff]  }
 0x5d1   : > { %2285 = vmatprep.subr.bf16.mxu0 %v5006_v59 }
 0x5d4   : > { %v1865_v60 = vpop.f32.mrb[20].mxu0 }
 0x5d5   : > { %v1871_v61 = vsel %vm5707_vm10, -1e+18, %v1865_v60  ;;  %v4614_v62 = vpop.f32.mrb[21].mxu0  ;;  %v5009_v60 = vld [vmem:[%s5558_s19 + $0x14] ss:$8 sps:$4 sm:$0xff]   ;;  %vm5156_vm10 = vmpackc.low %vm5154_vm9, %vm5154_vm9 }
 0x5d6   : > { %v1868_v63 = vpop.f32.mrb[22].mxu0  ;;  %v1872_v0 = vsel %vm1476_vm5, %v1871_v61, -inf  ;;  %v5012_v62 = vld [vmem:[%s5558_s19 + $0x24] ss:$8 sps:$4 sm:$0xff]  }
 0x5d7   : > { %1873 = vmax.xlane.f32.xlu0 %v1872_v0  ;;  %v4615_v1 = vpop.f32.mrb[23].mxu0  ;;  %v5010_v63 = vld [vmem:[%s5558_s19 + $0x20] ss:$8 sps:$4 sm:$0xff]   ;;  %v5015_v0 = vld [vmem:[%s5558_s19 + $0x34] ss:$8 sps:$4 sm:$0xff]  }
 0x5d8   : > { %v5013_v1 = vld [vmem:[%s5558_s19 + $0x30] ss:$8 sps:$4 sm:$0xff]  }
 0x5e0   : > { %1767 = vrot.lane.b32.xlu1 %v5686_v7, %s5294_s7 }
 0x654   : > { %v1639_v2 = vpop.xlane.xlu0 %1638 }
 0x655   : > { %v1640_v3 = vsub.f32 %v1636_v49, %v1639_v2  ;;  %v5018_v2 = vld [vmem:[%s5558_s19 + $0x44] ss:$8 sps:$4 sm:$0xff]  }
 0x657   : > { %v1641_v4 = vmul.f32 1.442695, %v1640_v3  ;;  %v5016_v3 = vld [vmem:[%s5558_s19 + $0x40] ss:$8 sps:$4 sm:$0xff]  }
 0x659   : > { %5106 = vpow2.f32 %v1641_v4  ;;  %v5021_v4 = vld [vmem:[%s5558_s19 + $0x54] ss:$8 sps:$4 sm:$0xff]  }
 0x65c   : > { %v1757_v5 = vpop.xlane.xlu1 %1756 }
 0x65d   : > { %v1758_v6 = vsub.f32 %v1754_v55, %v1757_v5  ;;  %v5019_v5 = vld [vmem:[%s5558_s19 + $0x50] ss:$8 sps:$4 sm:$0xff]  }
 0x65f   : > { %v1759_v8 = vmul.f32 1.442695, %v1758_v6  ;;  %v5024_v6 = vld [vmem:[%s5558_s19 + $0x64] ss:$8 sps:$4 sm:$0xff]  }
 0x660   : > { %v1768_v24 = vpop.permute.xlu1 %1767 }
 0x661   : > { %5108 = vpow2.f32 %v1759_v8  ;;  %v1773_v30 = vsel %vm1539_vm6, %v1768_v24, 0  ;;  %v5022_v8 = vld [vmem:[%s5558_s19 + $0x60] ss:$8 sps:$4 sm:$0xff]   ;;  %v5031_v24 = vld [vmem:[%s6484_s21 + $0x18] sm:$0xff]  }
 0x663   : > { %v5107_v9 = vpop.eup %5106 }
 0x664   : > { %v1874_v10 = vpop.xlane.xlu0 %1873  ;;  %v1643_v11 = vsel %vm1476_vm5, %v5107_v9, 0.0 }
 0x665   : > { %v1875_v14 = vsub.f32 %v1871_v61, %v1874_v10  ;;  %1644 = vadd.xlane.f32.xlu0 %v1643_v11  ;;  %v5007_v61 = vld [vmem:[%s5558_s19 + $0x10] ss:$8 sps:$4 sm:$0xff]   ;;  %v5028_v11 = vld [vmem:[%s6484_s21] sm:$0xff]  }
 0x666   : > { %v5025_v10 = vld [vmem:[%s5558_s19 + $0x70] ss:$8 sps:$4 sm:$0xff]  }
 0x667   : > { %v1876_v16 = vmul.f32 1.442695, %v1875_v14  ;;  %v5029_v14 = vld [vmem:[%s6484_s21 + $0x8] sm:$0xff]  }
 0x669   : > { %5110 = vpow2.f32 %v1876_v16  ;;  %v5030_v16 = vld [vmem:[%s6484_s21 + $0x10] sm:$0xff]  }
 0x66b   : > { %v5109_v17 = vpop.eup %5108 }
 0x66c   : > { %v1761_v18 = vsel %vm1476_vm5, %v5109_v17, 0.0 }
 0x66d   : > { %1762 = vadd.xlane.f32.xlu0 %v1761_v18  ;;  %v5142_v18 = vld [vmem:[%s5623_s22] sm:$0xff] }
 0x673   : > { %v5111_v19 = vpop.eup %5110 }
 0x674   : > { %v1878_v20 = vsel %vm1476_vm5, %v5111_v19, 0.0 }
 0x675   : > { %1879 = vadd.xlane.f32.xlu1 %v1878_v20 }
 0x683   : > { %1650 = vrot.lane.b32.xlu0 %v5686_v7, %s5292_s10 }
 0x686   : > { %1884 = vrot.lane.b32.xlu1 %v5686_v7, %s5293_s13 }
 0x6f2   : > { %v1645_v21 = vpop.xlane.xlu0 %1644 }
 0x6f3   : > { %5112 = vrcp.f32 %v1645_v21 }
 0x6fa   : > { %v1763_v22 = vpop.xlane.xlu0 %1762 }
 0x6fb   : > { %5114 = vrcp.f32 %v1763_v22 }
 0x6fd   : > { %v5113_v23 = vpop.eup %5112 }
 0x6fe   : > { %v1647_v25 = vmul.f32 %v5113_v23, %v5107_v9  ;;  %v1651_v26 = vpop.permute.xlu0 %1650  ;;  %v5027_v9 = vld [vmem:[%s5558_s19 + $0x74] ss:$8 sps:$4 sm:$0xff]  }
 0x6ff   : > { %v1656_v27 = vsel %vm1539_vm6, %v1651_v26, 0  ;;  %v5033_v26 = vld [vmem:[%s6485_s11] sm:$0xff]  }
 0x700   : > { %4593 = vmatpush3.bf16.msra.mxu1 %v1656_v27  ;;  %v1648_v28 = vpack.c.bf16 %v1647_v25, %v1647_v25  ;;  %v5032_v25 = vld [vmem:[%s6484_s21 + $0x20] sm:$0xff]   ;;  %v5034_v27 = vld [vmem:[%s6485_s11 + $0x8] sm:$0xff]  }
 0x701   : > { %4604 = vmatprep.subr.bf16.mxu1 %v5289_v15 }
 0x702   : > { %v1880_v29 = vpop.xlane.xlu1 %1879 }
 0x703   : > { %5116 = vrcp.f32 %v1880_v29  ;;  %4595 = vmatmul.mubr.msk.bf16.vlgmr.msra.gmra.mrb[4].mxu1 %vm1476_vm5, %v1648_v28  ;;  %v5035_v28 = vld [vmem:[%s6484_s21 + $0x28] sm:$0xff]   ;;  %v5036_v29 = vld [vmem:[%s6485_s11 + $0x10] sm:$0xff]  }
 0x704   : > { %4605 = vmatpush3.bf16.msra.mxu1 %v1773_v30  ;;  %4606 = vmatprep.mubr.msk.bf16.mxu1 %vm5291_vm2, %v5289_v15  ;;  %v5037_v30 = vld [vmem:[%s6485_s11 + $0x18] sm:$0xff]  }
 0x705   : > { %v5115_v7 = vpop.eup %5114  ;;  %4616 = vmatprep.subr.bf16.mxu1 %v5289_v15 }
 0x706   : > { %v1765_v31 = vmul.f32 %v5115_v7, %v5109_v17  ;;  %v1885_v33 = vpop.permute.xlu1 %1884  ;;  %v5038_v7 = vld [vmem:[%s6484_s21 + $0x30] sm:$0xff]  }
 0x707   : > { %v1890_v35 = vsel %vm1539_vm6, %v1885_v33, 0  ;;  %v5040_v33 = vld [vmem:[%s6485_s11 + $0x28] sm:$0xff]   ;;  %vm3205_vm6 = vcmp.lt.s32.totalorder %v5700_v12, 1 }
 0x708   : > { %v1766_v34 = vpack.c.bf16 %v1765_v31, %v1765_v31  ;;  %v5039_v31 = vld [vmem:[%s6485_s11 + $0x20] sm:$0xff]  }
 0x70b   : > { %4607 = vmatmul.mubr.msk.bf16.vlgmr.msra.gmra.mrb[8].mxu1 %vm1476_vm5, %v1766_v34  ;;  %v5041_v34 = vld [vmem:[%s6484_s21 + $0x38] sm:$0xff]   ;;  %s6494_s21 = sld [smem:[#allocation41_spill]] }
 0x70c   : > { %4617 = vmatpush3.bf16.msra.mxu1 %v1890_v35  ;;  %4618 = vmatprep.mubr.msk.bf16.mxu1 %vm5291_vm2, %v5289_v15  ;;  %v5042_v35 = vld [vmem:[%s6485_s11 + $0x30] sm:$0xff]  }
 0x70d   : > { %v5117_v36 = vpop.eup %5116  ;;  %4630 = vmatprep.subr.bf16.mxu1 %v5289_v15 }
 0x70e   : > { %v1882_v37 = vmul.f32 %v5117_v36, %v5111_v19  ;;  %v5043_v36 = vld [vmem:[%s6485_s11 + $0x38] sm:$0xff]  }
 0x710   : > { %v1883_v38 = vpack.c.bf16 %v1882_v37, %v1882_v37 }
 0x711   : > { %s6495_s11 = scalar_lea.vmem %s6494_s21, %s5529_s17 }
 0x713   : > { %4619 = vmatmul.mubr.msk.bf16.vlgmr.msra.gmra.mrb[12].mxu1 %vm1476_vm5, %v1883_v38 }
 0x714   : > { %4646 = vmatprep.mubr.msk.bf16.mxu1 %vm5291_vm2, %v5289_v15  ;;  %4631 = vmatpush3.bf16.msra.mxu1 %v5033_v26 }
 0x715   : > { %4632 = vmatprep.subr.bf16.mxu1 %v5289_v15 }
 0x718   : > { %4633 = vmatpush3.bf16.msra.mxu1 %v5034_v27 }
 0x719   : > { %4634 = vmatprep.subr.bf16.mxu1 %v5289_v15 }
 0x71c   : > { %4635 = vmatpush3.bf16.msra.mxu1 %v5036_v29 }
 0x71d   : > { %4636 = vmatprep.subr.bf16.mxu1 %v5289_v15 }
 0x720   : > { %4637 = vmatpush3.bf16.msra.mxu1 %v5037_v30 }
 0x721   : > { %4638 = vmatprep.subr.bf16.mxu1 %v5289_v15 }
 0x724   : > { %4639 = vmatpush3.bf16.msra.mxu1 %v5039_v31 }
 0x725   : > { %4640 = vmatprep.subr.bf16.mxu1 %v5289_v15 }
 0x728   : > { %4641 = vmatpush3.bf16.msra.mxu1 %v5040_v33 }
 0x729   : > { %4642 = vmatprep.subr.bf16.mxu1 %v5289_v15 }
 0x72c   : > { %4643 = vmatpush3.bf16.msra.mxu1 %v5042_v35 }
 0x72d   : > { %4644 = vmatprep.subr.bf16.mxu1 %v5289_v15 }
 0x730   : > { %4645 = vmatpush3.bf16.msra.mxu1 %v5043_v36 }
 0x731   : > { %4650 = vmatprep.subr.bf16.mxu1 %v5289_v15 }
 0x7d6   : > { %v1692_v39 = vpop.f32.mrb[4].mxu1 }
 0x7d7   : > { %1699 = vrot.lane.b32.xlu1 %v1692_v39, %s5295_s23  ;;  %v4596_v40 = vpop.f32.mrb[5].mxu1 }
 0x7d8   : > { %v1695_v41 = vpop.f32.mrb[6].mxu1 }
 0x7d9   : > { %v4597_v42 = vpop.f32.mrb[7].mxu1 }
 0x7de   : > { %v1809_v45 = vpop.f32.mrb[8].mxu1 }
 0x7df   : > { %1816 = vrot.lane.b32.xlu0 %v1809_v45, %s5296_s18  ;;  %v4608_v46 = vpop.f32.mrb[9].mxu1 }
 0x7e0   : > { %v1812_v47 = vpop.f32.mrb[10].mxu1 }
 0x7e1   : > { %v4609_v48 = vpop.f32.mrb[11].mxu1 }
 0x7e6   : > { %v1926_v49 = vpop.f32.mrb[12].mxu1 }
 0x7e7   : > { %1933 = vrot.lane.b32.xlu1 %v1926_v49, %s5297_s1  ;;  %v4620_v50 = vpop.f32.mrb[13].mxu1 }
 0x7e8   : > { %v1929_v51 = vpop.f32.mrb[14].mxu1 }
 0x7e9   : > { %v4621_v52 = vpop.f32.mrb[15].mxu1 }
 0x849   : > { %v1700_v53 = vpop.permute.xlu1 %1699 }
 0x84a   : > { %1703 = vst.msk [vmem:[#allocation3] sm:$0xff] %vm1702_vm11, %v1700_v53 }
 0x851   : > { %v1817_v54 = vpop.permute.xlu0 %1816 }
 0x852   : > { %1820 = vst.msk [vmem:[#allocation3] sm:$0xff] %vm1819_vm12, %v1817_v54 }
 0x859   : > { %v1934_v55 = vpop.permute.xlu1 %1933 }
 0x85a   : > { %1937 = vst.msk [vmem:[#allocation3] sm:$0xff] %vm1936_vm13, %v1934_v55 }
 0x861   : > { %v1938_v56 = vld [vmem:[#allocation3] sm:$0xff] }
 0x862   : > { %v1939_v57 = vpack.c.bf16 %v1938_v56, %v1938_v56 }
 0x864   : > { %4627 = vmatmul.mubr.msk.bf16.vlgmr.msra.gmra.mrb[24].mxu0 %vm1952_vm14, %v1939_v57 }
 0x865   : > { %2317 = vmatprep.mubr.bf16.mxu0 %v5290_v32  ;;  %2286 = vmatpush1.bf16.msra.mxu0 %v5004_v58 }
 0x866   : > { %2287 = vmatprep.subr.bf16.mxu0 %v5009_v60 }
 0x869   : > { %2288 = vmatpush1.bf16.msra.mxu0 %v5007_v61 }
 0x86a   : > { %2289 = vmatprep.subr.bf16.mxu0 %v5012_v62 }
 0x86d   : > { %2290 = vmatpush1.bf16.msra.mxu0 %v5010_v63 }
 0x86e   : > { %2291 = vmatprep.subr.bf16.mxu0 %v5015_v0 }
 0x871   : > { %2292 = vmatpush1.bf16.msra.mxu0 %v5013_v1 }
 0x872   : > { %2293 = vmatprep.subr.bf16.mxu0 %v5018_v2 }
 0x875   : > { %2294 = vmatpush1.bf16.msra.mxu0 %v5016_v3 }
 0x876   : > { %2295 = vmatprep.subr.bf16.mxu0 %v5021_v4 }
 0x879   : > { %2296 = vmatpush1.bf16.msra.mxu0 %v5019_v5 }
 0x87a   : > { %2297 = vmatprep.subr.bf16.mxu0 %v5024_v6  ;;  %v4242_v6 = vld [vmem:[%s1068_s20] ss:$0 sm:$0xff] }
 0x87d   : > { %2298 = vmatpush1.bf16.msra.mxu0 %v5022_v8 }
 0x87e   : > { %2299 = vmatprep.subr.bf16.mxu0 %v5027_v9 }
 0x881   : > { %2300 = vmatpush1.bf16.msra.mxu0 %v5025_v10  ;;  %v4243_v10 = vld [vmem:[%s1071_s8] ss:$0 sm:$0xff]  ;;  %s6499_s8 = sld [smem:[#allocation49_spill]] (!%p4341_p5) }
 0x882   : > { %4670 = vmatprep.subr.bf16.mxu0 %v5289_v15 }
 0x884   : > { %2318 = vmatmul.mubr.bf16.vlgmr.msra.gmra.mrb[28].mxu0 %v5028_v11 }
 0x885   : > { %2327 = vmatprep.mubr.bf16.mxu0 %v5290_v32 }
 0x88c   : > { %2328 = vmatmul.mubr.bf16.gmra.mrb[32].mxu0 %v5029_v14 }
 0x88d   : > { %2337 = vmatprep.mubr.bf16.mxu0 %v5290_v32 }
 0x894   : > { %2338 = vmatmul.mubr.bf16.gmra.mrb[36].mxu0 %v5030_v16 }
 0x895   : > { %2347 = vmatprep.mubr.bf16.mxu0 %v5290_v32 }
 0x89c   : > { %2348 = vmatmul.mubr.bf16.gmra.mrb[40].mxu0 %v5031_v24 }
 0x89d   : > { %2357 = vmatprep.mubr.bf16.mxu0 %v5290_v32 }
 0x8a4   : > { %2358 = vmatmul.mubr.bf16.gmra.mrb[44].mxu0 %v5032_v25 }
 0x8a5   : > { %2367 = vmatprep.mubr.bf16.mxu0 %v5290_v32 }
 0x8ac   : > { %2368 = vmatmul.mubr.bf16.gmra.mrb[48].mxu0 %v5035_v28 }
 0x8ad   : > { %2377 = vmatprep.mubr.bf16.mxu0 %v5290_v32 }
 0x8b4   : > { %2378 = vmatmul.mubr.bf16.gmra.mrb[52].mxu0 %v5038_v7 }
 0x8b5   : > { %2387 = vmatprep.mubr.bf16.mxu0 %v5290_v32 }
 0x8bc   : > { %2388 = vmatmul.mubr.bf16.gmra.mrb[56].mxu0 %v5041_v34 }
 0x8bd   : > { %4686 = vmatprep.mubr.msk.bf16.mxu0 %vm5291_vm2, %v5289_v15 }
 0x937   : > { %v1990_v17 = vpop.f32.mrb[24].mxu0 }
 0x938   : > { %v5806_v19 = vadd.f32 %v5142_v18, %v1990_v17  ;;  %v4628_v20 = vpop.f32.mrb[25].mxu0 }
 0x939   : > { %v1993_v21 = vpop.f32.mrb[26].mxu0 }
 0x93a   : > { %1999 = vadd.xlane.f32.xlu0 %v5806_v19  ;;  %v4629_v22 = vpop.f32.mrb[27].mxu0  ;;  %v2002_v23 = vmul.f32 %v5806_v19, %v5806_v19 }
 0x93c   : > { %2003 = vadd.xlane.f32.xlu1 %v2002_v23 }
 0x957   : > { %v2319_v37 = vpop.f32.mrb[28].mxu0 }
 0x958   : > { %v2321_v38 = vpop.f32.mrb[29].mxu0 }
 0x959   : > { %v2323_v39 = vpop.f32.mrb[30].mxu0 }
 0x95a   : > { %v5838_v40 = vpack.c.bf16 %v2323_v39, %v2319_v37  ;;  %v2325_v41 = vpop.f32.mrb[31].mxu0 }
 0x95b   : > { %v5840_v42 = vpack.c.bf16 %v2325_v41, %v2321_v38 }
 0x95c   : > { %2556 = vrot.lane.b32.xlu0 %v5838_v40, %s5292_s10  ;;  %v2424_v17 = vsel %vm1476_vm5, %v5838_v40, 0 }
 0x95d   : > { %4671 = vmatpush3.bf16.msra.mxu0 %v5840_v42 }
 0x95e   : > { %4672 = vmatprep.subr.bf16.mxu0 %v5289_v15 }
 0x95f   : > { %v2329_v43 = vpop.f32.mrb[32].mxu0 }
 0x960   : > { %v2331_v44 = vpop.f32.mrb[33].mxu0 }
 0x961   : > { %v2333_v45 = vpop.f32.mrb[34].mxu0 }
 0x962   : > { %v5846_v46 = vpack.c.bf16 %v2333_v45, %v2329_v43  ;;  %v2335_v47 = vpop.f32.mrb[35].mxu0 }
 0x963   : > { %v5848_v48 = vpack.c.bf16 %v2335_v47, %v2331_v44 }
 0x964   : > { %2558 = vrot.lane.b32.xlu1 %v5846_v46, %s5292_s10  ;;  %v2427_v18 = vsel %vm1476_vm5, %v5846_v46, 0 }
 0x965   : > { %4673 = vmatpush3.bf16.msra.mxu0 %v5848_v48 }
 0x966   : > { %4674 = vmatprep.subr.bf16.mxu0 %v5289_v15 }
 0x967   : > { %v2339_v49 = vpop.f32.mrb[36].mxu0 }
 0x968   : > { %v2341_v50 = vpop.f32.mrb[37].mxu0 }
 0x969   : > { %v2343_v51 = vpop.f32.mrb[38].mxu0 }
 0x96a   : > { %v5854_v52 = vpack.c.bf16 %v2343_v51, %v2339_v49  ;;  %v2345_v53 = vpop.f32.mrb[39].mxu0 }
 0x96b   : > { %v5856_v54 = vpack.c.bf16 %v2345_v53, %v2341_v50 }
 0x96c   : > { %2560 = vrot.lane.b32.xlu0 %v5854_v52, %s5292_s10  ;;  %v2430_v20 = vsel %vm1476_vm5, %v5854_v52, 0 }
 0x96d   : > { %4675 = vmatpush3.bf16.msra.mxu0 %v5856_v54 }
 0x96e   : > { %4676 = vmatprep.subr.bf16.mxu0 %v5289_v15 }
 0x96f   : > { %v2349_v21 = vpop.f32.mrb[40].mxu0 }
 0x970   : > { %v2351_v22 = vpop.f32.mrb[41].mxu0 }
 0x971   : > { %v2353_v23 = vpop.f32.mrb[42].mxu0 }
 0x972   : > { %v5884_v24 = vpack.c.bf16 %v2353_v23, %v2349_v21  ;;  %v2355_v25 = vpop.f32.mrb[43].mxu0 }
 0x973   : > { %v5886_v26 = vpack.c.bf16 %v2355_v25, %v2351_v22 }
 0x974   : > { %2562 = vrot.lane.b32.xlu1 %v5884_v24, %s5292_s10  ;;  %v2433_v27 = vsel %vm1476_vm5, %v5884_v24, 0 }
 0x975   : > { %4677 = vmatpush3.bf16.msra.mxu0 %v5886_v26 }
 0x976   : > { %4678 = vmatprep.subr.bf16.mxu0 %v5289_v15 }
 0x977   : > { %v2359_v28 = vpop.f32.mrb[44].mxu0 }
 0x978   : > { %v2361_v29 = vpop.f32.mrb[45].mxu0 }
 0x979   : > { %v2363_v30 = vpop.f32.mrb[46].mxu0 }
 0x97a   : > { %v5895_v7 = vpack.c.bf16 %v2363_v30, %v2359_v28  ;;  %v2365_v31 = vpop.f32.mrb[47].mxu0  ;;  %v1185_v28 = vld [vmem:[%s6489_s26] sm:$0x1] }
 0x97b   : > { %v5897_v33 = vpack.c.bf16 %v2365_v31, %v2361_v29  ;;  %vm1186_vm1 = vcmp.gt.f32.partialorder %v1185_v28, 0.5 }
 0x97c   : > { %2564 = vrot.lane.b32.xlu0 %v5895_v7, %s5292_s10  ;;  %v2436_v34 = vsel %vm1476_vm5, %v5895_v7, 0  ;;  %v2487_v29 = vsel %vm1186_vm1, 1, %v5290_v32 }
 0x97d   : > { %4679 = vmatpush3.bf16.msra.mxu0 %v5897_v33  ;;  %v5974_v30 = vrot.slane %v2487_v29, %v1181_v13 }
 0x97e   : > { %4680 = vmatprep.subr.bf16.mxu0 %v5289_v15 }
 0x97f   : > { %v2369_v35 = vpop.f32.mrb[48].mxu0  ;;  %vm2492_vm3 = vcmp.eq.s32.totalorder %v5974_v30, 1 }
 0x980   : > { %v2371_v36 = vpop.f32.mrb[49].mxu0 }
 0x981   : > { %v2373_v37 = vpop.f32.mrb[50].mxu0 }
 0x982   : > { %v5906_v38 = vpack.c.bf16 %v2373_v37, %v2369_v35  ;;  %v2375_v39 = vpop.f32.mrb[51].mxu0 }
 0x983   : > { %v5908_v41 = vpack.c.bf16 %v2375_v39, %v2371_v36 }
 0x984   : > { %2566 = vrot.lane.b32.xlu1 %v5906_v38, %s5292_s10  ;;  %v2439_v43 = vsel %vm1476_vm5, %v5906_v38, 0 }
 0x985   : > { %4681 = vmatpush3.bf16.msra.mxu0 %v5908_v41 }
 0x986   : > { %4682 = vmatprep.subr.bf16.mxu0 %v5289_v15 }
 0x987   : > { %v2379_v44 = vpop.f32.mrb[52].mxu0 }
 0x988   : > { %v2381_v45 = vpop.f32.mrb[53].mxu0 }
 0x989   : > { %v2383_v47 = vpop.f32.mrb[54].mxu0 }
 0x98a   : > { %v5917_v49 = vpack.c.bf16 %v2383_v47, %v2379_v44  ;;  %v2385_v50 = vpop.f32.mrb[55].mxu0 }
 0x98b   : > { %v5919_v51 = vpack.c.bf16 %v2385_v50, %v2381_v45 }
 0x98c   : > { %2568 = vrot.lane.b32.xlu0 %v5917_v49, %s5292_s10  ;;  %v2442_v53 = vsel %vm1476_vm5, %v5917_v49, 0 }
 0x98d   : > { %4683 = vmatpush3.bf16.msra.mxu0 %v5919_v51 }
 0x98e   : > { %4684 = vmatprep.subr.bf16.mxu0 %v5289_v15 }
 0x9c7   : > { %v2000_v55 = vpop.xlane.xlu0 %1999 }
 0x9c8   : > { %v2001_v56 = vmul.f32 0.03125, %v2000_v55  ;;  %v2389_v55 = vpop.f32.mrb[56].mxu0 }
 0x9c9   : > { %v2004_v59 = vpop.xlane.xlu1 %2003 }
 0x9ca   : > { %v2005_v57 = vmul.f32 32.0, %v2001_v56  ;;  %v2020_v5 = vsub.f32 %v5806_v19, %v2001_v56 }
 0x9cc   : > { %v2006_v58 = vmul.f32 %v2005_v57, %v2001_v56  ;;  %v2027_v8 = vmul.f32 %v4242_v6, %v2020_v5  ;;  %v2391_v56 = vpop.f32.mrb[57].mxu0 }
 0x9cd   : > { %v2393_v57 = vpop.f32.mrb[58].mxu0 }
 0x9ce   : > { %v2007_v60 = vsub.f32 %v2004_v59, %v2006_v58  ;;  %v5928_v58 = vpack.c.bf16 %v2393_v57, %v2389_v55  ;;  %v2395_v59 = vpop.f32.mrb[59].mxu0 }
 0x9d0   : > { %v2008_v61 = vmax.f32 %v2007_v60, 0.0  ;;  %v5930_v60 = vpack.c.bf16 %v2395_v59, %v2391_v56  ;;  %2570 = vrot.lane.b32.xlu1 %v5928_v58, %s5292_s10 }
 0x9d2   : > { %v2009_v62 = vmul.f32 0.032258064, %v2008_v61  ;;  %v2445_v61 = vsel %vm1476_vm5, %v5928_v58, 0  ;;  %4685 = vmatpush3.bf16.msra.mxu0 %v5930_v60 }
 0x9d3   : > { %4710 = vmatprep.subr.bf16.mxu0 %v5289_v15 }
 0x9d4   : > { %5118 = vrsqrt.f32 %v2009_v62  ;;  %vm2012_vm15 = vcmp.eq.f32.partialorder %v2009_v62, inf  ;;  %v2015_v1 = vand.u32 2147483648, %v2009_v62  ;;  %vm2014_vm0 = vcmp.eq.f32.partialorder %v2009_v62, 0.0 }
 0x9d6   : > { %v2559_v6 = vpop.permute.xlu1 %2558 }
 0x9de   : > { %v5119_v63 = vpop.eup %5118 }
 0x9df   : > { %v2011_v0 = vmul.f32 %v5119_v63, %v2009_v62  ;;  %v2557_v63 = vpop.permute.xlu0 %2556 }
 0x9e0   : > { %v2576_v5 = vsel %vm1476_vm5, %v2557_v63, 0 }
 0x9e1   : > { %v2013_v2 = vsel %vm2012_vm15, %v2009_v62, %v2011_v0 }
 0x9e2   : > { %v2016_v3 = vsel %vm2014_vm0, %v2015_v1, %v2013_v2 }
 0x9e3   : > { %v2017_v4 = vadd.f32 1e-06, %v2016_v3 }
 0x9e5   : > { %5120 = vrcp.f32 %v2017_v4 }
 0x9ef   : > { %v5121_v9 = vpop.eup %5120 }
 0x9f0   : > { %v2028_v11 = vmul.f32 %v5121_v9, %v2027_v8  ;;  %v2579_v8 = vsel %vm1476_vm5, %v2559_v6, 0  ;;  %v2561_v9 = vpop.permute.xlu0 %2560 }
 0x9f2   : > { %v2035_v14 = vadd.f32 %v4243_v10, %v2028_v11  ;;  %v2582_v10 = vsel %vm1476_vm5, %v2561_v9, 0  ;;  %v2563_v11 = vpop.permute.xlu1 %2562 }
 0x9f4   : > { %v2036_v16 = vpack.c.bf16 %v2035_v14, %v2035_v14  ;;  %v2585_v14 = vsel %vm1476_vm5, %v2563_v11, 0 }
 0x9f6   : > { %4647 = vmatmul.mubr.bf16.vlgmr.msra.gmra.mrb[16].mxu1 %v2036_v16  ;;  %v2565_v16 = vpop.permute.xlu0 %2564 }
 0x9f7   : > { %4651 = vmatpush3.bf16.xpose.msra.mxu1 %v2424_v17  ;;  %4666 = vmatprep.mubr.msk.bf16.mxu1 %vm5291_vm2, %v5289_v15  ;;  %v2588_v17 = vsel %vm1476_vm5, %v2565_v16, 0 }
 0x9f8   : > { %4652 = vmatprep.subr.bf16.mxu1 %v5289_v15 }
 0x9fe   : > { %v2569_v21 = vpop.permute.xlu0 %2568 }
 0x9ff   : > { %4653 = vmatpush3.bf16.xpose.msra.mxu1 %v2427_v18  ;;  %v2567_v18 = vpop.permute.xlu1 %2566  ;;  %v2594_v22 = vsel %vm1476_vm5, %v2569_v21, 0 }
 0xa00   : > { %4654 = vmatprep.subr.bf16.mxu1 %v5289_v15 }
 0xa07   : > { %4655 = vmatpush3.bf16.xpose.msra.mxu1 %v2430_v20  ;;  %v2591_v20 = vsel %vm1476_vm5, %v2567_v18, 0 }
 0xa08   : > { %4656 = vmatprep.subr.bf16.mxu1 %v5289_v15 }
 0xa0f   : > { %4657 = vmatpush3.bf16.xpose.msra.mxu1 %v2433_v27 }
 0xa10   : > { %4658 = vmatprep.subr.bf16.mxu1 %v5289_v15 }
 0xa17   : > { %4659 = vmatpush3.bf16.xpose.msra.mxu1 %v2436_v34 }
 0xa18   : > { %4660 = vmatprep.subr.bf16.mxu1 %v5289_v15 }
 0xa1f   : > { %4661 = vmatpush3.bf16.xpose.msra.mxu1 %v2439_v43 }
 0xa20   : > { %4662 = vmatprep.subr.bf16.mxu1 %v5289_v15 }
 0xa27   : > { %4663 = vmatpush3.bf16.xpose.msra.mxu1 %v2442_v53 }
 0xa28   : > { %4664 = vmatprep.subr.bf16.mxu1 %v5289_v15 }
 0xa2f   : > { %4665 = vmatpush3.bf16.xpose.msra.mxu1 %v2445_v61 }
 0xa30   : > { %4690 = vmatprep.subr.bf16.mxu1 %v5289_v15 }
 0xa42   : > { %v2571_v23 = vpop.permute.xlu1 %2570 }
 0xa43   : > { %v2597_v25 = vsel %vm1476_vm5, %v2571_v23, 0 }
 0xac9   : > { %v2135_v62 = vpop.f32.mrb[16].mxu1 }
 0xaca   : > { %v2402_v0 = vmul.f32 0.35355338, %v2135_v62  ;;  %v4648_v1 = vpop.f32.mrb[17].mxu1 }
 0xacb   : > { %v2138_v2 = vpop.f32.mrb[18].mxu1 }
 0xacc   : > { %v5939_v3 = vpack.c.bf16 %v2402_v0, %v2402_v0  ;;  %v4649_v4 = vpop.f32.mrb[19].mxu1 }
 0xace   : > { %2546 = vrot.lane.b32.xlu0 %v5939_v3, %s5292_s10  ;;  %4667 = vmatmul.mubr.msk.bf16.vlgmr.msra.gmra.mrb[20].mxu1 %vm1476_vm5, %v5939_v3 }
 0xacf   : > { %4691 = vmatpush3.bf16.xpose.msra.mxu1 %v2576_v5  ;;  %4706 = vmatprep.mubr.msk.bf16.mxu1 %vm5291_vm2, %v5289_v15 }
 0xad0   : > { %4692 = vmatprep.subr.bf16.mxu1 %v5289_v15 }
 0xad7   : > { %4693 = vmatpush3.bf16.xpose.msra.mxu1 %v2579_v8 }
 0xad8   : > { %4694 = vmatprep.subr.bf16.mxu1 %v5289_v15 }
 0xadf   : > { %4695 = vmatpush3.bf16.xpose.msra.mxu1 %v2582_v10 }
 0xae0   : > { %4696 = vmatprep.subr.bf16.mxu1 %v5289_v15 }
 0xae7   : > { %4697 = vmatpush3.bf16.xpose.msra.mxu1 %v2585_v14 }
 0xae8   : > { %4698 = vmatprep.subr.bf16.mxu1 %v5289_v15 }
 0xaef   : > { %4699 = vmatpush3.bf16.xpose.msra.mxu1 %v2588_v17 }
 0xaf0   : > { %4700 = vmatprep.subr.bf16.mxu1 %v5289_v15 }
 0xaf7   : > { %4701 = vmatpush3.bf16.xpose.msra.mxu1 %v2591_v20 }
 0xaf8   : > { %4702 = vmatprep.subr.bf16.mxu1 %v5289_v15 }
 0xaff   : > { %4703 = vmatpush3.bf16.xpose.msra.mxu1 %v2594_v22 }
 0xb00   : > { %4704 = vmatprep.subr.bf16.mxu1 %v5289_v15 }
 0xb07   : > { %4705 = vmatpush3.bf16.xpose.msra.mxu1 %v2597_v25 }
 0xb08   : > { %4750 = vmatprep.subr.bf16.mxu1 %v5289_v15 }
 0xb40   : > { %v2547_v27 = vpop.permute.xlu0 %2546 }
 0xb41   : > { %4707 = vmatmul.mubr.msk.bf16.vlgmr.msra.gmra.mrb[24].mxu1 %vm1476_vm5, %v2547_v27 }
 0xb42   : > { %4766 = vmatprep.mubr.msk.bf16.mxu1 %vm5291_vm2, %v5289_v15 }
 0xba1   : > { %v2481_v31 = vpop.f32.mrb[20].mxu1 }
 0xba2   : > { %v4668_v34 = vpop.f32.mrb[21].mxu1  ;;  %v2493_v35 = vsel %vm2492_vm3, -1e+18, %v2481_v31 }
 0xba3   : > { %2494 = vmax.xlane.f32.xlu1 %v2493_v35  ;;  %v2484_v36 = vpop.f32.mrb[22].mxu1 }
 0xba4   : > { %v4669_v37 = vpop.f32.mrb[23].mxu1 }
 0xbb4   : > { %2660 = vrot.lane.b32.xlu1 %v5848_v48, %s5292_s10 }
 0xc14   : > { %v2633_v39 = vpop.f32.mrb[24].mxu1 }
 0xc15   : > { %v4708_v43 = vpop.f32.mrb[25].mxu1  ;;  %v2639_v32 = vsel %vm2492_vm3, -1e+18, %v2633_v39 }
 0xc16   : > { %2640 = vmax.xlane.f32.xlu0 %v2639_v32  ;;  %v2636_v13 = vpop.f32.mrb[26].mxu1 }
 0xc17   : > { %v4709_v44 = vpop.f32.mrb[27].mxu1 }
 0xc30   : > { %v2495_v45 = vpop.xlane.xlu1 %2494 }
 0xc31   : > { %v2496_v47 = vsub.f32 %v2493_v35, %v2495_v45 }
 0xc33   : > { %v2497_v50 = vmul.f32 1.442695, %v2496_v47 }
 0xc34   : > { %v2661_v4 = vpop.permute.xlu1 %2660 }
 0xc35   : > { %5122 = vpow2.f32 %v2497_v50 }
 0xc3f   : > { %v5123_v53 = vpop.eup %5122 }
 0xc40   : > { %2499 = vadd.xlane.f32.xlu0 %v5123_v53 }
 0xc56   : > { %2658 = vrot.lane.b32.xlu0 %v5840_v42, %s5292_s10 }
 0xc5a   : > { %2662 = vrot.lane.b32.xlu0 %v5856_v54, %s5292_s10 }
 0xc5e   : > { %2664 = vrot.lane.b32.xlu0 %v5886_v26, %s5292_s10 }
 0xc62   : > { %2666 = vrot.lane.b32.xlu0 %v5897_v33, %s5292_s10 }
 0xc66   : > { %2668 = vrot.lane.b32.xlu0 %v5908_v41, %s5292_s10 }
 0xc6a   : > { %2670 = vrot.lane.b32.xlu0 %v5919_v51, %s5292_s10 }
 0xc6e   : > { %2672 = vrot.lane.b32.xlu0 %v5930_v60, %s5292_s10 }
 0xc72   : > { %2729 = vrot.lane.b32.xlu0 %v5838_v40, %s5294_s7 }
 0xc76   : > { %2731 = vrot.lane.b32.xlu0 %v5846_v46, %s5294_s7 }
 0xc7a   : > { %2735 = vrot.lane.b32.xlu0 %v5884_v24, %s5294_s7 }
 0xc7e   : > { %2737 = vrot.lane.b32.xlu0 %v5895_v7, %s5294_s7 }
 0xc82   : > { %2739 = vrot.lane.b32.xlu0 %v5906_v38, %s5294_s7 }
 0xc86   : > { %2741 = vrot.lane.b32.xlu0 %v5917_v49, %s5294_s7 }
 0xc8a   : > { %2743 = vrot.lane.b32.xlu0 %v5928_v58, %s5294_s7 }
 0xca3   : > { %v2641_v55 = vpop.xlane.xlu0 %2640 }
 0xca4   : > { %v2642_v56 = vsub.f32 %v2639_v32, %v2641_v55 }
 0xca6   : > { %v2643_v57 = vmul.f32 1.442695, %v2642_v56 }
 0xca8   : > { %5124 = vpow2.f32 %v2643_v57 }
 0xcb2   : > { %v5125_v59 = vpop.eup %5124 }
 0xcb3   : > { %2645 = vadd.xlane.f32.xlu1 %v5125_v59 }
 0xcc4   : > { %2733 = vrot.lane.b32.xlu1 %v5854_v52, %s5294_s7 }
 0xcc8   : > { %2727 = vrot.lane.b32.xlu1 %v5939_v3, %s5294_s7 }
 0xccc   : > { %2823 = vrot.lane.b32.xlu1 %v5840_v42, %s5294_s7 }
 0xccd   : > { %v2500_v61 = vpop.xlane.xlu0 %2499 }
 0xcce   : > { %5126 = vrcp.f32 %v2500_v61 }
 0xcd0   : > { %2825 = vrot.lane.b32.xlu1 %v5848_v48, %s5294_s7 }
 0xcd1   : > { %v2659_v62 = vpop.permute.xlu0 %2658 }
 0xcd4   : > { %2829 = vrot.lane.b32.xlu1 %v5886_v26, %s5294_s7 }
 0xcd5   : > { %v2663_v1 = vpop.permute.xlu0 %2662 }
 0xcd8   : > { %v5127_v63 = vpop.eup %5126  ;;  %2837 = vrot.lane.b32.xlu1 %v5930_v60, %s5294_s7 }
 0xcd9   : > { %v2502_v0 = vmul.f32 %v5127_v63, %v5123_v53  ;;  %v2665_v5 = vpop.permute.xlu0 %2664 }
 0xcdb   : > { %v2503_v2 = vpack.c.bf16 %v2502_v0, %v2502_v0 }
 0xcdd   : > { %4687 = vmatmul.mubr.bf16.vlgmr.msra.gmra.mrb[60].mxu0 %v2503_v2  ;;  %v2667_v6 = vpop.permute.xlu0 %2666 }
 0xcde   : > { %4711 = vmatpush3.bf16.msra.mxu0 %v2659_v62  ;;  %4726 = vmatprep.mubr.msk.bf16.mxu0 %vm5291_vm2, %v5289_v15 }
 0xcdf   : > { %4712 = vmatprep.subr.bf16.mxu0 %v5289_v15 }
 0xce1   : > { %v2669_v8 = vpop.permute.xlu0 %2668 }
 0xce2   : > { %4713 = vmatpush3.bf16.msra.mxu0 %v2661_v4 }
 0xce3   : > { %4714 = vmatprep.subr.bf16.mxu0 %v5289_v15 }
 0xce5   : > { %v2671_v9 = vpop.permute.xlu0 %2670 }
 0xce6   : > { %4715 = vmatpush3.bf16.msra.mxu0 %v2663_v1 }
 0xce7   : > { %4716 = vmatprep.subr.bf16.mxu0 %v5289_v15 }
 0xce9   : > { %v2673_v10 = vpop.permute.xlu0 %2672 }
 0xcea   : > { %4717 = vmatpush3.bf16.msra.mxu0 %v2665_v5 }
 0xceb   : > { %4718 = vmatprep.subr.bf16.mxu0 %v5289_v15 }
 0xced   : > { %v2730_v21 = vpop.permute.xlu0 %2729 }
 0xcee   : > { %4719 = vmatpush3.bf16.msra.mxu0 %v2667_v6  ;;  %v2749_v23 = vsel %vm1476_vm5, %v2730_v21, 0 }
 0xcef   : > { %4720 = vmatprep.subr.bf16.mxu0 %v5289_v15 }
 0xcf1   : > { %v2732_v27 = vpop.permute.xlu0 %2731 }
 0xcf2   : > { %4721 = vmatpush3.bf16.msra.mxu0 %v2669_v8  ;;  %v2752_v28 = vsel %vm1476_vm5, %v2732_v27, 0 }
 0xcf3   : > { %4722 = vmatprep.subr.bf16.mxu0 %v5289_v15 }
 0xcf5   : > { %v2736_v31 = vpop.permute.xlu0 %2735 }
 0xcf6   : > { %4723 = vmatpush3.bf16.msra.mxu0 %v2671_v9  ;;  %v2758_v34 = vsel %vm1476_vm5, %v2736_v31, 0 }
 0xcf7   : > { %4724 = vmatprep.subr.bf16.mxu0 %v5289_v15 }
 0xcf9   : > { %v2738_v35 = vpop.permute.xlu0 %2737 }
 0xcfa   : > { %4725 = vmatpush3.bf16.msra.mxu0 %v2673_v10  ;;  %v2761_v36 = vsel %vm1476_vm5, %v2738_v35, 0 }
 0xcfb   : > { %4730 = vmatprep.subr.bf16.mxu0 %v5289_v15 }
 0xcfd   : > { %v2740_v37 = vpop.permute.xlu0 %2739 }
 0xcfe   : > { %v2764_v39 = vsel %vm1476_vm5, %v2740_v37, 0 }
 0xd01   : > { %v2742_v43 = vpop.permute.xlu0 %2741 }
 0xd02   : > { %v2767_v32 = vsel %vm1476_vm5, %v2742_v43, 0 }
 0xd05   : > { %v2744_v13 = vpop.permute.xlu0 %2743 }
 0xd06   : > { %v2770_v44 = vsel %vm1476_vm5, %v2744_v13, 0 }
 0xd40   : > { %v2646_v11 = vpop.xlane.xlu1 %2645 }
 0xd41   : > { %5128 = vrcp.f32 %v2646_v11 }
 0xd44   : > { %v2734_v14 = vpop.permute.xlu1 %2733 }
 0xd45   : > { %v2755_v29 = vsel %vm1476_vm5, %v2734_v14, 0 }
 0xd48   : > { %v2728_v16 = vpop.permute.xlu1 %2727 }
 0xd4b   : > { %v5129_v17 = vpop.eup %5128 }
 0xd4c   : > { %v2824_v18 = vpop.permute.xlu1 %2823  ;;  %v2648_v20 = vmul.f32 %v5129_v17, %v5125_v59 }
 0xd4d   : > { %4751 = vmatpush3.bf16.msra.mxu1 %v2824_v18 }
 0xd4e   : > { %4752 = vmatprep.subr.bf16.mxu1 %v5289_v15  ;;  %v2649_v22 = vpack.c.bf16 %v2648_v20, %v2648_v20 }
 0xd50   : > { %v2826_v25 = vpop.permute.xlu1 %2825  ;;  %4727 = vmatmul.mubr.bf16.vlgmr.msra.gmra.mrb[64].mxu0 %v2649_v22 }
 0xd51   : > { %4731 = vmatpush3.bf16.xpose.msra.mxu0 %v2749_v23  ;;  %4753 = vmatpush3.bf16.msra.mxu1 %v2826_v25 }
 0xd52   : > { %4732 = vmatprep.subr.bf16.mxu0 %v5289_v15  ;;  %4746 = vmatprep.mubr.msk.bf16.mxu0 %vm5291_vm2, %v5289_v15 }
 0xd53   : > { %4754 = vmatprep.subr.bf16.mxu1 %v5289_v15 }
 0xd54   : > { %v2830_v8 = vpop.permute.xlu1 %2829 }
 0xd58   : > { %v2838_v11 = vpop.permute.xlu1 %2837 }
 0xd59   : > { %4733 = vmatpush3.bf16.xpose.msra.mxu0 %v2752_v28 }
 0xd5a   : > { %4734 = vmatprep.subr.bf16.mxu0 %v5289_v15 }
 0xd61   : > { %4735 = vmatpush3.bf16.xpose.msra.mxu0 %v2755_v29 }
 0xd62   : > { %4736 = vmatprep.subr.bf16.mxu0 %v5289_v15 }
 0xd69   : > { %4737 = vmatpush3.bf16.xpose.msra.mxu0 %v2758_v34 }
 0xd6a   : > { %4738 = vmatprep.subr.bf16.mxu0 %v5289_v15 }
 0xd71   : > { %4739 = vmatpush3.bf16.xpose.msra.mxu0 %v2761_v36 }
 0xd72   : > { %4740 = vmatprep.subr.bf16.mxu0 %v5289_v15 }
 0xd79   : > { %4741 = vmatpush3.bf16.xpose.msra.mxu0 %v2764_v39 }
 0xd7a   : > { %4742 = vmatprep.subr.bf16.mxu0 %v5289_v15 }
 0xd81   : > { %4743 = vmatpush3.bf16.xpose.msra.mxu0 %v2767_v32 }
 0xd82   : > { %4744 = vmatprep.subr.bf16.mxu0 %v5289_v15 }
 0xd89   : > { %4745 = vmatpush3.bf16.xpose.msra.mxu0 %v2770_v44 }
 0xd8a   : > { %4790 = vmatprep.subr.bf16.mxu0 %v5289_v15 }
 0xd90   : > { %4747 = vmatmul.mubr.msk.bf16.vlgmr.msra.gmra.mrb[68].mxu0 %vm1476_vm5, %v2728_v16 }
 0xd91   : > { %4806 = vmatprep.mubr.msk.bf16.mxu0 %vm5291_vm2, %v5289_v15 }
 0xdb0   : > { %v2538_v45 = vpop.f32.mrb[60].mxu0 }
 0xdb1   : > { %2544 = vst.msk [vmem:[#allocation3] sm:$0xff] %vm1476_vm5, %v2538_v45  ;;  %v4688_v47 = vpop.f32.mrb[61].mxu0 }
 0xdb2   : > { %v2541_v50 = vpop.f32.mrb[62].mxu0 }
 0xdb3   : > { %v4689_v53 = vpop.f32.mrb[63].mxu0 }
 0xe23   : > { %v6057_v55 = vpop.f32.mrb[64].mxu0 }
 0xe24   : > { %v4728_v56 = vpop.f32.mrb[65].mxu0 }
 0xe25   : > { %v2719_v57 = vpop.f32.mrb[66].mxu0 }
 0xe26   : > { %v4729_v59 = vpop.f32.mrb[67].mxu0 }
 0xe63   : > { %v2806_v61 = vpop.f32.mrb[68].mxu0 }
 0xe64   : > { %v4748_v62 = vpop.f32.mrb[69].mxu0  ;;  %v2812_v63 = vsel %vm2492_vm3, -1e+18, %v2806_v61 }
 0xe65   : > { %2813 = vmax.xlane.f32.xlu0 %v2812_v63  ;;  %v2809_v0 = vpop.f32.mrb[70].mxu0 }
 0xe66   : > { %v4749_v1 = vpop.f32.mrb[71].mxu0 }
 0xe7b   : > { %2827 = vrot.lane.b32.xlu0 %v5856_v54, %s5294_s7 }
 0xe7f   : > { %2831 = vrot.lane.b32.xlu0 %v5897_v33, %s5294_s7 }
 0xe83   : > { %2833 = vrot.lane.b32.xlu0 %v5908_v41, %s5294_s7 }
 0xe87   : > { %2835 = vrot.lane.b32.xlu0 %v5919_v51, %s5294_s7 }
 0xe8b   : > { %2894 = vrot.lane.b32.xlu0 %v5838_v40, %s5293_s13 }
 0xe8f   : > { %2898 = vrot.lane.b32.xlu0 %v5854_v52, %s5293_s13 }
 0xe93   : > { %2902 = vrot.lane.b32.xlu0 %v5895_v7, %s5293_s13 }
 0xe97   : > { %2906 = vrot.lane.b32.xlu0 %v5917_v49, %s5293_s13 }
 0xe9b   : > { %2892 = vrot.lane.b32.xlu0 %v5939_v3, %s5293_s13 }
 0xe9f   : > { %2988 = vrot.lane.b32.xlu0 %v5840_v42, %s5293_s13 }
 0xea3   : > { %2992 = vrot.lane.b32.xlu0 %v5856_v54, %s5293_s13 }
 0xea7   : > { %2998 = vrot.lane.b32.xlu0 %v5908_v41, %s5293_s13 }
 0xef2   : > { %v2814_v2 = vpop.xlane.xlu0 %2813 }
 0xef3   : > { %v2815_v4 = vsub.f32 %v2812_v63, %v2814_v2 }
 0xef5   : > { %v2816_v5 = vmul.f32 1.442695, %v2815_v4 }
 0xef6   : > { %v2828_v6 = vpop.permute.xlu0 %2827 }
 0xef7   : > { %5130 = vpow2.f32 %v2816_v5  ;;  %4755 = vmatpush3.bf16.msra.mxu1 %v2828_v6 }
 0xef8   : > { %4756 = vmatprep.subr.bf16.mxu1 %v5289_v15 }
 0xefa   : > { %v2832_v9 = vpop.permute.xlu0 %2831 }
 0xefb   : > { %4757 = vmatpush3.bf16.msra.mxu1 %v2830_v8 }
 0xefc   : > { %4758 = vmatprep.subr.bf16.mxu1 %v5289_v15 }
 0xefe   : > { %v2834_v42 = vpop.permute.xlu0 %2833 }
 0xeff   : > { %4759 = vmatpush3.bf16.msra.mxu1 %v2832_v9 }
 0xf00   : > { %4760 = vmatprep.subr.bf16.mxu1 %v5289_v15 }
 0xf01   : > { %v5131_v54 = vpop.eup %5130 }
 0xf02   : > { %2818 = vadd.xlane.f32.xlu1 %v5131_v54  ;;  %v2836_v41 = vpop.permute.xlu0 %2835 }
 0xf03   : > { %4761 = vmatpush3.bf16.msra.mxu1 %v2834_v42 }
 0xf04   : > { %4762 = vmatprep.subr.bf16.mxu1 %v5289_v15 }
 0xf06   : > { %v2895_v10 = vpop.permute.xlu0 %2894 }
 0xf07   : > { %4763 = vmatpush3.bf16.msra.mxu1 %v2836_v41  ;;  %v2914_v27 = vsel %vm1476_vm5, %v2895_v10, 0  ;;  %v5045_v41 = vld [vmem:[%s5553_s30 + $0x8] sm:$0xff]  }
 0xf08   : > { %4764 = vmatprep.subr.bf16.mxu1 %v5289_v15 }
 0xf0a   : > { %v2899_v14 = vpop.permute.xlu0 %2898 }
 0xf0b   : > { %4765 = vmatpush3.bf16.msra.mxu1 %v2838_v11  ;;  %v2920_v31 = vsel %vm1476_vm5, %v2899_v14, 0 }
 0xf0c   : > { %4770 = vmatprep.subr.bf16.mxu1 %v5289_v15 }
 0xf0e   : > { %v2903_v16 = vpop.permute.xlu0 %2902 }
 0xf0f   : > { %v2926_v36 = vsel %vm1476_vm5, %v2903_v16, 0 }
 0xf12   : > { %v2907_v17 = vpop.permute.xlu0 %2906 }
 0xf13   : > { %2896 = vrot.lane.b32.xlu1 %v5846_v46, %s5293_s13  ;;  %v2932_v43 = vsel %vm1476_vm5, %v2907_v17, 0 }
 0xf16   : > { %v2893_v18 = vpop.permute.xlu0 %2892 }
 0xf17   : > { %2900 = vrot.lane.b32.xlu1 %v5884_v24, %s5293_s13 }
 0xf1a   : > { %v2989_v20 = vpop.permute.xlu0 %2988 }
 0xf1b   : > { %2904 = vrot.lane.b32.xlu1 %v5906_v38, %s5293_s13  ;;  %4791 = vmatpush3.bf16.msra.mxu0 %v2989_v20 }
 0xf1c   : > { %4792 = vmatprep.subr.bf16.mxu0 %v5289_v15 }
 0xf1f   : > { %2908 = vrot.lane.b32.xlu1 %v5928_v58, %s5293_s13 }
 0xf8f   : > { %v2819_v21 = vpop.xlane.xlu1 %2818 }
 0xf90   : > { %5132 = vrcp.f32 %v2819_v21 }
 0xf93   : > { %v2897_v28 = vpop.permute.xlu1 %2896 }
 0xf94   : > { %v2917_v29 = vsel %vm1476_vm5, %v2897_v28, 0 }
 0xf97   : > { %v2901_v34 = vpop.permute.xlu1 %2900 }
 0xf98   : > { %v2923_v35 = vsel %vm1476_vm5, %v2901_v34, 0  ;;  %v5048_v34 = vld [vmem:[%s6490_s29] sm:$0xff]  }
 0xf9a   : > { %v5133_v22 = vpop.eup %5132 }
 0xf9b   : > { %v2821_v23 = vmul.f32 %v5133_v22, %v5131_v54  ;;  %v2905_v37 = vpop.permute.xlu1 %2904 }
 0xf9c   : > { %v2929_v39 = vsel %vm1476_vm5, %v2905_v37, 0  ;;  %v5051_v37 = vld [vmem:[%s6490_s29 + $0x8] sm:$0xff]  }
 0xf9d   : > { %v2822_v25 = vpack.c.bf16 %v2821_v23, %v2821_v23 }
 0xf9f   : > { %4767 = vmatmul.mubr.bf16.vlgmr.msra.gmra.mrb[28].mxu1 %v2822_v25  ;;  %v2909_v32 = vpop.permute.xlu1 %2908 }
 0xfa0   : > { %4771 = vmatpush3.bf16.xpose.msra.mxu1 %v2914_v27  ;;  %4786 = vmatprep.mubr.msk.bf16.mxu1 %vm5291_vm2, %v5289_v15  ;;  %v2935_v13 = vsel %vm1476_vm5, %v2909_v32, 0  ;;  %v5054_v32 = vld [vmem:[%s6490_s29 + $0x10] sm:$0xff]  }
 0xfa1   : > { %4772 = vmatprep.subr.bf16.mxu1 %v5289_v15 }
 0xfa8   : > { %4773 = vmatpush3.bf16.xpose.msra.mxu1 %v2917_v29  ;;  %v5046_v29 = vld [vmem:[%s6490_s29 + $0x80] sm:$0xff]  }
 0xfa9   : > { %4774 = vmatprep.subr.bf16.mxu1 %v5289_v15 }
 0xfb0   : > { %4775 = vmatpush3.bf16.xpose.msra.mxu1 %v2920_v31  ;;  %v5049_v31 = vld [vmem:[%s6490_s29 + $0x88] sm:$0xff]  }
 0xfb1   : > { %4776 = vmatprep.subr.bf16.mxu1 %v5289_v15 }
 0xfb8   : > { %4777 = vmatpush3.bf16.xpose.msra.mxu1 %v2923_v35  ;;  %v5050_v35 = vld [vmem:[%s6490_s29 + $0x48] sm:$0xff]  }
 0xfb9   : > { %4778 = vmatprep.subr.bf16.mxu1 %v5289_v15 }
 0xfc0   : > { %4779 = vmatpush3.bf16.xpose.msra.mxu1 %v2926_v36  ;;  %v5052_v36 = vld [vmem:[%s6490_s29 + $0x90] sm:$0xff]  }
 0xfc1   : > { %4780 = vmatprep.subr.bf16.mxu1 %v5289_v15 }
 0xfc8   : > { %4781 = vmatpush3.bf16.xpose.msra.mxu1 %v2929_v39  ;;  %v5053_v39 = vld [vmem:[%s6490_s29 + $0x50] sm:$0xff]  }
 0xfc9   : > { %4782 = vmatprep.subr.bf16.mxu1 %v5289_v15 }
 0xfd0   : > { %4783 = vmatpush3.bf16.xpose.msra.mxu1 %v2932_v43  ;;  %v5055_v43 = vld [vmem:[%s6490_s29 + $0x98] sm:$0xff]  }
 0xfd1   : > { %4784 = vmatprep.subr.bf16.mxu1 %v5289_v15 }
 0xfd8   : > { %4785 = vmatpush3.bf16.xpose.msra.mxu1 %v2935_v13  ;;  %v5056_v13 = vld [vmem:[%s6490_s29 + $0x58] sm:$0xff]  }
 0xfd9   : > { %4818 = vmatprep.subr.bf16.mxu1 %v5289_v15 }
 0xfdf   : > { %4787 = vmatmul.mubr.msk.bf16.vlgmr.msra.gmra.mrb[32].mxu1 %vm1476_vm5, %v2893_v18 }
 0xfe0   : > { %4834 = vmatprep.mubr.msk.bf16.mxu1 %vm5291_vm2, %v5289_v15  ;;  %4819 = vmatpush3.bf16.msra.mxu1 %v5046_v29 }
 0xfe1   : > { %4820 = vmatprep.subr.bf16.mxu1 %v5289_v15 }
 0xfe4   : > { %4821 = vmatpush3.bf16.msra.mxu1 %v5049_v31 }
 0xfe5   : > { %4822 = vmatprep.subr.bf16.mxu1 %v5289_v15 }
 0xfe8   : > { %4823 = vmatpush3.bf16.msra.mxu1 %v5052_v36 }
 0xfe9   : > { %4824 = vmatprep.subr.bf16.mxu1 %v5289_v15 }
 0xfec   : > { %4825 = vmatpush3.bf16.msra.mxu1 %v5055_v43 }
 0xfed   : > { %4826 = vmatprep.subr.bf16.mxu1 %v5289_v15 }
0x1072   : > { %v2881_v44 = vpop.f32.mrb[28].mxu1 }
0x1073   : > { %v4768_v45 = vpop.f32.mrb[29].mxu1 }
0x1074   : > { %v2884_v47 = vpop.f32.mrb[30].mxu1  ;;  %v5057_v45 = vld [vmem:[%s6490_s29 + $0x18] sm:$0xff]  }
0x1075   : > { %v4769_v50 = vpop.f32.mrb[31].mxu1  ;;  %v5059_v47 = vld [vmem:[%s6490_s29 + $0x60] sm:$0xff]  }
0x1076   : > { %v5061_v50 = vld [vmem:[%s6490_s29 + $0xa8] sm:$0xff]  }
0x10b2   : > { %v2971_v53 = vpop.f32.mrb[32].mxu1 }
0x10b3   : > { %v4788_v56 = vpop.f32.mrb[33].mxu1  ;;  %v2977_v57 = vsel %vm2492_vm3, -1e+18, %v2971_v53  ;;  %v5060_v53 = vld [vmem:[%s6490_s29 + $0x20] sm:$0xff]  }
0x10b4   : > { %2978 = vmax.xlane.f32.xlu1 %v2977_v57  ;;  %v2974_v59 = vpop.f32.mrb[34].mxu1  ;;  %v5062_v56 = vld [vmem:[%s6490_s29 + $0x68] sm:$0xff]  }
0x10b5   : > { %v4789_v61 = vpop.f32.mrb[35].mxu1  ;;  %v5064_v59 = vld [vmem:[%s6490_s29 + $0xb0] sm:$0xff]  }
0x10b6   : > { %v5065_v61 = vld [vmem:[%s6490_s29 + $0x70] sm:$0xff]  }
0x10c5   : > { %2990 = vrot.lane.b32.xlu1 %v5848_v48, %s5293_s13  ;;  %v2993_v48 = vpop.permute.xlu0 %2992 }
0x10c9   : > { %2994 = vrot.lane.b32.xlu1 %v5886_v26, %s5293_s13 }
0x10cd   : > { %2996 = vrot.lane.b32.xlu1 %v5897_v33, %s5293_s13 }
0x10d1   : > { %3000 = vrot.lane.b32.xlu1 %v5919_v51, %s5293_s13 }
0x10d5   : > { %2723 = vrot.lane.b32.xlu1 %v6057_v55, %s5295_s23  ;;  %v2999_v55 = vpop.permute.xlu0 %2998 }
0x1141   : > { %v2979_v62 = vpop.xlane.xlu1 %2978 }
0x1142   : > { %v2980_v63 = vsub.f32 %v2977_v57, %v2979_v62  ;;  %v5063_v57 = vld [vmem:[%s6490_s29 + $0x28] sm:$0xff]   ;;  %v5067_v62 = vld [vmem:[%s6490_s29 + $0xb8] sm:$0xff]  }
0x1144   : > { %v2981_v0 = vmul.f32 1.442695, %v2980_v63  ;;  %v5066_v63 = vld [vmem:[%s6490_s29 + $0x30] sm:$0xff]  }
0x1145   : > { %v2991_v1 = vpop.permute.xlu1 %2990 }
0x1146   : > { %5134 = vpow2.f32 %v2981_v0  ;;  %4793 = vmatpush3.bf16.msra.mxu0 %v2991_v1  ;;  %v5068_v0 = vld [vmem:[%s6490_s29 + $0x78] sm:$0xff]  }
0x1147   : > { %4794 = vmatprep.subr.bf16.mxu0 %v5289_v15  ;;  %v5070_v1 = vld [vmem:[%s6490_s29 + $0x38] sm:$0xff]  }
0x1149   : > { %v2995_v2 = vpop.permute.xlu1 %2994 }
0x114a   : > { %4795 = vmatpush3.bf16.msra.mxu0 %v2993_v48 }
0x114b   : > { %4796 = vmatprep.subr.bf16.mxu0 %v5289_v15 }
0x114d   : > { %v2997_v26 = vpop.permute.xlu1 %2996 }
0x114e   : > { %4797 = vmatpush3.bf16.msra.mxu0 %v2995_v2 }
0x114f   : > { %4798 = vmatprep.subr.bf16.mxu0 %v5289_v15 }
0x1150   : > { %v5135_v33 = vpop.eup %5134 }
0x1151   : > { %2983 = vadd.xlane.f32.xlu0 %v5135_v33  ;;  %v3001_v51 = vpop.permute.xlu1 %3000 }
0x1152   : > { %4799 = vmatpush3.bf16.msra.mxu0 %v2997_v26 }
0x1153   : > { %4800 = vmatprep.subr.bf16.mxu0 %v5289_v15 }
0x1155   : > { %v2724_v4 = vpop.permute.xlu1 %2723 }
0x1156   : > { %2726 = vst.msk [vmem:[#allocation3] sm:$0xff] %vm1702_vm11, %v2724_v4  ;;  %4801 = vmatpush3.bf16.msra.mxu0 %v2999_v55  ;;  %vm5299_vm11 = vmmov (!%p4341_p5), 0  }
0x1157   : > { %4802 = vmatprep.subr.bf16.mxu0 %v5289_v15 }
0x115a   : > { %4803 = vmatpush3.bf16.msra.mxu0 %v3001_v51 }
0x115b   : > { %4804 = vmatprep.subr.bf16.mxu0 %v5289_v15 }
0x1167   : > { %3002 = vrot.lane.b32.xlu0 %v5930_v60, %s5293_s13  ;;  %v5044_v60 = vld [vmem:[%s5553_s30] sm:$0xff]   ;;  %s6491_s30 = sld [smem:[#allocation28_spill]] }
0x116b   : > { %2888 = vrot.lane.b32.xlu0 %v2881_v44, %s5296_s18  ;;  %v5058_v44 = vld [vmem:[%s6490_s29 + $0xa0] sm:$0xff]  }
0x116c   : > { %4827 = vmatpush3.bf16.msra.mxu1 %v5058_v44 }
0x116d   : > { %4828 = vmatprep.subr.bf16.mxu1 %v5289_v15  ;;  %v5074_v48 = vld [vmem:[%s6491_s30 + $0x40] sm:$0xff]   ;;  %v5076_v36 = vld [vmem:[%s6491_s30 + $0x88] sm:$0xff]   ;;  %v5080_v44 = vld [vmem:[%s6491_s30 + $0x50] sm:$0xff]  }
0x116e   : > { %v5073_v31 = vld [vmem:[%s6491_s30 + $0x80] sm:$0xff]  }
0x116f   : > { %v5075_v43 = vld [vmem:[%s6491_s30] sm:$0xff]  }
0x1170   : > { %4829 = vmatpush3.bf16.msra.mxu1 %v5061_v50  ;;  %v5083_v50 = vld [vmem:[%s6491_s30 + $0x58] sm:$0xff]  }
0x1171   : > { %4830 = vmatprep.subr.bf16.mxu1 %v5289_v15 }
0x1174   : > { %4831 = vmatpush3.bf16.msra.mxu1 %v5064_v59  ;;  %v5087_v59 = vld [vmem:[%s6491_s30 + $0x20] sm:$0xff]  }
0x1175   : > { %4832 = vmatprep.subr.bf16.mxu1 %v5289_v15 }
0x1178   : > { %4833 = vmatpush3.bf16.msra.mxu1 %v5067_v62  ;;  %v5089_v62 = vld [vmem:[%s6491_s30 + $0x68] sm:$0xff]  }
0x1179   : > { %4838 = vmatprep.subr.bf16.mxu1 %v5289_v15 }
0x11de   : > { %v2984_v5 = vpop.xlane.xlu0 %2983 }
0x11df   : > { %5136 = vrcp.f32 %v2984_v5 }
0x11e2   : > { %v3003_v6 = vpop.permute.xlu0 %3002 }
0x11e3   : > { %4805 = vmatpush3.bf16.msra.mxu0 %v3003_v6 }
0x11e4   : > { %4810 = vmatprep.subr.bf16.mxu0 %v5289_v15 }
0x11e6   : > { %v2889_v8 = vpop.permute.xlu0 %2888 }
0x11e7   : > { %2891 = vst.msk [vmem:[#allocation3] sm:$0xff] %vm1819_vm12, %v2889_v8 }
0x11e9   : > { %v5137_v9 = vpop.eup %5136 }
0x11ea   : > { %v2986_v42 = vmul.f32 %v5137_v9, %v5135_v33 }
0x11ec   : > { %v2987_v54 = vpack.c.bf16 %v2986_v42, %v2986_v42 }
0x11ee   : > { %4807 = vmatmul.mubr.bf16.vlgmr.msra.gmra.mrb[72].mxu0 %v2987_v54 }
0x11ef   : > { %4814 = vmatprep.mubr.msk.bf16.mxu0 %vm5291_vm2, %v5289_v15  ;;  %4811 = vmatpush3.bf16.msra.mxu0 %v5044_v60 }
0x11f0   : > { %4812 = vmatprep.subr.bf16.mxu0 %v5289_v15 }
0x11f3   : > { %4813 = vmatpush3.bf16.msra.mxu0 %v5045_v41 }
0x12c1   : > { %v3046_v10 = vpop.f32.mrb[72].mxu0 }
0x12c2   : > { %3053 = vrot.lane.b32.xlu1 %v3046_v10, %s5297_s1  ;;  %v4808_v11 = vpop.f32.mrb[73].mxu0 }
0x12c3   : > { %v3049_v14 = vpop.f32.mrb[74].mxu0  ;;  %v4283_v11 = vld [vmem:[%s1074_s0] ss:$0 sm:$0xff] }
0x12c4   : > { %v4809_v16 = vpop.f32.mrb[75].mxu0 }
0x1334   : > { %v3054_v17 = vpop.permute.xlu1 %3053 }
0x1335   : > { %3056 = vst.msk [vmem:[#allocation3] sm:$0xff] %vm1936_vm13, %v3054_v17  ;;  %v4284_v17 = vld [vmem:[%s1077_s3] ss:$0 sm:$0xff] }
0x133c   : > { %v3057_v18 = vld [vmem:[#allocation3] sm:$0xff] }
0x133d   : > { %v3058_v20 = vpack.c.bf16 %v3057_v18, %v3057_v18 }
0x133f   : > { %4815 = vmatmul.mubr.msk.bf16.vlgmr.msra.gmra.mrb[76].mxu0 %vm1952_vm14, %v3058_v20 }
0x1412   : > { %v3108_v21 = vpop.f32.mrb[76].mxu0 }
0x1413   : > { %v6154_v22 = vadd.f32 %v3108_v21, %v5806_v19  ;;  %v4816_v23 = vpop.f32.mrb[77].mxu0  ;;  %v5047_v19 = vld [vmem:[%s6490_s29 + $0x40] sm:$0xff]  }
0x1414   : > { %v3111_v25 = vpop.f32.mrb[78].mxu0  ;;  %4475 = vmatprep.subr.bf16.mxu0 %v5047_v19 }
0x1415   : > { %3117 = vadd.xlane.f32.xlu0 %v6154_v22  ;;  %v4817_v27 = vpop.f32.mrb[79].mxu0  ;;  %v3120_v28 = vmul.f32 %v6154_v22, %v6154_v22  ;;  %4476 = vmatpush3.bf16.msra.mxu0 %v5048_v34 }
0x1416   : > { %4477 = vmatprep.subr.bf16.mxu0 %v5050_v35 }
0x1417   : > { %3121 = vadd.xlane.f32.xlu1 %v3120_v28 }
0x1419   : > { %4478 = vmatpush3.bf16.msra.mxu0 %v5051_v37 }
0x141a   : > { %4479 = vmatprep.subr.bf16.mxu0 %v5053_v39 }
0x141d   : > { %4480 = vmatpush3.bf16.msra.mxu0 %v5054_v32  ;;  %v5077_v32 = vld [vmem:[%s6491_s30 + $0x48] sm:$0xff]  }
0x141e   : > { %4481 = vmatprep.subr.bf16.mxu0 %v5056_v13  ;;  %v5078_v13 = vld [vmem:[%s6491_s30 + $0x8] sm:$0xff]  }
0x1421   : > { %4482 = vmatpush3.bf16.msra.mxu0 %v5057_v45  ;;  %v5081_v45 = vld [vmem:[%s6491_s30 + $0x10] sm:$0xff]  }
0x1422   : > { %4483 = vmatprep.subr.bf16.mxu0 %v5059_v47  ;;  %v5079_v47 = vld [vmem:[%s6491_s30 + $0x90] sm:$0xff]  }
0x1425   : > { %4484 = vmatpush3.bf16.msra.mxu0 %v5060_v53  ;;  %v5084_v53 = vld [vmem:[%s6491_s30 + $0x18] sm:$0xff]  }
0x1426   : > { %4485 = vmatprep.subr.bf16.mxu0 %v5062_v56  ;;  %v5082_v56 = vld [vmem:[%s6491_s30 + $0x98] sm:$0xff]  }
0x1429   : > { %4486 = vmatpush3.bf16.msra.mxu0 %v5063_v57  ;;  %v5086_v57 = vld [vmem:[%s6491_s30 + $0x60] sm:$0xff]  }
0x142a   : > { %4487 = vmatprep.subr.bf16.mxu0 %v5065_v61  ;;  %v5085_v61 = vld [vmem:[%s6491_s30 + $0xa0] sm:$0xff]  }
0x142d   : > { %4488 = vmatpush3.bf16.msra.mxu0 %v5066_v63  ;;  %v5090_v63 = vld [vmem:[%s6491_s30 + $0x28] sm:$0xff]  }
0x142e   : > { %4489 = vmatprep.subr.bf16.mxu0 %v5068_v0  ;;  %v5088_v0 = vld [vmem:[%s6491_s30 + $0xa8] sm:$0xff]  }
0x1431   : > { %4490 = vmatpush3.bf16.msra.mxu0 %v5070_v1  ;;  %v5092_v1 = vld [vmem:[%s6491_s30 + $0x70] sm:$0xff]  }
0x1432   : > { %4506 = vmatprep.subr.bf16.mxu0 %v5074_v48  ;;  %v5093_v48 = vld [vmem:[%s6491_s30 + $0x30] sm:$0xff]  }
0x14a2   : > { %v3118_v2 = vpop.xlane.xlu0 %3117 }
0x14a3   : > { %v3119_v26 = vmul.f32 0.03125, %v3118_v2  ;;  %v5091_v2 = vld [vmem:[%s6491_s30 + $0xb0] sm:$0xff]  }
0x14a4   : > { %v3122_v55 = vpop.xlane.xlu1 %3121 }
0x14a5   : > { %v3123_v33 = vmul.f32 32.0, %v3119_v26  ;;  %v3138_v10 = vsub.f32 %v6154_v22, %v3119_v26 }
0x14a7   : > { %v3124_v51 = vmul.f32 %v3123_v33, %v3119_v26  ;;  %v3145_v14 = vmul.f32 %v4283_v11, %v3138_v10  ;;  %v5095_v26 = vld [vmem:[%s6491_s30 + $0x78] sm:$0xff]  }
0x14a8   : > { %v5097_v33 = vld [vmem:[%s6491_s30 + $0x38] sm:$0xff]  }
0x14a9   : > { %v3125_v4 = vsub.f32 %v3122_v55, %v3124_v51  ;;  %v5094_v51 = vld [vmem:[%s6491_s30 + $0xb8] sm:$0xff]  }
0x14ab   : > { %v3126_v5 = vmax.f32 %v3125_v4, 0.0 }
0x14ad   : > { %v3127_v6 = vmul.f32 0.032258064, %v3126_v5 }
0x14af   : > { %5138 = vrsqrt.f32 %v3127_v6  ;;  %vm3130_vm4 = vcmp.eq.f32.partialorder %v3127_v6, inf  ;;  %v3133_v42 = vand.u32 2147483648, %v3127_v6  ;;  %vm3132_vm5 = vcmp.eq.f32.partialorder %v3127_v6, 0.0 }
0x14b9   : > { %v5139_v8 = vpop.eup %5138 }
0x14ba   : > { %v3129_v9 = vmul.f32 %v5139_v8, %v3127_v6 }
0x14bc   : > { %v3131_v54 = vsel %vm3130_vm4, %v3127_v6, %v3129_v9  ;;  %v4285_v9 = vld [vmem:[%s6495_s11] ss:$0 sm:$0xff] }
0x14bd   : > { %v3134_v60 = vsel %vm3132_vm5, %v3133_v42, %v3131_v54 }
0x14be   : > { %v3135_v41 = vadd.f32 1e-06, %v3134_v60 }
0x14c0   : > { %5140 = vrcp.f32 %v3135_v41 }
0x14ca   : > { %v5141_v16 = vpop.eup %5140 }
0x14cb   : > { %v3146_v18 = vmul.f32 %v5141_v16, %v3145_v14 }
0x14cd   : > { %v3153_v20 = vadd.f32 %v4284_v17, %v3146_v18 }
0x14cf   : > { %v3203_v21 = vpack.c.bf16 %v3153_v20, %v3153_v20  ;;  %v3206_v23 = vrot.slane %v3153_v20, 7  ;;  %v3211_v25 = vrot.slane %v3153_v20, 6 }
0x14d1   : > { %3204 = vst [vmem:[#allocation4 + $0x8] sm:$0xf] %v3203_v21  ;;  %v3207_v27 = vsel %vm3205_vm6, 0.0, %v3206_v23  ;;  %v3212_v28 = vsel %vm3210_vm7, 0.0, %v3211_v25  ;;  %v4313_v25 = vld [vmem:[%s6497_s14] ss:$0 sm:$0xff] }
0x14d2   : > { %v3208_v29 = vpack.c.bf16 %v3207_v27, %v3207_v27  ;;  %v3213_v19 = vpack.c.bf16 %v3212_v28, %v3212_v28 }
0x14d4   : > { %3209 = vst [vmem:[#allocation4 + $0x4] sm:$0xf] %v3208_v29  ;;  %3214 = vst [vmem:[#allocation4] sm:$0xf] %v3213_v19 }
0x14d8   : > { %v5069_v34 = vld [vmem:[#allocation4 + $0x8] ss:$0 sps:$4 sm:$0xff]  }
0x14d9   : > { %4835 = vmatmul.mubr.bf16.vlgmr.msra.gmra.mrb[36].mxu1 %v5069_v34 }
0x14da   : > { %4839 = vmatpush3.bf16.msra.mxu1 %v5073_v31  ;;  %4854 = vmatprep.mubr.msk.bf16.mxu1 %vm5291_vm2, %v5289_v15  ;;  %vm5149_vm2 = vmneg %vm3205_vm6 }
0x14db   : > { %v3215_v35 = vld [vmem:[#allocation4] sm:$0xff]  ;;  %4840 = vmatprep.subr.bf16.mxu1 %v5289_v15  ;;  %vm5151_vm8 = vmpackc.low %vm5149_vm2, %vm5149_vm2 }
0x14dc   : > { %v4286_v37 = vcombine.low %v3215_v35, %v3215_v35  ;;  %v4287_v39 = vcombine.high %v3215_v35, %v3215_v35 }
0x14de   : > { %3410 = vmatprep.mubr.bf16.mxu0 %v4287_v39  ;;  %4841 = vmatpush3.bf16.msra.mxu1 %v5076_v36 }
0x14df   : > { %3411 = vmatmul.mubr.bf16.vlgmr.msra.gmra.mrb[80].mxu0 %v4286_v37  ;;  %4842 = vmatprep.subr.bf16.mxu1 %v5289_v15 }
0x14e0   : > { %4507 = vmatpush3.bf16.msra.mxu0 %v5075_v43 }
0x14e1   : > { %4508 = vmatprep.subr.bf16.mxu0 %v5077_v32  ;;  %v5298_v32 = vmov (!%p4341_p5), 0.0  }
0x14e2   : > { %4843 = vmatpush3.bf16.msra.mxu1 %v5079_v47 }
0x14e3   : > { %4844 = vmatprep.subr.bf16.mxu1 %v5289_v15 }
0x14e4   : > { %4509 = vmatpush3.bf16.msra.mxu0 %v5078_v13 }
0x14e5   : > { %4510 = vmatprep.subr.bf16.mxu0 %v5080_v44 }
0x14e6   : > { %4845 = vmatpush3.bf16.msra.mxu1 %v5082_v56 }
0x14e7   : > { %4846 = vmatprep.subr.bf16.mxu1 %v5289_v15 }
0x14e8   : > { %4511 = vmatpush3.bf16.msra.mxu0 %v5081_v45 }
0x14e9   : > { %4512 = vmatprep.subr.bf16.mxu0 %v5083_v50 }
0x14ea   : > { %4847 = vmatpush3.bf16.msra.mxu1 %v5085_v61 }
0x14eb   : > { %4848 = vmatprep.subr.bf16.mxu1 %v5289_v15 }
0x14ec   : > { %4513 = vmatpush3.bf16.msra.mxu0 %v5084_v53  ;;  %v4342_v53 = vld [vmem:[%s6498_s9] ss:$0 sm:$0xff] (!%p4341_p5) }
0x14ed   : > { %4514 = vmatprep.subr.bf16.mxu0 %v5086_v57 }
0x14ee   : > { %4849 = vmatpush3.bf16.msra.mxu1 %v5088_v0 }
0x14ef   : > { %4850 = vmatprep.subr.bf16.mxu1 %v5289_v15 }
0x14f0   : > { %4515 = vmatpush3.bf16.msra.mxu0 %v5087_v59  ;;  %v4343_v59 = vld [vmem:[%s6499_s8] ss:$0 sm:$0xff] (!%p4341_p5) }
0x14f1   : > { %4516 = vmatprep.subr.bf16.mxu0 %v5089_v62 }
0x14f2   : > { %4851 = vmatpush3.bf16.msra.mxu1 %v5091_v2 }
0x14f3   : > { %4852 = vmatprep.subr.bf16.mxu1 %v5289_v15 }
0x14f4   : > { %4517 = vmatpush3.bf16.msra.mxu0 %v5090_v63 }
0x14f5   : > { %4518 = vmatprep.subr.bf16.mxu0 %v5092_v1 }
0x14f6   : > { %4853 = vmatpush3.bf16.msra.mxu1 %v5094_v51 }
0x14f8   : > { %4519 = vmatpush3.bf16.msra.mxu0 %v5093_v48 }
0x14f9   : > { %4520 = vmatprep.subr.bf16.mxu0 %v5095_v26 }
0x14fc   : > { %4521 = vmatpush3.bf16.msra.mxu0 %v5097_v33 }
0x14fd   : > { %4858 = vmatprep.subr.bf16.mxu0 (!%p4341_p5), %v5298_v32 }
0x15ac   : > { %v3452_v55 = vpop.f32.mrb[36].mxu1 }
0x15ad   : > { %v4836_v4 = vpop.f32.mrb[37].mxu1 }
0x15ae   : > { %v3455_v5 = vpop.f32.mrb[38].mxu1 }
0x15af   : > { %v4837_v6 = vpop.f32.mrb[39].mxu1 }
0x15b2   : > { %v4491_v8 = vpop.f32.mrb[80].mxu0 }
0x15b3   : > { %v4492_v42 = vpop.f32.mrb[81].mxu0 }
0x15b4   : > { %v4493_v54 = vadd.f32 %v4492_v42, %v4491_v8  ;;  %v4494_v60 = vpop.f32.mrb[82].mxu0 }
0x15b5   : > { %v4495_v41 = vpop.f32.mrb[83].mxu0 }
0x15b6   : > { %v3413_v10 = vadd.f32 %v4493_v54, %v4285_v9 }
0x15b8   : > { %v3453_v11 = vadd.f32 %v3452_v55, %v3413_v10 }
0x15ba   : > { %v3458_v15 = vmax.f32 %v3453_v11, 0.0 }
0x15bc   : > { %v3508_v14 = vpack.c.bf16 %v3458_v15, %v3458_v15  ;;  %v3510_v16 = vrot.slane %v3458_v15, 7  ;;  %v3514_v17 = vrot.slane %v3458_v15, 6 }
0x15be   : > { %3509 = vst [vmem:[#allocation5 + $0x8] sm:$0xf] %v3508_v14  ;;  %v5152_v18 = vpack.c.bf16 %v3510_v16, %v3510_v16  ;;  %v5157_v20 = vpack.c.bf16 %v3514_v17, %v3514_v17 }
0x15c0   : > { %5153 = vmatprep.mubr.msk.bf16.mxu0 %vm5151_vm8, %v5152_v18 }
0x15c1   : > { %5158 = vmatmul.mubr.msk.bf16.vlgmr.msra.gmra.mrb[84].mxu0 %vm5156_vm10, %v5157_v20 }
0x15c2   : > { %4874 = vmatprep.mubr.msk.bf16.mxu0 (!%p4341_p5), %vm5299_vm11, %v5298_v32  ;;  %4859 = vmatpush3.bf16.xpose.msra.mxu0 (!%p4341_p5), %v5838_v40 }
0x15c3   : > { %4860 = vmatprep.subr.bf16.mxu0 (!%p4341_p5), %v5298_v32 }
0x15c5   : > { %v5096_v21 = vld [vmem:[#allocation5 + $0x8] ss:$0 sps:$4 sm:$0xff]  }
0x15c6   : > { %4855 = vmatmul.mubr.bf16.vlgmr.msra.gmra.mrb[40].mxu1 %v5096_v21 }
0x15ca   : > { %4861 = vmatpush3.bf16.xpose.msra.mxu0 (!%p4341_p5), %v5846_v46 }
0x15cb   : > { %4862 = vmatprep.subr.bf16.mxu0 (!%p4341_p5), %v5298_v32 }
0x15d2   : > { %4863 = vmatpush3.bf16.xpose.msra.mxu0 (!%p4341_p5), %v5854_v52 }
0x15d3   : > { %4864 = vmatprep.subr.bf16.mxu0 (!%p4341_p5), %v5298_v32 }
0x15da   : > { %4865 = vmatpush3.bf16.xpose.msra.mxu0 (!%p4341_p5), %v5884_v24 }
0x15db   : > { %4866 = vmatprep.subr.bf16.mxu0 (!%p4341_p5), %v5298_v32 }
0x15e2   : > { %4867 = vmatpush3.bf16.xpose.msra.mxu0 (!%p4341_p5), %v5895_v7 }
0x15e3   : > { %4868 = vmatprep.subr.bf16.mxu0 (!%p4341_p5), %v5298_v32 }
0x15ea   : > { %4869 = vmatpush3.bf16.xpose.msra.mxu0 (!%p4341_p5), %v5906_v38 }
0x15eb   : > { %4870 = vmatprep.subr.bf16.mxu0 (!%p4341_p5), %v5298_v32 }
0x15f2   : > { %4871 = vmatpush3.bf16.xpose.msra.mxu0 (!%p4341_p5), %v5917_v49 }
0x15f3   : > { %4872 = vmatprep.subr.bf16.mxu0 (!%p4341_p5), %v5298_v32 }
0x15fa   : > { %4873 = vmatpush3.bf16.xpose.msra.mxu0 (!%p4341_p5), %v5928_v58 }
0x1601   : > { %4875 = vmatmul.mubr.bf16.vlgmr.msra.gmra.mrb[0].mxu0 (!%p4341_p5), %v5939_v3 }
0x1694   : > { %v4522_v23 = vpop.f32.mrb[84].mxu0 }
0x1695   : > { %v4523_v27 = vpop.f32.mrb[85].mxu0 }
0x1696   : > { %v4524_v28 = vadd.f32 %v4523_v27, %v4522_v23  ;;  %v4525_v29 = vpop.f32.mrb[86].mxu0 }
0x1697   : > { %v4526_v31 = vpop.f32.mrb[87].mxu0 }
0x1698   : > { %v3716_v12 = vadd.f32 %v4524_v28, %v4313_v25  ;;  %3766 = sbr.rel (%p4341_p5) target bundleno = 5977 (0x1759), region = 120 }
0x1699   : > { %v3755_v19 = vpop.f32.mrb[40].mxu1 }
0x169a   : > { %v4856_v34 = vpop.f32.mrb[41].mxu1  ;;  %v3756_v37 = vadd.f32 %v3755_v19, %v3716_v12 }
0x169b   : > { %v3758_v35 = vpop.f32.mrb[42].mxu1 }
0x169c   : > { %v4857_v36 = vpop.f32.mrb[43].mxu1  ;;  %v3761_v39 = vadd.f32 %v3756_v37, %v6154_v22 }
0x169e   : > { %3762 = vst [vmem:[%s5623_s22] sm:$0xff] %v3761_v39  ;;  %3769 = vadd.xlane.f32.xlu0 (!%p4341_p5), %v3761_v39  ;;  %v3772_v43 = vmul.f32 (!%p4341_p5), %v3761_v39, %v3761_v39 }
0x16a2   : > { %3773 = vadd.xlane.f32.xlu0 %v3772_v43 }
0x16d4   : > { %v3841_v63 = vpop.f32.mrb[0].mxu0 }
0x16d5   : > { %v3847_v0 = vmul.f32 0.25, %v3841_v63  ;;  %v4876_v1 = vpop.f32.mrb[1].mxu0 }
0x16d6   : > { %v3844_v48 = vpop.f32.mrb[2].mxu0 }
0x16d7   : > { %v3848_v2 = vsel %vm2492_vm3, -1e+18, %v3847_v0  ;;  %v4877_v26 = vpop.f32.mrb[3].mxu0 }
0x16d8   : > { %3849 = vst [vmem:[%s5608_s28] sm:$0xff] %v3848_v2 }
0x172b   : > { %v3770_v40 = vpop.xlane.xlu0 %3769 }
0x172c   : > { %v3771_v46 = vmul.f32 0.03125, %v3770_v40 }
0x172e   : > { %v3775_v52 = vmul.f32 32.0, %v3771_v46  ;;  %v3790_v3 = vsub.f32 %v3761_v39, %v3771_v46 }
0x172f   : > { %v3774_v22 = vpop.xlane.xlu0 %3773 }
0x1730   : > { %v3776_v13 = vmul.f32 %v3775_v52, %v3771_v46  ;;  %v3797_v56 = vmul.f32 %v4342_v53, %v3790_v3 }
0x1732   : > { %v3777_v24 = vsub.f32 %v3774_v22, %v3776_v13 }
0x1734   : > { %v3778_v44 = vmax.f32 %v3777_v24, 0.0 }
0x1736   : > { %v3779_v45 = vmul.f32 0.032258064, %v3778_v44 }
0x1738   : > { %5143 = vrsqrt.f32 %v3779_v45  ;;  %vm3782_vm12 = vcmp.eq.f32.partialorder %v3779_v45, inf  ;;  %v3785_v38 = vand.u32 2147483648, %v3779_v45  ;;  %vm3784_vm13 = vcmp.eq.f32.partialorder %v3779_v45, 0.0 }
0x1742   : > { %v5144_v7 = vpop.eup %5143 }
0x1743   : > { %v3781_v47 = vmul.f32 %v5144_v7, %v3779_v45 }
0x1745   : > { %v3783_v49 = vsel %vm3782_vm12, %v3779_v45, %v3781_v47 }
0x1746   : > { %v3786_v50 = vsel %vm3784_vm13, %v3785_v38, %v3783_v49 }
0x1747   : > { %v3787_v58 = vadd.f32 1e-06, %v3786_v50 }
0x1749   : > { %5145 = vrcp.f32 %v3787_v58 }
0x1753   : > { %v5146_v57 = vpop.eup %5145 }
0x1754   : > { %v3798_v61 = vmul.f32 %v5146_v57, %v3797_v56 }
0x1756   : > { %v3805_v62 = vadd.f32 %v4343_v59, %v3798_v61 }
0x1758   : > { %3806 = vst [vmem:[%s5604_s4] sm:$0xff] %v3805_v62 }
0x1759 PF: > { %s6500_s24 = sld [smem:[#allocation15_spill]]  ;;  %p3863_p6 = scmp.eq.s32.totalorder %s5273_s6, 1 }
0x175a   : > { %s3871_s29 = sshll.u32 %s5604_s4, 4  ;;  %s3886_s30 = sshll.u32 %s5608_s28, 4  ;;  %s6280_s29 = int_to_ptr.vmem [resolvable:$true] %s3871_s29  ;;  %s6283_s30 = int_to_ptr.vmem [resolvable:$true] %s3886_s30 }
0x175b   : > { %s6502_s23 = sld [smem:[#allocation50_spill]]  ;;  %s6503_s3 = sld [smem:[#allocation51_spill]] }
0x175c   : > { %s3851_s4 = scalar_lea.sflag [#allocation7], %s5499_s5  ;;  %s5159_s21 = scalar_lea.vmem %s6280_s29, 128 }
0x175d   : > { %p5160_p9 = scmp.ne.s32.totalorder %s6280_s29, %s5159_s21  ;;  %s5300_s28 = smov [#allocation6]  }
0x175e   : > { %s5163_s11 = sshll.u32 %s5300_s28, 4  ;;  %s5164_s11 = int_to_ptr.vmem [resolvable:$false] %s5163_s11 }
0x175f   : > { %s6523_s24 = smov (!%p3863_p6, %s6500_s24), 0  ;;  %p5161_p10 = pnand %p5160_p9, %p5482_p7 }
0x1760   : > { %s4346_s10 = sshll.u32 %s6523_s24, 7  ;;  %s5165_s19 = scalar_lea.vmem %s5164_s11, 256 }
0x1761   : > { %s6288_s18 = scalar_lea.hbm %s6502_s23, %s4346_s10  ;;  %s6293_s6 = scalar_lea.hbm %s6503_s3, %s4346_s10 }
0x1762   : > { %p5162_p11 = pneg %p5161_p10  ;;  %p5166_p12 = scmp.lt.s32.totalorder %s6280_s29, %s5164_s11 }
0x1763   : > { %p5167_p13 = scmp.lt.s32.totalorder %s5165_s19, %s5159_s21 }
0x1765   : > { %p5168_p0 = por %p5167_p13, %p5166_p12 }
0x1767   : > { %p5169_p1 = pnand %p5168_p0, %p5162_p11 }
0x1769   : > { %5172 = shalt.err (!%p5169_p1)
}
0x176a   : > { %s5173_s12 = scalar_lea.hbm %s6288_s18, 128  ;;  %s5177_s17 = scalar_lea.hbm %s6502_s23, 256 }
0x176b   : > { %p5174_p2 = scmp.ne.s32.totalorder %s6288_s18, %s5173_s12  ;;  %p5178_p5 = scmp.lt.u32.totalorder %s6288_s18, %s6502_s23 }
0x176c   : > { %p5179_p6 = scmp.lt.u32.totalorder %s5177_s17, %s5173_s12  ;;  %p5181_p10 = scmp.lt.u32.totalorder %s5173_s12, %s6288_s18 }
0x176d   : > { %p5175_p3 = pnand %p5174_p2, %p5482_p7 }
0x176e   : > { %p5180_p9 = por %p5179_p6, %p5178_p5 }
0x176f   : > { %p5176_p4 = pneg %p5175_p3 }
0x1770   : > { %p5182_p11 = por %p5181_p10, %p5180_p9 }
0x1772   : > { %p5183_p12 = pnand %p5182_p11, %p5176_p4 }
0x1774   : > { %5186 = shalt.err (!%p5183_p12)
}
0x1775   : > { %4879 = dma.vmem_to_hbm [thread:$0]  (%p5482_p7), %s6280_s29, 128, %s6288_s18, %s3851_s4  }
0x1776   : > { %s3856_s27 = scalar_lea.sflag [#allocation9], %s5499_s5  ;;  %s5187_s20 = scalar_lea.vmem %s6283_s30, 128 }
0x1777   : > { %p5188_p13 = scmp.ne.s32.totalorder %s6283_s30, %s5187_s20  ;;  %s5301_s8 = smov [#allocation8]  }
0x1778   : > { %s5191_s24 = sshll.u32 %s5301_s8, 4  ;;  %s5192_s24 = int_to_ptr.vmem [resolvable:$false] %s5191_s24 }
0x1779   : > { %p5189_p0 = pnand %p5188_p13, %p5482_p7  ;;  %s5193_s10 = scalar_lea.vmem %s5192_s24, 256 }
0x177a   : > { %p5194_p2 = scmp.lt.s32.totalorder %s6283_s30, %s5192_s24  ;;  %p5195_p3 = scmp.lt.s32.totalorder %s5193_s10, %s5187_s20 }
0x177b   : > { %p5190_p1 = pneg %p5189_p0 }
0x177c   : > { %p5196_p4 = por %p5195_p3, %p5194_p2 }
0x177e   : > { %p5197_p5 = pnand %p5196_p4, %p5190_p1 }
0x1780   : > { %5200 = shalt.err (!%p5197_p5)
}
0x1781   : > { %s5201_s5 = scalar_lea.hbm %s6293_s6, 128  ;;  %s5205_s7 = scalar_lea.hbm %s6503_s3, 256 }
0x1782   : > { %p5202_p6 = scmp.ne.s32.totalorder %s6293_s6, %s5201_s5  ;;  %p5206_p11 = scmp.lt.u32.totalorder %s6293_s6, %s6503_s3 }
0x1783   : > { %p5207_p12 = scmp.lt.u32.totalorder %s5205_s7, %s5201_s5  ;;  %p5209_p0 = scmp.lt.u32.totalorder %s5201_s5, %s6293_s6 }
0x1784   : > { %p5203_p9 = pnand %p5202_p6, %p5482_p7 }
0x1785   : > { %p5208_p13 = por %p5207_p12, %p5206_p11 }
0x1786   : > { %p5204_p10 = pneg %p5203_p9 }
0x1787   : > { %p5210_p1 = por %p5209_p0, %p5208_p13 }
0x1789   : > { %p5211_p2 = pnand %p5210_p1, %p5204_p10 }
0x178b   : > { %5214 = shalt.err (!%p5211_p2)
}
0x178c   : > { %4880 = dma.vmem_to_hbm [thread:$0]  (%p5482_p7), %s6283_s30, 128, %s6293_s6, %s3856_s27  }
0x178d PF: > { %s6504_s0 = sld [smem:[#allocation18_spill]]  ;;  %s6505_s4 = sld [smem:[#allocation12_spill]] }
0x1793   : > { %p4890_p3 = scmp.ge.s32.totalorder %s6504_s0, 2  ;;  %s3898_s28 = sand.u32 1, %s6505_s4  }
0x1794   : > { %s3899_s11 = scalar_lea.sflag [#allocation7], %s3898_s28 }
0x1795   : > { %p4884_p4 = pnand %p4890_p3, %p5486_p8 }
0x1797   : > { %5248 = dma.done.wait (!%p4884_p4), %s3899_s11, 128  }
0x1798   : > { %5250 = vsyncadd (!%p4884_p4), %s3899_s11, 4294967168  ;;  %s3908_s19 = scalar_lea.sflag [#allocation9], %s3898_s28 }
0x1799   : > { %5252 = dma.done.wait (!%p4884_p4), %s3908_s19, 128  }
0x179a   : > { %5254 = vsyncadd (!%p4884_p4), %s3908_s19, 4294967168  ;;  %s41_s0 = sadd.s32 1, %s6504_s0   ;;  %s6507_s5 = sld [smem:[#allocation13_spill]] }
0x179b   : > { %p38_p5 = scmp.ge.s32.totalorder %s41_s0, 6   ;;  %s6508_s26 = sld [smem:[#allocation14_spill]] }
0x179c   : > { %s6509_s27 = sld [smem:[#allocation23_spill]]  ;;  %s6510_s28 = sld [smem:[#allocation16_spill]] }
0x179d   : > { %s6511_s6 = sld [smem:[#allocation17_spill]]  ;;  %s6512_s2 = sld [smem:[#allocation19_spill]] }
0x179e   : > { %s6513_s29 = sld [smem:[#allocation20_spill]]  ;;  %40 = sbr.rel (!%p38_p5) target bundleno = 31 (0x1f), region = 228 }
0x17a5   :  { %3913 = vsyncpa [#allocation7], 1 }
0x17a6   :  { %3915 = vsyncpa [#allocation7 + $0x1], 1 }
0x17a7   :  { %3916 = vsyncpa [#allocation9], 1 }
0x17a8   :  { %3918 = vsyncpa [#allocation9 + $0x1], 1 }

</bundles_post_ra>
